<compile_context>
chip_gen: v5e
topology: v5e:2x2
jax: 0.10.0
libtpu: 0.0.40
codegen_flags: <defaults>
</compile_context>

<pallas_src>
import functools

import jax
import jax.numpy as jnp
from jax.experimental import pallas as pl
from jax.experimental.pallas import tpu as pltpu

IN_FEATURES = 28 * 28     # 784 (fc1 contraction dim; no explicit K padding)
H1, H2, H3 = 1024, 512, 256
OUT_PAD = 128             # fc4 output padded 1 -> 128 (lane-dense stores)
NEG_SLOPE = 0.2


def _round_up(x, m):
    return ((x + m - 1) // m) * m


def _leaky_relu(x):
    # For 0 < slope < 1: leaky_relu(x) == max(x, slope*x). 2 VPU ops, no select.
    return jnp.maximum(x, NEG_SLOPE * x)


def _device_config():
    """Trace-time chip heuristics; safe fallbacks if detection fails."""
    try:
        kind = jax.devices()[0].device_kind.lower()
    except Exception:
        kind = ""
    two_cores = "v7" in kind        # v7x: 2 TensorCores/chip -> want grid >= 2
    f32_act = "v5" in kind          # v5e: no bf16 VALU/EUP -> keep elementwise f32
    return two_cores, f32_act


def discriminator_kernel(x_ref,
                         w1_ref, b1_ref,
                         w2_ref, b2_ref,
                         w3_ref, b3_ref,
                         w4_ref, b4_ref,
                         o_ref,
                         *, act_dtype):
    # x_ref: (tb, 784) tile in the caller's float dtype; cast to bf16 here so
    # no separate wrapper pad/cast pass touches HBM before the kernel runs.
    x = x_ref[...].astype(jnp.bfloat16)

    def layer(h, w_ref, b_ref):
        acc = jnp.dot(h, w_ref[...], preferred_element_type=jnp.float32) + b_ref[...]
        # bf16 activations on v6e/v7x (halves VPU work / vreg footprint),
        # f32 on v5e; either way feed the next MXU in bf16.
        return _leaky_relu(acc.astype(act_dtype)).astype(jnp.bfloat16)

    h1 = layer(x, w1_ref, b1_ref)
    h2 = layer(h1, w2_ref, b2_ref)
    h3 = layer(h2, w3_ref, b3_ref)

    # (tb, 128) logits; only column 0 is the real fc4 output (rest are zero
    # weight/bias columns, discarded in the wrapper).
    logits = jnp.dot(h3, w4_ref[...], preferred_element_type=jnp.float32) + b4_ref[...]

    # Numerically stable, exact sigmoid: one EUP exp + one exact reciprocal.
    z = jnp.exp(-jnp.abs(logits))
    inv = pl.reciprocal(1.0 + z, approx=False)
    o_ref[...] = jnp.where(logits >= 0, inv, z * inv)


def discriminator_forward(x, params):
    """x: (B, 1, 28, 28) (or anything whose trailing dims multiply to 784)."""
    w1, b1, w2, b2, w3, b3, w4, b4 = params
    two_cores, f32_act = _device_config()
    act_dtype = jnp.float32 if f32_act else jnp.bfloat16

    x2d = x.reshape(-1, IN_FEATURES)
    B = x2d.shape[0]

    # Tile selection (see header). tb is a multiple of 16 (bf16 sublane pack),
    # derived from B so ragged batches don't create nearly-empty tiles.
    max_tb = 256 if two_cores else 512
    min_tiles = 2 if (two_cores and B >= 32) else 1
    n_tiles = max(min_tiles, pl.cdiv(B, max_tb))
    tb = _round_up(pl.cdiv(B, n_tiles), 16)
    B_pad = n_tiles * tb

    if B_pad != B:  # only the ragged remainder is zero-padded (no dtype change)
        x2d = jnp.pad(x2d, ((0, B_pad - B), (0, 0)))

    def full(a):
        return pl.BlockSpec(a.shape, lambda i, _nd=a.ndim: (0,) * _nd)

    flops = 2 * B_pad * (IN_FEATURES * H1 + H1 * H2 + H2 * H3 + H3 * OUT_PAD)
    param_bytes = sum(int(p.size) * p.dtype.itemsize for p in params)
    bytes_accessed = int(x2d.size) * x2d.dtype.itemsize + param_bytes + B_pad * OUT_PAD * 4

    out = pl.pallas_call(
        functools.partial(discriminator_kernel, act_dtype=act_dtype),
        out_shape=jax.ShapeDtypeStruct((B_pad, OUT_PAD), jnp.float32),
        grid_spec=pltpu.PrefetchScalarGridSpec(
            num_scalar_prefetch=0,
            grid=(n_tiles,),
            in_specs=[
                # (tb, 784): last dim equals the full array dim -> legal block.
                pl.BlockSpec((tb, IN_FEATURES), lambda i: (i, 0)),
                full(w1), full(b1),
                full(w2), full(b2),
                full(w3), full(b3),
                full(w4), full(b4),
            ],
            out_specs=pl.BlockSpec((tb, OUT_PAD), lambda i: (i, 0)),
        ),
        compiler_params=pltpu.CompilerParams(
            dimension_semantics=("parallel",),
            vmem_limit_bytes=32 << 20,
        ),
        cost_estimate=pl.CostEstimate(
            flops=flops,
            transcendentals=B_pad * OUT_PAD,
            bytes_accessed=bytes_accessed,
        ),
    )(x2d, w1, b1, w2, b2, w3, b3, w4, b4)

    # Strip batch padding and the 127 zero output columns.
    return out[:B, :1]


def init_params(key):
    """PyTorch nn.Linear-style init: U(-1/sqrt(fan_in), +1/sqrt(fan_in)).
    Weights stored transposed as (in_features, out_features), cast to bf16;
    fc4 N padded 1 -> 128 with zero columns (lane-dense output)."""
    dims = [(IN_FEATURES, H1), (H1, H2), (H2, H3), (H3, 1)]
    raw = []
    for (fan_in, fan_out) in dims:
        key, kw, kb = jax.random.split(key, 3)
        bound = 1.0 / (fan_in ** 0.5)
        w = jax.random.uniform(kw, (fan_in, fan_out), jnp.float32, -bound, bound)
        b = jax.random.uniform(kb, (1, fan_out), jnp.float32, -bound, bound)
        raw.append((w, b))
    (w1, b1), (w2, b2), (w3, b3), (w4, b4) = raw

    w4 = jnp.pad(w4, ((0, 0), (0, OUT_PAD - 1)))            # zero N padding
    b4 = jnp.pad(b4, ((0, 0), (0, OUT_PAD - 1)))

    bf16 = lambda w: w.astype(jnp.bfloat16)
    return (bf16(w1), b1, bf16(w2), b2, bf16(w3), b3, bf16(w4), b4)


def reference_forward(x, params, act_dtype=jnp.bfloat16):
    """Pure-JAX reference following the same bf16-weight / f32-accumulate path."""
    w1, b1, w2, b2, w3, b3, w4, b4 = params
    h = x.reshape(-1, IN_FEATURES).astype(jnp.bfloat16)
    for (w, b) in ((w1, b1), (w2, b2), (w3, b3)):
        acc = jnp.dot(h, w, preferred_element_type=jnp.float32) + b
        h = _leaky_relu(acc.astype(act_dtype)).astype(jnp.bfloat16)
    logits = jnp.dot(h, w4[:, :1], preferred_element_type=jnp.float32) + b4[:, :1]
    return jax.nn.sigmoid(logits)


if __name__ == "__main__":
    key = jax.random.PRNGKey(0)
    key, kx = jax.random.split(key)

    B = 8
    x = jax.random.normal(kx, (B, 1, 28, 28), jnp.float32)  # NCHW like PyTorch
    params = init_params(key)

    out = discriminator_forward(x, params)
    out = jax.block_until_ready(out)

    _, f32_act = _device_config()
    ref = reference_forward(x, params,
                            act_dtype=jnp.float32 if f32_act else jnp.bfloat16)
    assert out.shape == (B, 1), out.shape
    assert jnp.allclose(out, ref, atol=2e-3, rtol=2e-3), float(jnp.max(jnp.abs(out - ref)))

    print("KERNEL_OK")
</pallas_src>

<mosaic_0001>
module attributes {stable_mosaic.version = 11 : i64} {
  func.func @discriminator_kernel(%arg0: i32, %arg1: memref<16x784xf32, #tpu.memory_space<vmem>>, %arg2: memref<784x1024xbf16, #tpu.memory_space<vmem>>, %arg3: memref<1x1024xf32, #tpu.memory_space<vmem>>, %arg4: memref<1024x512xbf16, #tpu.memory_space<vmem>>, %arg5: memref<1x512xf32, #tpu.memory_space<vmem>>, %arg6: memref<512x256xbf16, #tpu.memory_space<vmem>>, %arg7: memref<1x256xf32, #tpu.memory_space<vmem>>, %arg8: memref<256x128xbf16, #tpu.memory_space<vmem>>, %arg9: memref<1x128xf32, #tpu.memory_space<vmem>>, %arg10: memref<16x128xf32, #tpu.memory_space<vmem>>) attributes {dimension_semantics = [#tpu.dimension_semantics<parallel>], iteration_bounds = array<i64: 1>, scalar_prefetch = 0 : i64, scratch_operands = 0 : i64, tpu.core_type = #tpu.core_type<tc>, window_params = [{transform_indices = @transform_0, window_bounds = array<i64: 16, 784>}, {pipeline_mode = #tpu.pipeline_mode<synchronous>, transform_indices = @transform_1, window_bounds = array<i64: 784, 1024>}, {pipeline_mode = #tpu.pipeline_mode<synchronous>, transform_indices = @transform_2, window_bounds = array<i64: 1, 1024>}, {pipeline_mode = #tpu.pipeline_mode<synchronous>, transform_indices = @transform_3, window_bounds = array<i64: 1024, 512>}, {pipeline_mode = #tpu.pipeline_mode<synchronous>, transform_indices = @transform_4, window_bounds = array<i64: 1, 512>}, {pipeline_mode = #tpu.pipeline_mode<synchronous>, transform_indices = @transform_5, window_bounds = array<i64: 512, 256>}, {pipeline_mode = #tpu.pipeline_mode<synchronous>, transform_indices = @transform_6, window_bounds = array<i64: 1, 256>}, {pipeline_mode = #tpu.pipeline_mode<synchronous>, transform_indices = @transform_7, window_bounds = array<i64: 256, 128>}, {pipeline_mode = #tpu.pipeline_mode<synchronous>, transform_indices = @transform_8, window_bounds = array<i64: 1, 128>}, {transform_indices = @transform_9, window_bounds = array<i64: 16, 128>}]} {
    %c0 = arith.constant 0 : index
    %c0_0 = arith.constant 0 : index
    %0 = vector.load %arg1[%c0, %c0_0] : memref<16x784xf32, #tpu.memory_space<vmem>>, vector<16x784xf32>
    %1 = arith.truncf %0 : vector<16x784xf32> to vector<16x784xbf16>
    %c0_1 = arith.constant 0 : index
    %c0_2 = arith.constant 0 : index
    %2 = vector.load %arg2[%c0_1, %c0_2] : memref<784x1024xbf16, #tpu.memory_space<vmem>>, vector<784x1024xbf16>
    %cst = arith.constant dense<0.000000e+00> : vector<16x1024xf32>
    %3 = tpu.matmul %1, %2, %cst {dimension_numbers = #tpu.dot_dimension_numbers<[1], [0], [0], [1], [0, 0, 1, 1], [], []>} : vector<16x784xbf16>, vector<784x1024xbf16>, vector<16x1024xf32> -> vector<16x1024xf32>
    %c0_3 = arith.constant 0 : index
    %c0_4 = arith.constant 0 : index
    %4 = vector.load %arg3[%c0_3, %c0_4] : memref<1x1024xf32, #tpu.memory_space<vmem>>, vector<1x1024xf32>
    %5 = vector.broadcast %4 : vector<1x1024xf32> to vector<16x1024xf32>
    %6 = arith.addf %3, %5 : vector<16x1024xf32>
    %7 = arith.truncf %6 : vector<16x1024xf32> to vector<16x1024xbf16>
    %cst_5 = arith.constant 2.001950e-01 : bf16
    %8 = vector.broadcast %cst_5 : bf16 to vector<16x1024xbf16>
    %9 = arith.mulf %8, %7 : vector<16x1024xbf16>
    %10 = arith.maximumf %7, %9 : vector<16x1024xbf16>
    %c0_6 = arith.constant 0 : index
    %c0_7 = arith.constant 0 : index
    %11 = vector.load %arg4[%c0_6, %c0_7] : memref<1024x512xbf16, #tpu.memory_space<vmem>>, vector<1024x512xbf16>
    %cst_8 = arith.constant dense<0.000000e+00> : vector<16x512xf32>
    %12 = tpu.matmul %10, %11, %cst_8 {dimension_numbers = #tpu.dot_dimension_numbers<[1], [0], [0], [1], [0, 0, 1, 1], [], []>} : vector<16x1024xbf16>, vector<1024x512xbf16>, vector<16x512xf32> -> vector<16x512xf32>
    %c0_9 = arith.constant 0 : index
    %c0_10 = arith.constant 0 : index
    %13 = vector.load %arg5[%c0_9, %c0_10] : memref<1x512xf32, #tpu.memory_space<vmem>>, vector<1x512xf32>
    %14 = vector.broadcast %13 : vector<1x512xf32> to vector<16x512xf32>
    %15 = arith.addf %12, %14 : vector<16x512xf32>
    %16 = arith.truncf %15 : vector<16x512xf32> to vector<16x512xbf16>
    %cst_11 = arith.constant 2.001950e-01 : bf16
    %17 = vector.broadcast %cst_11 : bf16 to vector<16x512xbf16>
    %18 = arith.mulf %17, %16 : vector<16x512xbf16>
    %19 = arith.maximumf %16, %18 : vector<16x512xbf16>
    %c0_12 = arith.constant 0 : index
    %c0_13 = arith.constant 0 : index
    %20 = vector.load %arg6[%c0_12, %c0_13] : memref<512x256xbf16, #tpu.memory_space<vmem>>, vector<512x256xbf16>
    %cst_14 = arith.constant dense<0.000000e+00> : vector<16x256xf32>
    %21 = tpu.matmul %19, %20, %cst_14 {dimension_numbers = #tpu.dot_dimension_numbers<[1], [0], [0], [1], [0, 0, 1, 1], [], []>} : vector<16x512xbf16>, vector<512x256xbf16>, vector<16x256xf32> -> vector<16x256xf32>
    %c0_15 = arith.constant 0 : index
    %c0_16 = arith.constant 0 : index
    %22 = vector.load %arg7[%c0_15, %c0_16] : memref<1x256xf32, #tpu.memory_space<vmem>>, vector<1x256xf32>
    %23 = vector.broadcast %22 : vector<1x256xf32> to vector<16x256xf32>
    %24 = arith.addf %21, %23 : vector<16x256xf32>
    %25 = arith.truncf %24 : vector<16x256xf32> to vector<16x256xbf16>
    %cst_17 = arith.constant 2.001950e-01 : bf16
    %26 = vector.broadcast %cst_17 : bf16 to vector<16x256xbf16>
    %27 = arith.mulf %26, %25 : vector<16x256xbf16>
    %28 = arith.maximumf %25, %27 : vector<16x256xbf16>
    %c0_18 = arith.constant 0 : index
    %c0_19 = arith.constant 0 : index
    %29 = vector.load %arg8[%c0_18, %c0_19] : memref<256x128xbf16, #tpu.memory_space<vmem>>, vector<256x128xbf16>
    %cst_20 = arith.constant dense<0.000000e+00> : vector<16x128xf32>
    %30 = tpu.matmul %28, %29, %cst_20 {dimension_numbers = #tpu.dot_dimension_numbers<[1], [0], [0], [1], [0, 0, 1, 1], [], []>} : vector<16x256xbf16>, vector<256x128xbf16>, vector<16x128xf32> -> vector<16x128xf32>
    %c0_21 = arith.constant 0 : index
    %c0_22 = arith.constant 0 : index
    %31 = vector.load %arg9[%c0_21, %c0_22] : memref<1x128xf32, #tpu.memory_space<vmem>>, vector<1x128xf32>
    %32 = vector.broadcast %31 : vector<1x128xf32> to vector<16x128xf32>
    %33 = arith.addf %30, %32 : vector<16x128xf32>
    %34 = math.absf %33 : vector<16x128xf32>
    %cst_23 = arith.constant 0.000000e+00 : f32
    %35 = vector.broadcast %cst_23 : f32 to vector<16x128xf32>
    %36 = arith.subf %35, %34 : vector<16x128xf32>
    %37 = math.exp %36 : vector<16x128xf32>
    %cst_24 = arith.constant 1.000000e+00 : f32
    %38 = vector.broadcast %cst_24 : f32 to vector<16x128xf32>
    %39 = arith.addf %38, %37 : vector<16x128xf32>
    %40 = tpu.reciprocal %39 : vector<16x128xf32> -> vector<16x128xf32>
    %cst_25 = arith.constant 0.000000e+00 : f32
    %41 = vector.broadcast %cst_25 : f32 to vector<16x128xf32>
    %42 = arith.cmpf oge, %33, %41 : vector<16x128xf32>
    %43 = arith.mulf %37, %40 : vector<16x128xf32>
    %44 = arith.select %42, %40, %43 : vector<16x128xi1>, vector<16x128xf32>
    %c0_26 = arith.constant 0 : index
    %c0_27 = arith.constant 0 : index
    %45 = vector.load %arg10[%c0_26, %c0_27] : memref<16x128xf32, #tpu.memory_space<vmem>>, vector<16x128xf32>
    tpu.vector_store %arg10[%c0_26, %c0_27], %44 {strides = array<i32>} : memref<16x128xf32, #tpu.memory_space<vmem>>, vector<16x128xf32>,
    return
  }
  func.func @transform_0(%arg0: i32) -> (i32, i32) {
    %c0_i32 = arith.constant 0 : i32
    %c0_i32_0 = arith.constant 0 : i32
    return %arg0, %c0_i32 : i32, i32
  }
  func.func @transform_1(%arg0: i32) -> (i32, i32) {
    %c0_i32 = arith.constant 0 : i32
    %c0_i32_0 = arith.constant 0 : i32
    %c0_i32_1 = arith.constant 0 : i32
    return %c0_i32, %c0_i32_0 : i32, i32
  }
  func.func @transform_2(%arg0: i32) -> (i32, i32) {
    %c0_i32 = arith.constant 0 : i32
    %c0_i32_0 = arith.constant 0 : i32
    %c0_i32_1 = arith.constant 0 : i32
    return %c0_i32, %c0_i32_0 : i32, i32
  }
  func.func @transform_3(%arg0: i32) -> (i32, i32) {
    %c0_i32 = arith.constant 0 : i32
    %c0_i32_0 = arith.constant 0 : i32
    %c0_i32_1 = arith.constant 0 : i32
    return %c0_i32, %c0_i32_0 : i32, i32
  }
  func.func @transform_4(%arg0: i32) -> (i32, i32) {
    %c0_i32 = arith.constant 0 : i32
    %c0_i32_0 = arith.constant 0 : i32
    %c0_i32_1 = arith.constant 0 : i32
    return %c0_i32, %c0_i32_0 : i32, i32
  }
  func.func @transform_5(%arg0: i32) -> (i32, i32) {
    %c0_i32 = arith.constant 0 : i32
    %c0_i32_0 = arith.constant 0 : i32
    %c0_i32_1 = arith.constant 0 : i32
    return %c0_i32, %c0_i32_0 : i32, i32
  }
  func.func @transform_6(%arg0: i32) -> (i32, i32) {
    %c0_i32 = arith.constant 0 : i32
    %c0_i32_0 = arith.constant 0 : i32
    %c0_i32_1 = arith.constant 0 : i32
    return %c0_i32, %c0_i32_0 : i32, i32
  }
  func.func @transform_7(%arg0: i32) -> (i32, i32) {
    %c0_i32 = arith.constant 0 : i32
    %c0_i32_0 = arith.constant 0 : i32
    %c0_i32_1 = arith.constant 0 : i32
    return %c0_i32, %c0_i32_0 : i32, i32
  }
  func.func @transform_8(%arg0: i32) -> (i32, i32) {
    %c0_i32 = arith.constant 0 : i32
    %c0_i32_0 = arith.constant 0 : i32
    %c0_i32_1 = arith.constant 0 : i32
    return %c0_i32, %c0_i32_0 : i32, i32
  }
  func.func @transform_9(%arg0: i32) -> (i32, i32) {
    %c0_i32 = arith.constant 0 : i32
    %c0_i32_0 = arith.constant 0 : i32
    return %arg0, %c0_i32 : i32, i32
  }
}

</mosaic_0001>

<bundles_post_ra>
// kernel: tpu_custom_call.1
= control target key start
LH: loop header
LB: loop body
LE: loop exit
PB: predicated region body
PF: predicated region fallthrough
CT: control target
= control target key end

     0   :  { %14 = vsyncpa [#allocation3], 0  ;;  %s10760_s0 = inlined_call_operand.hbm [shape: f32[16,784], index: 0, kind: input, shape index: {}]   ;;  %s10761_s1 = inlined_call_operand.hbm [shape: bf16[784,1024], index: 1, kind: input, shape index: {}]   ;;  %s10762_s2 = inlined_call_operand.hbm [shape: f32[1,1024], index: 2, kind: input, shape index: {}]   ;;  %s10763_s3 = inlined_call_operand.hbm [shape: bf16[1024,512], index: 3, kind: input, shape index: {}]   ;;  %s10764_s4 = inlined_call_operand.hbm [shape: f32[1,512], index: 4, kind: input, shape index: {}]   ;;  %s10765_s5 = inlined_call_operand.hbm [shape: bf16[512,256], index: 5, kind: input, shape index: {}]   ;;  %s10766_s6 = inlined_call_operand.hbm [shape: f32[1,256], index: 6, kind: input, shape index: {}]   ;;  %s10767_s7 = inlined_call_operand.hbm [shape: bf16[256,128], index: 7, kind: input, shape index: {}]   ;;  %s10768_s8 = inlined_call_operand.hbm [shape: f32[1,128], index: 8, kind: input, shape index: {}]   ;;  %s10769_s9 = inlined_call_operand.hbm [shape: f32[16,128], index: 9, kind: output, shape index: {}]  }
   0x1   :  { %15 = vsyncpa [#allocation6], 0 }
   0x2   :  { %16 = vsyncpa [#allocation9], 0 }
   0x3   :  { %17 = vsyncpa [#allocation12], 0 }
   0x4   :  { %18 = vsyncpa [#allocation15], 0  ;;  %s37_s11 = sshll.u32 %s10761_s1, 4  ;;  %s38_s11 = int_to_ptr.hbm [resolvable:$true] %s37_s11 }
   0x5   :  { %19 = vsyncpa [#allocation4], 0  ;;  %s10155_s12 = smov [#allocation5]   ;;  %s61_s16 = sshll.u32 %s10763_s3, 4  ;;  %s62_s16 = int_to_ptr.hbm [resolvable:$true] %s61_s16 }
   0x6   :  { %s39_s13 = sshll.u32 %s10155_s12, 4  ;;  %s10156_s17 = smov 512   ;;  %s40_s13 = int_to_ptr.vmem [resolvable:$true] %s39_s13 }
   0x7   :  { %s10157_s18 = smov 32   ;;  %s10158_s19 = smov [#allocation8]  }
   0x8   :  { %45 = dma.hbm_to_vmem [thread:$0]  %s38_s11, 50176, %s40_s13, [#allocation6], %s10156_s17, %s10156_s17, %s10157_s18  }
   0x9   :  { %s63_s20 = sshll.u32 %s10158_s19, 4  ;;  %s10159_s21 = smov 256   ;;  %s64_s20 = int_to_ptr.vmem [resolvable:$true] %s63_s20 }
   0xa   :  { %s10160_s22 = smov 16   ;;  %s85_s24 = sshll.u32 %s10765_s5, 4  ;;  %s86_s24 = int_to_ptr.hbm [resolvable:$true] %s85_s24 }
   0xb   :  { %69 = dma.hbm_to_vmem [thread:$0]  %s62_s16, 32768, %s64_s20, [#allocation9], %s10159_s21, %s10159_s21, %s10160_s22  }
   0xc   :  { %s10161_s25 = smov [#allocation11]   ;;  %s109_s28 = sshll.u32 %s10767_s7, 4  ;;  %s110_s28 = int_to_ptr.hbm [resolvable:$true] %s109_s28 }
   0xd   :  { %s87_s26 = sshll.u32 %s10161_s25, 4  ;;  %s10162_s29 = smov 128   ;;  %s88_s26 = int_to_ptr.vmem [resolvable:$true] %s87_s26 }
   0xe   :  { %s10163_s30 = smov 8   ;;  %s10164_s10 = smov [#allocation14]  }
   0xf   :  { %93 = dma.hbm_to_vmem [thread:$0]  %s86_s24, 8192, %s88_s26, [#allocation12], %s10162_s29, %s10162_s29, %s10163_s30  }
  0x10   :  { %s111_s11 = sshll.u32 %s10164_s10, 4  ;;  %s10165_s12 = smov 64   ;;  %s112_s11 = int_to_ptr.vmem [resolvable:$true] %s111_s11 }
  0x11   :  { %s10166_s5 = smov 4   ;;  %s24_s15 = sshll.u32 %s10760_s0, 4  ;;  %s25_s15 = int_to_ptr.hbm [resolvable:$true] %s24_s15 }
  0x12   :  { %117 = dma.hbm_to_vmem [thread:$0]  %s110_s28, 2048, %s112_s11, [#allocation15], %s10165_s12, %s10165_s12, %s10166_s5  }
  0x13   :  { %s10167_s16 = smov [#allocation2]   ;;  %s51_s19 = sshll.u32 %s10762_s2, 4  ;;  %s52_s19 = int_to_ptr.hbm [resolvable:$true] %s51_s19 }
  0x14   :  { %s26_s7 = sshll.u32 %s10167_s16, 4  ;;  %s10168_s20 = smov 896   ;;  %s27_s7 = int_to_ptr.vmem [resolvable:$true] %s26_s7 }
  0x15   :  { %s10169_s21 = smov 56   ;;  %s10170_s22 = smov [#allocation7]  }
  0x16   :  { %32 = dma.hbm_to_vmem [thread:$0]  %s25_s15, 1792, %s27_s7, [#allocation3], %s10168_s20, %s10168_s20, %s10169_s21  }
  0x17   :  { %s53_s1 = sshll.u32 %s10170_s22, 4  ;;  %s75_s25 = sshll.u32 %s10764_s4, 4  ;;  %s54_s1 = int_to_ptr.vmem [resolvable:$true] %s53_s1  ;;  %s76_s25 = int_to_ptr.hbm [resolvable:$true] %s75_s25 }
  0x18   :  { %56 = dma.hbm_to_vmem [thread:$0]  %s52_s19, 128, %s54_s1, [#allocation6]  }
  0x19   :  { %s99_s27 = sshll.u32 %s10766_s6, 4  ;;  %s10171_s3 = smov [#allocation10]   ;;  %s100_s27 = int_to_ptr.hbm [resolvable:$true] %s99_s27 }
  0x1a   :  { %s77_s28 = sshll.u32 %s10171_s3, 4  ;;  %s10172_s2 = smov [#allocation13]   ;;  %s78_s28 = int_to_ptr.vmem [resolvable:$true] %s77_s28 }
  0x1b   :  { %80 = dma.hbm_to_vmem [thread:$0]  %s76_s25, 64, %s78_s28, [#allocation9]  }
  0x1c   :  { %s101_s10 = sshll.u32 %s10172_s2, 4  ;;  %s123_s5 = sshll.u32 %s10768_s8, 4  ;;  %s102_s10 = int_to_ptr.vmem [resolvable:$true] %s101_s10  ;;  %s124_s5 = int_to_ptr.hbm [resolvable:$true] %s123_s5 }
  0x1d   :  { %104 = dma.hbm_to_vmem [thread:$0]  %s100_s27, 32, %s102_s10, [#allocation12]  }
  0x1e   :  { %s10173_s4 = smov [#allocation16]  }
  0x1f   :  { %s125_s13 = sshll.u32 %s10173_s4, 4  ;;  %s126_s13 = int_to_ptr.vmem [resolvable:$true] %s125_s13 }
  0x20   :  { %128 = dma.hbm_to_vmem [thread:$0]  %s124_s5, 16, %s126_s13, [#allocation15]  }
  0x21   :  { %10143 = dma.done.wait [#allocation3], 1792  }
  0x22   :  { %10144 = vsyncadd [#allocation3], 4294965504 }
  0x23   :  { %10145 = dma.done.wait [#allocation6], 50304  }
  0x24   :  { %10146 = vsyncadd [#allocation6], 4294916992 }
  0x25   :  { %10147 = dma.done.wait [#allocation9], 32832  }
  0x26   :  { %10148 = vsyncadd [#allocation9], 4294934464 }
  0x27   :  { %10149 = dma.done.wait [#allocation12], 8224  }
  0x28   :  { %10150 = vsyncadd [#allocation12], 4294959072 }
  0x29   :  { %10151 = dma.done.wait [#allocation15], 2064  }
  0x2a   :  { %10152 = vsyncadd [#allocation15], 4294965232  ;;  %v6450_v0 = vld [vmem:[#allocation5 + $0x1c0] sm:$0xf]  ;;  %vm2557_vm0 = vcmask 130048   ;;  %s10174_s6 = smov [#allocation17]  }
  0x2b   :  { %v9204_v1 = vld [vmem:[#allocation5 + $0x1dc] sm:$0xf0]  ;;  %s6205_s8 = sshll.u32 %s10174_s6, 4  ;;  %s6207_s16 = sshll.u32 %s10769_s9, 4  ;;  %s6206_s8 = int_to_ptr.vmem [resolvable:$true] %s6205_s8  ;;  %s6208_s16 = int_to_ptr.hbm [resolvable:$true] %s6207_s16 }
  0x2c   :  { %v6706_v2 = vld [vmem:[#allocation5 + $0x3c0] sm:$0xf]  ;;  %v6451_v3 = vor.u32 %v9204_v1, %v6450_v0 }
  0x2d   :  { %v9268_v4 = vld [vmem:[#allocation5 + $0x3dc] sm:$0xf0] }
  0x2e   :  { %v6962_v5 = vld [vmem:[#allocation5 + $0x5c0] sm:$0xf]  ;;  %v6707_v7 = vor.u32 %v9268_v4, %v6706_v2  ;;  %2561 = vmatpush.bf16.msra.mxu0 %v6451_v3 }
  0x2f   :  { %v9332_v6 = vld [vmem:[#allocation5 + $0x5dc] sm:$0xf0] }
  0x30   :  { %v6963_v8 = vor.u32 %v9332_v6, %v6962_v5  ;;  %v7218_v9 = vld [vmem:[#allocation5 + $0x7c0] sm:$0xf]  ;;  %2575 = vmatpush.bf16.msra.mxu1 %v6707_v7 }
  0x31   :  { %v9396_v10 = vld [vmem:[#allocation5 + $0x7dc] sm:$0xf0] }
  0x32   :  { %v6418_v11 = vld [vmem:[#allocation5 + $0x180] sm:$0xf]  ;;  %v7219_v12 = vor.u32 %v9396_v10, %v7218_v9  ;;  %2589 = vmatpush.bf16.msra.mxu2 %v6963_v8 }
  0x33   :  { %v9196_v13 = vld [vmem:[#allocation5 + $0x19c] sm:$0xf0] }
  0x34   :  { %v6674_v14 = vld [vmem:[#allocation5 + $0x380] sm:$0xf]  ;;  %v6419_v16 = vor.u32 %v9196_v13, %v6418_v11  ;;  %2603 = vmatpush.bf16.msra.mxu3 %v7219_v12 }
  0x35   :  { %v9260_v15 = vld [vmem:[#allocation5 + $0x39c] sm:$0xf0] }
  0x36   :  { %v6675_v17 = vor.u32 %v9260_v15, %v6674_v14  ;;  %v6930_v18 = vld [vmem:[#allocation5 + $0x580] sm:$0xf]  ;;  %2562 = vmatpush.bf16.msra.mxu0 %v6419_v16 }
  0x37   :  { %v9324_v19 = vld [vmem:[#allocation5 + $0x59c] sm:$0xf0] }
  0x38   :  { %v7186_v20 = vld [vmem:[#allocation5 + $0x780] sm:$0xf]  ;;  %v6931_v21 = vor.u32 %v9324_v19, %v6930_v18  ;;  %2576 = vmatpush.bf16.msra.mxu1 %v6675_v17 }
  0x39   :  { %v9388_v22 = vld [vmem:[#allocation5 + $0x79c] sm:$0xf0] }
  0x3a   :  { %v6386_v23 = vld [vmem:[#allocation5 + $0x140] sm:$0xf]  ;;  %v7187_v25 = vor.u32 %v9388_v22, %v7186_v20  ;;  %2590 = vmatpush.bf16.msra.mxu2 %v6931_v21 }
  0x3b   :  { %v9188_v24 = vld [vmem:[#allocation5 + $0x15c] sm:$0xf0] }
  0x3c   :  { %v6642_v26 = vld [vmem:[#allocation5 + $0x340] sm:$0xf]  ;;  %v6387_v29 = vor.u32 %v9188_v24, %v6386_v23  ;;  %2604 = vmatpush.bf16.msra.mxu3 %v7187_v25 }
  0x3d   :  { %v9252_v27 = vld [vmem:[#allocation5 + $0x35c] sm:$0xf0] }
  0x3e   :  { %v6898_v28 = vld [vmem:[#allocation5 + $0x540] sm:$0xf]  ;;  %v6643_v33 = vor.u32 %v9252_v27, %v6642_v26  ;;  %2563 = vmatpush.bf16.msra.mxu0 %v6387_v29 }
  0x3f   :  { %v9316_v30 = vld [vmem:[#allocation5 + $0x55c] sm:$0xf0] }
  0x40   :  { %v7154_v31 = vld [vmem:[#allocation5 + $0x740] sm:$0xf]  ;;  %v6899_v34 = vor.u32 %v9316_v30, %v6898_v28  ;;  %2577 = vmatpush.bf16.msra.mxu1 %v6643_v33  ;;  %v6452_v33 = vld [vmem:[#allocation5 + $0x1e0] sm:$0xf0] }
  0x41   :  { %v9380_v32 = vld [vmem:[#allocation5 + $0x75c] sm:$0xf0] }
  0x42   :  { %v6354_v35 = vld [vmem:[#allocation5 + $0x100] sm:$0xf]  ;;  %v7155_v38 = vor.u32 %v9380_v32, %v7154_v31  ;;  %2591 = vmatpush.bf16.msra.mxu2 %v6899_v34  ;;  %v9200_v32 = vld [vmem:[#allocation5 + $0x1c4] sm:$0xf] }
  0x43   :  { %v9180_v36 = vld [vmem:[#allocation5 + $0x11c] sm:$0xf0] }
  0x44   :  { %v6610_v37 = vld [vmem:[#allocation5 + $0x300] sm:$0xf]  ;;  %v6355_v44 = vor.u32 %v9180_v36, %v6354_v35  ;;  %2605 = vmatpush.bf16.msra.mxu3 %v7155_v38  ;;  %v175_v36 = vld [vmem:[#allocation2 + $0x48] sm:$0xff] }
  0x45   :  { %v9244_v39 = vld [vmem:[#allocation5 + $0x31c] sm:$0xf0] }
  0x46   :  { %v6866_v40 = vld [vmem:[#allocation5 + $0x500] sm:$0xf]  ;;  %v6611_v45 = vor.u32 %v9244_v39, %v6610_v37  ;;  %2564 = vmatpush.bf16.msra.mxu0 %v6355_v44 }
  0x47   :  { %v9308_v41 = vld [vmem:[#allocation5 + $0x51c] sm:$0xf0] }
  0x48   :  { %v7122_v42 = vld [vmem:[#allocation5 + $0x700] sm:$0xf]  ;;  %v6867_v46 = vor.u32 %v9308_v41, %v6866_v40  ;;  %2578 = vmatpush.bf16.msra.mxu1 %v6611_v45  ;;  %v9264_v41 = vld [vmem:[#allocation5 + $0x3c4] sm:$0xf] }
  0x49   :  { %v9372_v43 = vld [vmem:[#allocation5 + $0x71c] sm:$0xf0] }
  0x4a   :  { %v6322_v47 = vld [vmem:[#allocation5 + $0xc0] sm:$0xf]  ;;  %v7123_v50 = vor.u32 %v9372_v43, %v7122_v42  ;;  %2592 = vmatpush.bf16.msra.mxu2 %v6867_v46  ;;  %v166_v42 = vld [vmem:[#allocation2] sm:$0xff]  ;;  %v173_v43 = vld [vmem:[#allocation2 + $0x38] sm:$0xff] }
  0x4b   :  { %v9172_v48 = vld [vmem:[#allocation5 + $0xdc] sm:$0xf0]  ;;  %v6708_v46 = vld [vmem:[#allocation5 + $0x3e0] sm:$0xf0] }
  0x4c   :  { %v6578_v49 = vld [vmem:[#allocation5 + $0x2c0] sm:$0xf]  ;;  %v6323_v56 = vor.u32 %v9172_v48, %v6322_v47  ;;  %2606 = vmatpush.bf16.msra.mxu3 %v7123_v50  ;;  %v169_v47 = vld [vmem:[#allocation2 + $0x18] sm:$0xff]  ;;  %v6455_v50 = vor.u32 %v9200_v32, %v6452_v33 }
  0x4d   :  { %v9236_v51 = vld [vmem:[#allocation5 + $0x2dc] sm:$0xf0] }
  0x4e   :  { %v6834_v52 = vld [vmem:[#allocation5 + $0x4c0] sm:$0xf]  ;;  %v6579_v57 = vor.u32 %v9236_v51, %v6578_v49  ;;  %2565 = vmatpush.bf16.msra.mxu0 %v6323_v56 }
  0x4f   :  { %v9300_v53 = vld [vmem:[#allocation5 + $0x4dc] sm:$0xf0] }
  0x50   :  { %v7090_v54 = vld [vmem:[#allocation5 + $0x6c0] sm:$0xf]  ;;  %v6835_v58 = vor.u32 %v9300_v53, %v6834_v52  ;;  %2579 = vmatpush.bf16.msra.mxu1 %v6579_v57  ;;  %v9192_v57 = vld [vmem:[#allocation5 + $0x184] sm:$0xf] }
  0x51   :  { %v9364_v55 = vld [vmem:[#allocation5 + $0x6dc] sm:$0xf0] }
  0x52   :  { %v6290_v59 = vld [vmem:[#allocation5 + $0x80] sm:$0xf]  ;;  %v7091_v62 = vor.u32 %v9364_v55, %v7090_v54  ;;  %2593 = vmatpush.bf16.msra.mxu2 %v6835_v58  ;;  %v10257_v55 = vpack.c.bf16 %v173_v43, %v166_v42  ;;  %v6420_v58 = vld [vmem:[#allocation5 + $0x1a0] sm:$0xf0] }
  0x53   :  { %v9164_v60 = vld [vmem:[#allocation5 + $0x9c] sm:$0xf0] }
  0x54   :  { %v6546_v61 = vld [vmem:[#allocation5 + $0x280] sm:$0xf]  ;;  %v6291_v4 = vor.u32 %v9164_v60, %v6290_v59  ;;  %2607 = vmatpush.bf16.msra.mxu3 %v7091_v62  ;;  %v174_v62 = vld [vmem:[#allocation2 + $0x40] sm:$0xff] }
  0x55   :  { %v9228_v63 = vld [vmem:[#allocation5 + $0x29c] sm:$0xf0] }
  0x56   :  { %v6802_v0 = vld [vmem:[#allocation5 + $0x480] sm:$0xf]  ;;  %v6547_v6 = vor.u32 %v9228_v63, %v6546_v61  ;;  %2566 = vmatpush.bf16.msra.mxu0 %v6291_v4  ;;  %v167_v61 = vld [vmem:[#allocation2 + $0x8] sm:$0xff]  ;;  %v6711_v63 = vor.u32 %v9264_v41, %v6708_v46  ;;  %v6423_v4 = vor.u32 %v9192_v57, %v6420_v58  ;;  %v6580_v41 = vld [vmem:[#allocation5 + $0x2e0] sm:$0xf0] }
  0x57   :  { %v9292_v1 = vld [vmem:[#allocation5 + $0x49c] sm:$0xf0] }
  0x58   :  { %v7058_v2 = vld [vmem:[#allocation5 + $0x680] sm:$0xf]  ;;  %v6803_v7 = vor.u32 %v9292_v1, %v6802_v0  ;;  %2580 = vmatpush.bf16.msra.mxu1 %v6547_v6  ;;  %v9256_v1 = vld [vmem:[#allocation5 + $0x384] sm:$0xf] }
  0x59   :  { %v9356_v3 = vld [vmem:[#allocation5 + $0x69c] sm:$0xf0] }
  0x5a   :  { %v6258_v5 = vld [vmem:[#allocation5 + $0x40] sm:$0xf]  ;;  %v7059_v11 = vor.u32 %v9356_v3, %v7058_v2  ;;  %2594 = vmatpush.bf16.msra.mxu2 %v6803_v7  ;;  %v6676_v2 = vld [vmem:[#allocation5 + $0x3a0] sm:$0xf0] }
  0x5b   :  { %v9156_v8 = vld [vmem:[#allocation5 + $0x5c] sm:$0xf0] }
  0x5c   :  { %v6514_v9 = vld [vmem:[#allocation5 + $0x240] sm:$0xf]  ;;  %v6259_v18 = vor.u32 %v9156_v8, %v6258_v5  ;;  %2608 = vmatpush.bf16.msra.mxu3 %v7059_v11  ;;  %v10263_v8 = vpack.c.bf16 %v174_v62, %v167_v61  ;;  %v6388_v11 = vld [vmem:[#allocation5 + $0x160] sm:$0xf0] }
  0x5d   :  { %v9220_v10 = vld [vmem:[#allocation5 + $0x25c] sm:$0xf0] }
  0x5e   :  { %v6770_v12 = vld [vmem:[#allocation5 + $0x440] sm:$0xf]  ;;  %v6515_v23 = vor.u32 %v9220_v10, %v6514_v9  ;;  %2567 = vmatpush.bf16.msra.mxu0 %v6259_v18  ;;  %v9184_v10 = vld [vmem:[#allocation5 + $0x144] sm:$0xf] }
  0x5f   :  { %v9284_v13 = vld [vmem:[#allocation5 + $0x45c] sm:$0xf0] }
  0x60   :  { %v7026_v14 = vld [vmem:[#allocation5 + $0x640] sm:$0xf]  ;;  %v6771_v24 = vor.u32 %v9284_v13, %v6770_v12  ;;  %2581 = vmatpush.bf16.msra.mxu1 %v6515_v23  ;;  %v6679_v12 = vor.u32 %v9256_v1, %v6676_v2  ;;  %v6356_v23 = vld [vmem:[#allocation5 + $0x120] sm:$0xf0] }
  0x61   :  { %v9348_v15 = vld [vmem:[#allocation5 + $0x65c] sm:$0xf0]  ;;  %v6260_v1 = vld [vmem:[#allocation5 + $0x60] sm:$0xf0] }
  0x62   :  { %v6226_v16 = vld [vmem:[#allocation5] sm:$0xf]  ;;  %v7027_v28 = vor.u32 %v9348_v15, %v7026_v14  ;;  %2595 = vmatpush.bf16.msra.mxu2 %v6771_v24  ;;  %v9248_v14 = vld [vmem:[#allocation5 + $0x344] sm:$0xf] }
  0x63   :  { %v9148_v17 = vld [vmem:[#allocation5 + $0x1c] sm:$0xf0]  ;;  %v6644_v15 = vld [vmem:[#allocation5 + $0x360] sm:$0xf0] }
  0x64   :  { %v6482_v19 = vld [vmem:[#allocation5 + $0x200] sm:$0xf]  ;;  %v6227_v35 = vor.u32 %v9148_v17, %v6226_v16  ;;  %2609 = vmatpush.bf16.msra.mxu3 %v7027_v28  ;;  %v6391_v17 = vor.u32 %v9184_v10, %v6388_v11  ;;  %v6647_v24 = vor.u32 %v9248_v14, %v6644_v15  ;;  %v9216_v2 = vld [vmem:[#allocation5 + $0x244] sm:$0xf] }
  0x65   :  { %v9212_v20 = vld [vmem:[#allocation5 + $0x21c] sm:$0xf0]  ;;  %v6228_v14 = vld [vmem:[#allocation5 + $0x20] sm:$0xf0] }
  0x66   :  { %v6738_v21 = vld [vmem:[#allocation5 + $0x400] sm:$0xf]  ;;  %v6483_v39 = vor.u32 %v9212_v20, %v6482_v19  ;;  %2568 = vmatpush.bf16.msra.mxu0 %v6227_v35  ;;  %v6324_v35 = vld [vmem:[#allocation5 + $0xe0] sm:$0xf0] }
  0x67   :  { %v9276_v22 = vld [vmem:[#allocation5 + $0x41c] sm:$0xf0]  ;;  %v9328_v15 = vld [vmem:[#allocation5 + $0x5c4] sm:$0xf] }
  0x68   :  { %v6994_v25 = vld [vmem:[#allocation5 + $0x600] sm:$0xf]  ;;  %v6739_v40 = vor.u32 %v9276_v22, %v6738_v21  ;;  %2582 = vmatpush.bf16.msra.mxu1 %v6483_v39  ;;  %v9176_v22 = vld [vmem:[#allocation5 + $0x104] sm:$0xf] }
  0x69   :  { %v9340_v26 = vld [vmem:[#allocation5 + $0x61c] sm:$0xf0]  ;;  %2569 = vmatmul.bf16.vlgmr.msra.gmra.mxu0 %v10257_v55 }
  0x6a   :  { %v7474_v27 = vld [vmem:[#allocation5 + $0x9c0] sm:$0xf]  ;;  %v6995_v44 = vor.u32 %v9340_v26, %v6994_v25  ;;  %2596 = vmatpush.bf16.msra.mxu2 %v6739_v40  ;;  %v9240_v26 = vld [vmem:[#allocation5 + $0x304] sm:$0xf] }
  0x6b   :  { %v9460_v29 = vld [vmem:[#allocation5 + $0x9dc] sm:$0xf0]  ;;  %2583 = vmatmul.bf16.vlgmr.msra.gmra.mxu1 %v10263_v8  ;;  %v9232_v40 = vld [vmem:[#allocation5 + $0x2c4] sm:$0xf] }
  0x6c   :  { %v7730_v30 = vld [vmem:[#allocation5 + $0xbc0] sm:$0xf]  ;;  %v7475_v45 = vor.u32 %v9460_v29, %v7474_v27  ;;  %2610 = vmatpush.bf16.msra.mxu3 %v6995_v44  ;;  %v6612_v27 = vld [vmem:[#allocation5 + $0x320] sm:$0xf0]  ;;  %v6359_v29 = vor.u32 %v9176_v22, %v6356_v23  ;;  %v170_v23 = vld [vmem:[#allocation2 + $0x20] sm:$0xff] }
  0x6d   :  { %v9524_v31 = vld [vmem:[#allocation5 + $0xbdc] sm:$0xf0] }
  0x6e   :  { %v168_v34 = vld [vmem:[#allocation2 + $0x10] sm:$0xff]  ;;  %v7731_v49 = vor.u32 %v9524_v31, %v7730_v30  ;;  %2617 = vmatpush.bf16.msrb.mxu0 %v7475_v45 }
  0x6f   :  { %v7762_v37 = vld [vmem:[#allocation5 + $0xc00] sm:$0xf]  ;;  %v10255_v54 = vpack.c.bf16 %v175_v36, %v168_v34  ;;  %v9168_v34 = vld [vmem:[#allocation5 + $0xc4] sm:$0xf] }
  0x70   :  { %v9532_v38 = vld [vmem:[#allocation5 + $0xc1c] sm:$0xf0]  ;;  %2631 = vmatpush.bf16.msrb.mxu1 %v7731_v49  ;;  %2659 = vmatpush.bf16.msrb.mxu3 %v6455_v50  ;;  %v6327_v43 = vor.u32 %v9168_v34, %v6324_v35  ;;  %v6292_v49 = vld [vmem:[#allocation5 + $0xa0] sm:$0xf0] }
  0x71   :  { %v176_v48 = vld [vmem:[#allocation2 + $0x50] sm:$0xff]  ;;  %v7763_v59 = vor.u32 %v9532_v38, %v7762_v37  ;;  %2597 = vmatmul.bf16.vlgmr.msra.gmra.mxu2 %v10255_v54  ;;  %v179_v37 = vld [vmem:[#allocation2 + $0x68] sm:$0xff]  ;;  %v6615_v38 = vor.u32 %v9240_v26, %v6612_v27 }
  0x72   :  { %v7442_v51 = vld [vmem:[#allocation5 + $0x980] sm:$0xf]  ;;  %v10259_v60 = vpack.c.bf16 %v176_v48, %v169_v47  ;;  %v9160_v48 = vld [vmem:[#allocation5 + $0x84] sm:$0xf] }
  0x73   :  { %v9452_v52 = vld [vmem:[#allocation5 + $0x99c] sm:$0xf0]  ;;  %2652 = vmatpush.bf16.msrb.mxu2 %v7763_v59  ;;  %v6295_v58 = vor.u32 %v9160_v48, %v6292_v49  ;;  %v7732_v34 = vld [vmem:[#allocation5 + $0xbe0] sm:$0xf0] }
  0x74   :  { %v7698_v53 = vld [vmem:[#allocation5 + $0xb80] sm:$0xf]  ;;  %v7443_v0 = vor.u32 %v9452_v52, %v7442_v51  ;;  %2611 = vmatmul.bf16.vlgmr.msra.gmra.mxu3 %v10259_v60  ;;  %v6583_v51 = vor.u32 %v9232_v40, %v6580_v41  ;;  %v9320_v35 = vld [vmem:[#allocation5 + $0x584] sm:$0xf] }
  0x75   :  { %v9516_v56 = vld [vmem:[#allocation5 + $0xb9c] sm:$0xf0]  ;;  %2660 = vmatpush.bf16.msrb.mxu3 %v6423_v4  ;;  %v7188_v40 = vld [vmem:[#allocation5 + $0x7a0] sm:$0xf0] }
  0x76   :  { %v7699_v3 = vor.u32 %v9516_v56, %v7698_v53  ;;  %v7410_v5 = vld [vmem:[#allocation5 + $0x940] sm:$0xf]  ;;  %2618 = vmatpush.bf16.msrb.mxu0 %v7443_v0  ;;  %v9224_v53 = vld [vmem:[#allocation5 + $0x284] sm:$0xf] }
  0x77   :  { %v9444_v6 = vld [vmem:[#allocation5 + $0x95c] sm:$0xf0]  ;;  %2673 = vmatpush.bf16.msra.mxu2 %v6711_v63  ;;  %v6548_v56 = vld [vmem:[#allocation5 + $0x2a0] sm:$0xf0] }
  0x78   :  { %v7666_v7 = vld [vmem:[#allocation5 + $0xb40] sm:$0xf]  ;;  %v7411_v13 = vor.u32 %v9444_v6, %v7410_v5  ;;  %2632 = vmatpush.bf16.msrb.mxu1 %v7699_v3  ;;  %v9152_v0 = vld [vmem:[#allocation5 + $0x44] sm:$0xf]  ;;  %v6551_v4 = vor.u32 %v9224_v53, %v6548_v56 }
  0x79   :  { %v9508_v9 = vld [vmem:[#allocation5 + $0xb5c] sm:$0xf0]  ;;  %2661 = vmatpush.bf16.msrb.mxu3 %v6391_v17  ;;  %v6516_v3 = vld [vmem:[#allocation5 + $0x260] sm:$0xf0]  ;;  %v6263_v11 = vor.u32 %v9152_v0, %v6260_v1 }
  0x7a   :  { %v7667_v16 = vor.u32 %v9508_v9, %v7666_v7  ;;  %v7378_v18 = vld [vmem:[#allocation5 + $0x900] sm:$0xf]  ;;  %2619 = vmatpush.bf16.msrb.mxu0 %v7411_v13  ;;  %v9144_v13 = vld [vmem:[#allocation5 + $0x4] sm:$0xf] }
  0x7b   :  { %v9436_v19 = vld [vmem:[#allocation5 + $0x91c] sm:$0xf0]  ;;  %2674 = vmatpush.bf16.msra.mxu2 %v6679_v12  ;;  %v9392_v17 = vld [vmem:[#allocation5 + $0x7c4] sm:$0xf]  ;;  %v6231_v27 = vor.u32 %v9144_v13, %v6228_v14 }
  0x7c   :  { %v7634_v20 = vld [vmem:[#allocation5 + $0xb00] sm:$0xf]  ;;  %v7379_v25 = vor.u32 %v9436_v19, %v7378_v18  ;;  %2633 = vmatpush.bf16.msrb.mxu1 %v7667_v16  ;;  %v6964_v16 = vld [vmem:[#allocation5 + $0x5e0] sm:$0xf0] }
  0x7d   :  { %v9500_v21 = vld [vmem:[#allocation5 + $0xb1c] sm:$0xf0]  ;;  %2662 = vmatpush.bf16.msrb.mxu3 %v6359_v29  ;;  %v7220_v18 = vld [vmem:[#allocation5 + $0x7e0] sm:$0xf0]  ;;  %v171_v29 = vld [vmem:[#allocation2 + $0x28] sm:$0xff] }
  0x7e   :  { %v7635_v28 = vor.u32 %v9500_v21, %v7634_v20  ;;  %v7346_v30 = vld [vmem:[#allocation5 + $0x8c0] sm:$0xf]  ;;  %2620 = vmatpush.bf16.msrb.mxu0 %v7379_v25  ;;  %v9456_v19 = vld [vmem:[#allocation5 + $0x9c4] sm:$0xf]  ;;  %v6519_v21 = vor.u32 %v9216_v2, %v6516_v3 }
  0x7f   :  { %v9428_v31 = vld [vmem:[#allocation5 + $0x8dc] sm:$0xf0]  ;;  %2675 = vmatpush.bf16.msra.mxu2 %v6647_v24  ;;  %v7476_v20 = vld [vmem:[#allocation5 + $0x9e0] sm:$0xf0]  ;;  %v177_v24 = vld [vmem:[#allocation2 + $0x58] sm:$0xff] }
  0x80   :  { %v7602_v32 = vld [vmem:[#allocation5 + $0xac0] sm:$0xf]  ;;  %v7347_v39 = vor.u32 %v9428_v31, %v7346_v30  ;;  %2634 = vmatpush.bf16.msrb.mxu1 %v7635_v28  ;;  %v9208_v25 = vld [vmem:[#allocation5 + $0x204] sm:$0xf]  ;;  %v178_v30 = vld [vmem:[#allocation2 + $0x60] sm:$0xff]  ;;  %v6967_v31 = vor.u32 %v9328_v15, %v6964_v16 }
  0x81   :  { %v9492_v33 = vld [vmem:[#allocation5 + $0xadc] sm:$0xf0]  ;;  %2663 = vmatpush.bf16.msrb.mxu3 %v6327_v43  ;;  %v6484_v28 = vld [vmem:[#allocation5 + $0x220] sm:$0xf0] }
  0x82   :  { %v172_v36 = vld [vmem:[#allocation2 + $0x30] sm:$0xff]  ;;  %v7603_v42 = vor.u32 %v9492_v33, %v7602_v32  ;;  %2621 = vmatpush.bf16.msrb.mxu0 %v7347_v39  ;;  %v7223_v32 = vor.u32 %v9392_v17, %v7220_v18  ;;  %v6487_v41 = vor.u32 %v9208_v25, %v6484_v28 }
  0x83   :  { %v7314_v44 = vld [vmem:[#allocation5 + $0x880] sm:$0xf]  ;;  %v10267_v50 = vpack.c.bf16 %v179_v37, %v172_v36  ;;  %2676 = vmatpush.bf16.msra.mxu2 %v6615_v38  ;;  %v9520_v33 = vld [vmem:[#allocation5 + $0xbc4] sm:$0xf]  ;;  %v7479_v36 = vor.u32 %v9456_v19, %v7476_v20  ;;  %v10271_v37 = vpack.c.bf16 %v177_v24, %v170_v23 }
  0x84   :  { %v9420_v45 = vld [vmem:[#allocation5 + $0x89c] sm:$0xf0]  ;;  %2635 = vmatpush.bf16.msrb.mxu1 %v7603_v42  ;;  %v6932_v38 = vld [vmem:[#allocation5 + $0x5a0] sm:$0xf0]  ;;  %v10273_v42 = vpack.c.bf16 %v178_v30, %v171_v29 }
  0x85   :  { %v7570_v46 = vld [vmem:[#allocation5 + $0xa80] sm:$0xf]  ;;  %10776 = vst [vmem:[#allocation24_spill] sm:$0xff] %v10267_v50  ;;  %v7315_v52 = vor.u32 %v9420_v45, %v7314_v44  ;;  %7792 = vmatmul.msk.bf16.vlgmr.msrb.gmra.mxu2 %vm2557_vm0, %v10267_v50  ;;  %2664 = vmatpush.bf16.msrb.mxu3 %v6295_v58  ;;  %v9384_v39 = vld [vmem:[#allocation5 + $0x784] sm:$0xf]  ;;  %v7735_v45 = vor.u32 %v9520_v33, %v7732_v34 }
  0x86   :  { %v9484_v47 = vld [vmem:[#allocation5 + $0xa9c] sm:$0xf0]  ;;  %v9448_v43 = vld [vmem:[#allocation5 + $0x984] sm:$0xf] }
  0x87   :  { %v7571_v57 = vor.u32 %v9484_v47, %v7570_v46  ;;  %v7282_v59 = vld [vmem:[#allocation5 + $0x840] sm:$0xf]  ;;  %2677 = vmatpush.bf16.msra.mxu2 %v6583_v51  ;;  %2622 = vmatpush.bf16.msrb.mxu0 %v7315_v52  ;;  %v7444_v44 = vld [vmem:[#allocation5 + $0x9a0] sm:$0xf0]  ;;  %v6935_v46 = vor.u32 %v9320_v35, %v6932_v38  ;;  %v7191_v47 = vor.u32 %v9384_v39, %v7188_v40 }
  0x88   :  { %v9412_v61 = vld [vmem:[#allocation5 + $0x85c] sm:$0xf0]  ;;  %v9512_v48 = vld [vmem:[#allocation5 + $0xb84] sm:$0xf]  ;;  %v7447_v52 = vor.u32 %v9448_v43, %v7444_v44 }
  0x89   :  { %v7538_v62 = vld [vmem:[#allocation5 + $0xa40] sm:$0xf]  ;;  %v7283_v5 = vor.u32 %v9412_v61, %v7282_v59  ;;  %2636 = vmatpush.bf16.msrb.mxu1 %v7571_v57  ;;  %2665 = vmatpush.bf16.msrb.mxu3 %v6263_v11  ;;  %v7700_v49 = vld [vmem:[#allocation5 + $0xba0] sm:$0xf0] }
  0x8a   :  { %v9476_v63 = vld [vmem:[#allocation5 + $0xa5c] sm:$0xf0]  ;;  %v9312_v51 = vld [vmem:[#allocation5 + $0x544] sm:$0xf]  ;;  %v7703_v61 = vor.u32 %v9512_v48, %v7700_v49 }
  0x8b   :  { %v7250_v6 = vld [vmem:[#allocation5 + $0x800] sm:$0xf]  ;;  %v7539_v10 = vor.u32 %v9476_v63, %v7538_v62  ;;  %2678 = vmatpush.bf16.msra.mxu2 %v6551_v4  ;;  %2623 = vmatpush.bf16.msrb.mxu0 %v7283_v5  ;;  %v6900_v53 = vld [vmem:[#allocation5 + $0x560] sm:$0xf0] }
  0x8c   :  { %v9404_v7 = vld [vmem:[#allocation5 + $0x81c] sm:$0xf0]  ;;  %v9376_v56 = vld [vmem:[#allocation5 + $0x744] sm:$0xf]  ;;  %v6903_v62 = vor.u32 %v9312_v51, %v6900_v53 }
  0x8d   :  { %v7506_v9 = vld [vmem:[#allocation5 + $0xa00] sm:$0xf]  ;;  %v7251_v22 = vor.u32 %v9404_v7, %v7250_v6  ;;  %2637 = vmatpush.bf16.msrb.mxu1 %v7539_v10  ;;  %2666 = vmatpush.bf16.msrb.mxu3 %v6231_v27  ;;  %v7156_v57 = vld [vmem:[#allocation5 + $0x760] sm:$0xf0] }
  0x8e   :  { %v9468_v12 = vld [vmem:[#allocation5 + $0xa1c] sm:$0xf0]  ;;  %v9440_v58 = vld [vmem:[#allocation5 + $0x944] sm:$0xf]  ;;  %v7159_v63 = vor.u32 %v9376_v56, %v7156_v57 }
  0x8f   :  { %v7507_v26 = vor.u32 %v9468_v12, %v7506_v9  ;;  %2679 = vmatpush.bf16.msra.mxu2 %v6519_v21  ;;  %2624 = vmatpush.bf16.msrb.mxu0 %v7251_v22  ;;  %v7412_v59 = vld [vmem:[#allocation5 + $0x960] sm:$0xf0] }
  0x90   :  { %2667 = vmatmul.bf16.vlgmr.msrb.gmra.mxu3 %v10257_v55  ;;  %v9504_v0 = vld [vmem:[#allocation5 + $0xb44] sm:$0xf]  ;;  %v7415_v3 = vor.u32 %v9440_v58, %v7412_v59 }
  0x91   :  { %2638 = vmatpush.bf16.msrb.mxu1 %v7507_v26  ;;  %2715 = vmatpush.bf16.msra.mxu3 %v7479_v36  ;;  %v7668_v1 = vld [vmem:[#allocation5 + $0xb60] sm:$0xf0] }
  0x92   :  { %2625 = vmatmul.bf16.vlgmr.msrb.gmra.mxu0 %v10271_v37  ;;  %v9304_v2 = vld [vmem:[#allocation5 + $0x504] sm:$0xf]  ;;  %v7671_v10 = vor.u32 %v9504_v0, %v7668_v1  ;;  %v6458_v0 = vld [vmem:[#allocation5 + $0x1c8] sm:$0xf] }
  0x93   :  { %2687 = vmatpush.bf16.msra.mxu0 %v6967_v31  ;;  %2680 = vmatpush.bf16.msra.mxu2 %v6487_v41  ;;  %v6868_v4 = vld [vmem:[#allocation5 + $0x520] sm:$0xf0]  ;;  %v9205_v1 = vld [vmem:[#allocation5 + $0x1e4] sm:$0xf0] }
  0x94   :  { %2639 = vmatmul.bf16.vlgmr.msrb.gmra.mxu1 %v10273_v42  ;;  %v9368_v5 = vld [vmem:[#allocation5 + $0x704] sm:$0xf]  ;;  %v6871_v11 = vor.u32 %v9304_v2, %v6868_v4  ;;  %v6714_v2 = vld [vmem:[#allocation5 + $0x3c8] sm:$0xf] }
  0x95   :  { %2701 = vmatpush.bf16.msra.mxu1 %v7223_v32  ;;  %2716 = vmatpush.bf16.msra.mxu3 %v7447_v52  ;;  %v7124_v6 = vld [vmem:[#allocation5 + $0x720] sm:$0xf0]  ;;  %v9269_v4 = vld [vmem:[#allocation5 + $0x3e4] sm:$0xf0] }
  0x96   :  { %2681 = vmatmul.bf16.vlgmr.msra.gmra.mxu2 %v10263_v8  ;;  %v9432_v7 = vld [vmem:[#allocation5 + $0x904] sm:$0xf]  ;;  %v7127_v12 = vor.u32 %v9368_v5, %v7124_v6 }
  0x97   :  { %2729 = vmatpush.bf16.msrb.mxu2 %v7735_v45  ;;  %2688 = vmatpush.bf16.msra.mxu0 %v6935_v46  ;;  %v7380_v9 = vld [vmem:[#allocation5 + $0x920] sm:$0xf0] }
  0x98   :  { %v9496_v13 = vld [vmem:[#allocation5 + $0xb04] sm:$0xf]  ;;  %v7383_v16 = vor.u32 %v9432_v7, %v7380_v9 }
  0x99   :  { %2702 = vmatpush.bf16.msra.mxu1 %v7191_v47  ;;  %v7636_v14 = vld [vmem:[#allocation5 + $0xb20] sm:$0xf0]  ;;  %2717 = vmatpush.bf16.msra.mxu3 %v7415_v3 }
  0x9a   :  { %v9296_v15 = vld [vmem:[#allocation5 + $0x4c4] sm:$0xf]  ;;  %v7639_v22 = vor.u32 %v9496_v13, %v7636_v14  ;;  %v6459_v13 = vor.u32 %v9205_v1, %v6458_v0  ;;  %v6970_v14 = vld [vmem:[#allocation5 + $0x5c8] sm:$0xf] }
  0x9b   :  { %2730 = vmatpush.bf16.msrb.mxu2 %v7703_v61  ;;  %2689 = vmatpush.bf16.msra.mxu0 %v6903_v62  ;;  %v6836_v17 = vld [vmem:[#allocation5 + $0x4e0] sm:$0xf0]  ;;  %v9173_v0 = vld [vmem:[#allocation5 + $0xe4] sm:$0xf0] }
  0x9c   :  { %v9360_v18 = vld [vmem:[#allocation5 + $0x6c4] sm:$0xf]  ;;  %v6839_v23 = vor.u32 %v9296_v15, %v6836_v17  ;;  %v9333_v15 = vld [vmem:[#allocation5 + $0x5e4] sm:$0xf0]  ;;  %v6715_v17 = vor.u32 %v9269_v4, %v6714_v2 }
  0x9d   :  { %2703 = vmatpush.bf16.msra.mxu1 %v7159_v63  ;;  %v7092_v19 = vld [vmem:[#allocation5 + $0x6e0] sm:$0xf0]  ;;  %2718 = vmatpush.bf16.msra.mxu3 %v7383_v16  ;;  %v7226_v16 = vld [vmem:[#allocation5 + $0x7c8] sm:$0xf] }
  0x9e   :  { %v9424_v20 = vld [vmem:[#allocation5 + $0x8c4] sm:$0xf]  ;;  %v7095_v24 = vor.u32 %v9360_v18, %v7092_v19  ;;  %v9397_v19 = vld [vmem:[#allocation5 + $0x7e4] sm:$0xf0] }
  0x9f   :  { %v7348_v21 = vld [vmem:[#allocation5 + $0x8e0] sm:$0xf0]  ;;  %2731 = vmatpush.bf16.msrb.mxu2 %v7671_v10  ;;  %2690 = vmatpush.bf16.msra.mxu0 %v6871_v11  ;;  %v6586_v1 = vld [vmem:[#allocation5 + $0x2c8] sm:$0xf] }
  0xa0   :  { %v9488_v25 = vld [vmem:[#allocation5 + $0xac4] sm:$0xf]  ;;  %v7351_v28 = vor.u32 %v9424_v20, %v7348_v21  ;;  %v6426_v20 = vld [vmem:[#allocation5 + $0x188] sm:$0xf] }
  0xa1   :  { %2704 = vmatpush.bf16.msra.mxu1 %v7127_v12  ;;  %v7604_v26 = vld [vmem:[#allocation5 + $0xae0] sm:$0xf0]  ;;  %v9197_v21 = vld [vmem:[#allocation5 + $0x1a4] sm:$0xf0] }
  0xa2   :  { %v9288_v27 = vld [vmem:[#allocation5 + $0x484] sm:$0xf]  ;;  %v7607_v34 = vor.u32 %v9488_v25, %v7604_v26  ;;  %2719 = vmatpush.bf16.msra.mxu3 %v7351_v28  ;;  %v6971_v25 = vor.u32 %v9333_v15, %v6970_v14  ;;  %v7227_v26 = vor.u32 %v9397_v19, %v7226_v16  ;;  %v6938_v28 = vld [vmem:[#allocation5 + $0x588] sm:$0xf] }
  0xa3   :  { %v6804_v29 = vld [vmem:[#allocation5 + $0x4a0] sm:$0xf0]  ;;  %2732 = vmatpush.bf16.msrb.mxu2 %v7639_v22  ;;  %2691 = vmatpush.bf16.msra.mxu0 %v6839_v23  ;;  %v6682_v23 = vld [vmem:[#allocation5 + $0x388] sm:$0xf] }
  0xa4   :  { %v9352_v30 = vld [vmem:[#allocation5 + $0x684] sm:$0xf]  ;;  %v6807_v35 = vor.u32 %v9288_v27, %v6804_v29  ;;  %v6427_v27 = vor.u32 %v9197_v21, %v6426_v20  ;;  %v9325_v29 = vld [vmem:[#allocation5 + $0x5a4] sm:$0xf0] }
  0xa5   :  { %v7060_v31 = vld [vmem:[#allocation5 + $0x6a0] sm:$0xf0]  ;;  %2705 = vmatpush.bf16.msra.mxu1 %v7095_v24  ;;  %v9261_v24 = vld [vmem:[#allocation5 + $0x3a4] sm:$0xf0] }
  0xa6   :  { %v9416_v32 = vld [vmem:[#allocation5 + $0x884] sm:$0xf]  ;;  %v7063_v36 = vor.u32 %v9352_v30, %v7060_v31  ;;  %v7194_v30 = vld [vmem:[#allocation5 + $0x788] sm:$0xf]  ;;  %v6683_v31 = vor.u32 %v9261_v24, %v6682_v23 }
  0xa7   :  { %v7316_v33 = vld [vmem:[#allocation5 + $0x8a0] sm:$0xf0]  ;;  %2733 = vmatpush.bf16.msrb.mxu2 %v7607_v34  ;;  %2692 = vmatpush.bf16.msra.mxu0 %v6807_v35  ;;  %v9189_v34 = vld [vmem:[#allocation5 + $0x164] sm:$0xf0] }
  0xa8   :  { %v9480_v38 = vld [vmem:[#allocation5 + $0xa84] sm:$0xf]  ;;  %v7319_v41 = vor.u32 %v9416_v32, %v7316_v33  ;;  %v9389_v32 = vld [vmem:[#allocation5 + $0x7a4] sm:$0xf0] }
  0xa9   :  { %v7572_v39 = vld [vmem:[#allocation5 + $0xaa0] sm:$0xf0]  ;;  %2706 = vmatpush.bf16.msra.mxu1 %v7063_v36  ;;  %v6394_v33 = vld [vmem:[#allocation5 + $0x148] sm:$0xf] }
  0xaa   :  { %v9280_v40 = vld [vmem:[#allocation5 + $0x444] sm:$0xf]  ;;  %v7575_v48 = vor.u32 %v9480_v38, %v7572_v39  ;;  %2720 = vmatpush.bf16.msra.mxu3 %v7319_v41  ;;  %v6650_v35 = vld [vmem:[#allocation5 + $0x348] sm:$0xf]  ;;  %v6939_v38 = vor.u32 %v9325_v29, %v6938_v28  ;;  %v7195_v39 = vor.u32 %v9389_v32, %v7194_v30 }
  0xab   :  { %v6772_v43 = vld [vmem:[#allocation5 + $0x460] sm:$0xf0]  ;;  %v9253_v36 = vld [vmem:[#allocation5 + $0x364] sm:$0xf0] }
  0xac   :  { %v9344_v44 = vld [vmem:[#allocation5 + $0x644] sm:$0xf]  ;;  %v6775_v52 = vor.u32 %v9280_v40, %v6772_v43  ;;  %2734 = vmatpush.bf16.msrb.mxu2 %v7575_v48  ;;  %v6395_v40 = vor.u32 %v9189_v34, %v6394_v33  ;;  %v6906_v41 = vld [vmem:[#allocation5 + $0x548] sm:$0xf] }
  0xad   :  { %v7028_v45 = vld [vmem:[#allocation5 + $0x660] sm:$0xf0]  ;;  %v9317_v43 = vld [vmem:[#allocation5 + $0x564] sm:$0xf0] }
  0xae   :  { %v9408_v46 = vld [vmem:[#allocation5 + $0x844] sm:$0xf]  ;;  %v7031_v53 = vor.u32 %v9344_v44, %v7028_v45  ;;  %2693 = vmatpush.bf16.msra.mxu0 %v6775_v52  ;;  %v7162_v44 = vld [vmem:[#allocation5 + $0x748] sm:$0xf]  ;;  %v6651_v45 = vor.u32 %v9253_v36, %v6650_v35  ;;  %v6907_v52 = vor.u32 %v9317_v43, %v6906_v41 }
  0xaf   :  { %v7284_v47 = vld [vmem:[#allocation5 + $0x860] sm:$0xf0]  ;;  %v9181_v48 = vld [vmem:[#allocation5 + $0x124] sm:$0xf0] }
  0xb0   :  { %v9472_v49 = vld [vmem:[#allocation5 + $0xa44] sm:$0xf]  ;;  %v7287_v59 = vor.u32 %v9408_v46, %v7284_v47  ;;  %2707 = vmatpush.bf16.msra.mxu1 %v7031_v53  ;;  %v9381_v46 = vld [vmem:[#allocation5 + $0x764] sm:$0xf0] }
  0xb1   :  { %v7540_v51 = vld [vmem:[#allocation5 + $0xa60] sm:$0xf0]  ;;  %v6362_v47 = vld [vmem:[#allocation5 + $0x108] sm:$0xf] }
  0xb2   :  { %v9272_v56 = vld [vmem:[#allocation5 + $0x404] sm:$0xf]  ;;  %v7543_v3 = vor.u32 %v9472_v49, %v7540_v51  ;;  %2721 = vmatpush.bf16.msra.mxu3 %v7287_v59  ;;  %v6618_v49 = vld [vmem:[#allocation5 + $0x308] sm:$0xf] }
  0xb3   :  { %v6740_v57 = vld [vmem:[#allocation5 + $0x420] sm:$0xf0]  ;;  %v9245_v51 = vld [vmem:[#allocation5 + $0x324] sm:$0xf0] }
  0xb4   :  { %v9336_v58 = vld [vmem:[#allocation5 + $0x604] sm:$0xf]  ;;  %v6743_v7 = vor.u32 %v9272_v56, %v6740_v57  ;;  %2735 = vmatpush.bf16.msrb.mxu2 %v7543_v3  ;;  %v6874_v53 = vld [vmem:[#allocation5 + $0x508] sm:$0xf]  ;;  %v7163_v56 = vor.u32 %v9381_v46, %v7162_v44  ;;  %v6363_v57 = vor.u32 %v9181_v48, %v6362_v47 }
  0xb5   :  { %v6996_v61 = vld [vmem:[#allocation5 + $0x620] sm:$0xf0]  ;;  %v7130_v59 = vld [vmem:[#allocation5 + $0x708] sm:$0xf] }
  0xb6   :  { %v9400_v62 = vld [vmem:[#allocation5 + $0x804] sm:$0xf]  ;;  %v6999_v9 = vor.u32 %v9336_v58, %v6996_v61  ;;  %2694 = vmatpush.bf16.msra.mxu0 %v6743_v7  ;;  %v9309_v58 = vld [vmem:[#allocation5 + $0x524] sm:$0xf0]  ;;  %v6619_v61 = vor.u32 %v9245_v51, %v6618_v49 }
  0xb7   :  { %v7252_v63 = vld [vmem:[#allocation5 + $0x820] sm:$0xf0]  ;;  %v9237_v2 = vld [vmem:[#allocation5 + $0x2e4] sm:$0xf0]  ;;  %v6875_v3 = vor.u32 %v9309_v58, %v6874_v53  ;;  %v9201_v58 = vld [vmem:[#allocation5 + $0x1cc] sm:$0xf] }
  0xb8   :  { %v9528_v5 = vld [vmem:[#allocation5 + $0xc04] sm:$0xf]  ;;  %v7255_v12 = vor.u32 %v9400_v62, %v7252_v63  ;;  %2708 = vmatpush.bf16.msra.mxu1 %v6999_v9  ;;  %v9373_v62 = vld [vmem:[#allocation5 + $0x724] sm:$0xf0] }
  0xb9   :  { %v7764_v6 = vld [vmem:[#allocation5 + $0xc20] sm:$0xf0]  ;;  %2695 = vmatmul.bf16.vlgmr.msra.gmra.mxu0 %v10255_v54  ;;  %v6330_v63 = vld [vmem:[#allocation5 + $0xc8] sm:$0xf]  ;;  %v7131_v4 = vor.u32 %v9373_v62, %v7130_v59  ;;  %v6460_v59 = vld [vmem:[#allocation5 + $0x1e8] sm:$0xf0] }
  0xba   :  { %v9464_v10 = vld [vmem:[#allocation5 + $0xa04] sm:$0xf]  ;;  %v7767_v18 = vor.u32 %v9528_v5, %v7764_v6  ;;  %2722 = vmatpush.bf16.msra.mxu3 %v7255_v12  ;;  %v6331_v5 = vor.u32 %v9173_v0, %v6330_v63  ;;  %v6842_v6 = vld [vmem:[#allocation5 + $0x4c8] sm:$0xf] }
  0xbb   :  { %v7508_v11 = vld [vmem:[#allocation5 + $0xa20] sm:$0xf0]  ;;  %2709 = vmatmul.bf16.vlgmr.msra.gmra.mxu1 %v10259_v60  ;;  %v9301_v7 = vld [vmem:[#allocation5 + $0x4e4] sm:$0xf0] }
  0xbc   :  { %v7511_v22 = vor.u32 %v9464_v10, %v7508_v11  ;;  %2757 = vmatpush.bf16.msrb.mxu1 %v6459_v13  ;;  %2750 = vmatpush.bf16.msrb.mxu0 %v7767_v18  ;;  %v7098_v9 = vld [vmem:[#allocation5 + $0x6c8] sm:$0xf]  ;;  %v6587_v10 = vor.u32 %v9237_v2, %v6586_v1  ;;  %v6843_v16 = vor.u32 %v9301_v7, %v6842_v6 }
  0xbd   :  { %2723 = vmatmul.bf16.vlgmr.msra.gmra.mxu3 %v10271_v37  ;;  %v9365_v11 = vld [vmem:[#allocation5 + $0x6e4] sm:$0xf0]  ;;  %v6463_v6 = vor.u32 %v9201_v58, %v6460_v59 }
  0xbe   :  { %2771 = vmatpush.bf16.msrb.mxu3 %v6715_v17  ;;  %2736 = vmatpush.bf16.msrb.mxu2 %v7511_v22  ;;  %v6298_v12 = vld [vmem:[#allocation5 + $0x88] sm:$0xf]  ;;  %v7099_v17 = vor.u32 %v9365_v11, %v7098_v9  ;;  %v9265_v9 = vld [vmem:[#allocation5 + $0x3cc] sm:$0xf] }
  0xbf   :  { %v9165_v13 = vld [vmem:[#allocation5 + $0xa4] sm:$0xf0]  ;;  %v9193_v11 = vld [vmem:[#allocation5 + $0x18c] sm:$0xf] }
  0xc0   :  { %2785 = vmatpush.bf16.msra.mxu0 %v6971_v25  ;;  %2758 = vmatpush.bf16.msrb.mxu1 %v6427_v27  ;;  %v6554_v14 = vld [vmem:[#allocation5 + $0x288] sm:$0xf]  ;;  %v6299_v18 = vor.u32 %v9165_v13, %v6298_v12 }
  0xc1   :  { %2737 = vmatmul.bf16.vlgmr.msrb.gmra.mxu2 %v10273_v42  ;;  %v9229_v15 = vld [vmem:[#allocation5 + $0x2a4] sm:$0xf0] }
  0xc2   :  { %2799 = vmatpush.bf16.msra.mxu2 %v7227_v26  ;;  %2772 = vmatpush.bf16.msrb.mxu3 %v6683_v31  ;;  %v6810_v19 = vld [vmem:[#allocation5 + $0x488] sm:$0xf]  ;;  %v6555_v22 = vor.u32 %v9229_v15, %v6554_v14  ;;  %v6428_v14 = vld [vmem:[#allocation5 + $0x1a8] sm:$0xf0] }
  0xc3   :  { %v9293_v20 = vld [vmem:[#allocation5 + $0x4a4] sm:$0xf0] }
  0xc4   :  { %2786 = vmatpush.bf16.msra.mxu0 %v6939_v38  ;;  %2759 = vmatpush.bf16.msrb.mxu1 %v6395_v40  ;;  %v7066_v21 = vld [vmem:[#allocation5 + $0x688] sm:$0xf]  ;;  %v6811_v28 = vor.u32 %v9293_v20, %v6810_v19  ;;  %v6431_v20 = vor.u32 %v9193_v11, %v6428_v14  ;;  %v9225_v11 = vld [vmem:[#allocation5 + $0x28c] sm:$0xf] }
  0xc5   :  { %v9357_v23 = vld [vmem:[#allocation5 + $0x6a4] sm:$0xf0]  ;;  %v6556_v14 = vld [vmem:[#allocation5 + $0x2a8] sm:$0xf0] }
  0xc6   :  { %2800 = vmatpush.bf16.msra.mxu2 %v7195_v39  ;;  %2773 = vmatpush.bf16.msrb.mxu3 %v6651_v45  ;;  %v6266_v24 = vld [vmem:[#allocation5 + $0x48] sm:$0xf]  ;;  %v7067_v30 = vor.u32 %v9357_v23, %v7066_v21  ;;  %v6684_v23 = vld [vmem:[#allocation5 + $0x3a8] sm:$0xf0] }
  0xc7   :  { %v9157_v25 = vld [vmem:[#allocation5 + $0x64] sm:$0xf0] }
  0xc8   :  { %2787 = vmatpush.bf16.msra.mxu0 %v6907_v52  ;;  %2760 = vmatpush.bf16.msrb.mxu1 %v6363_v57  ;;  %v6522_v26 = vld [vmem:[#allocation5 + $0x248] sm:$0xf]  ;;  %v6267_v31 = vor.u32 %v9157_v25, %v6266_v24  ;;  %v9185_v24 = vld [vmem:[#allocation5 + $0x14c] sm:$0xf] }
  0xc9   :  { %7793 = vmatmul.msk.bf16.vlgmr.msrb.gmra.mxu0 %vm2557_vm0, %v10267_v50  ;;  %v9221_v27 = vld [vmem:[#allocation5 + $0x264] sm:$0xf0] }
  0xca   :  { %2801 = vmatpush.bf16.msra.mxu2 %v7163_v56  ;;  %2774 = vmatpush.bf16.msrb.mxu3 %v6619_v61  ;;  %v6778_v29 = vld [vmem:[#allocation5 + $0x448] sm:$0xf]  ;;  %v6523_v35 = vor.u32 %v9221_v27, %v6522_v26  ;;  %v6396_v26 = vld [vmem:[#allocation5 + $0x168] sm:$0xf0] }
  0xcb   :  { %v9285_v32 = vld [vmem:[#allocation5 + $0x464] sm:$0xf0] }
  0xcc   :  { %2788 = vmatpush.bf16.msra.mxu0 %v6875_v3  ;;  %2761 = vmatpush.bf16.msrb.mxu1 %v6331_v5  ;;  %v7034_v33 = vld [vmem:[#allocation5 + $0x648] sm:$0xf]  ;;  %v6779_v44 = vor.u32 %v9285_v32, %v6778_v29  ;;  %v6399_v32 = vor.u32 %v9185_v24, %v6396_v26  ;;  %v6559_v24 = vor.u32 %v9225_v11, %v6556_v14  ;;  %v7228_v26 = vld [vmem:[#allocation5 + $0x7e8] sm:$0xf0] }
  0xcd   :  { %v9349_v34 = vld [vmem:[#allocation5 + $0x664] sm:$0xf0]  ;;  %v6876_v11 = vld [vmem:[#allocation5 + $0x528] sm:$0xf0] }
  0xce   :  { %2802 = vmatpush.bf16.msra.mxu2 %v7131_v4  ;;  %2775 = vmatpush.bf16.msrb.mxu3 %v6587_v10  ;;  %v6234_v36 = vld [vmem:[#allocation5 + $0x8] sm:$0xf]  ;;  %v7035_v47 = vor.u32 %v9349_v34, %v7034_v33  ;;  %v6716_v10 = vld [vmem:[#allocation5 + $0x3e8] sm:$0xf0] }
  0xcf   :  { %v9149_v38 = vld [vmem:[#allocation5 + $0x24] sm:$0xf0]  ;;  %v6719_v19 = vor.u32 %v9265_v9, %v6716_v10  ;;  %v9249_v34 = vld [vmem:[#allocation5 + $0x34c] sm:$0xf] }
  0xd0   :  { %2789 = vmatpush.bf16.msra.mxu0 %v6843_v16  ;;  %2762 = vmatpush.bf16.msrb.mxu1 %v6299_v18  ;;  %v6490_v39 = vld [vmem:[#allocation5 + $0x208] sm:$0xf]  ;;  %v6235_v48 = vor.u32 %v9149_v38, %v6234_v36  ;;  %v9177_v36 = vld [vmem:[#allocation5 + $0x10c] sm:$0xf] }
  0xd1   :  { %v9213_v40 = vld [vmem:[#allocation5 + $0x224] sm:$0xf0] }
  0xd2   :  { %2803 = vmatpush.bf16.msra.mxu2 %v7099_v17  ;;  %2776 = vmatpush.bf16.msrb.mxu3 %v6555_v22  ;;  %v7482_v41 = vld [vmem:[#allocation5 + $0x9c8] sm:$0xf]  ;;  %v6491_v53 = vor.u32 %v9213_v40, %v6490_v39  ;;  %v9257_v22 = vld [vmem:[#allocation5 + $0x38c] sm:$0xf] }
  0xd3   :  { %v9461_v43 = vld [vmem:[#allocation5 + $0x9e4] sm:$0xf0]  ;;  %v6364_v39 = vld [vmem:[#allocation5 + $0x128] sm:$0xf0] }
  0xd4   :  { %2790 = vmatpush.bf16.msra.mxu0 %v6811_v28  ;;  %v7738_v45 = vld [vmem:[#allocation5 + $0xbc8] sm:$0xf]  ;;  %2763 = vmatpush.bf16.msrb.mxu1 %v6267_v31  ;;  %v7483_v56 = vor.u32 %v9461_v43, %v7482_v41  ;;  %v6687_v31 = vor.u32 %v9257_v22, %v6684_v23  ;;  %v9329_v22 = vld [vmem:[#allocation5 + $0x5cc] sm:$0xf] }
  0xd5   :  { %v9525_v46 = vld [vmem:[#allocation5 + $0xbe4] sm:$0xf0]  ;;  %v6972_v23 = vld [vmem:[#allocation5 + $0x5e8] sm:$0xf0] }
  0xd6   :  { %2804 = vmatpush.bf16.msra.mxu2 %v7067_v30  ;;  %v6746_v49 = vld [vmem:[#allocation5 + $0x408] sm:$0xf]  ;;  %2777 = vmatpush.bf16.msrb.mxu3 %v6523_v35  ;;  %v7739_v61 = vor.u32 %v9525_v46, %v7738_v45  ;;  %v6652_v35 = vld [vmem:[#allocation5 + $0x368] sm:$0xf0]  ;;  %v6367_v46 = vor.u32 %v9177_v36, %v6364_v39 }
  0xd7   :  { %v9277_v51 = vld [vmem:[#allocation5 + $0x424] sm:$0xf0]  ;;  %v6655_v45 = vor.u32 %v9249_v34, %v6652_v35  ;;  %v6236_v34 = vld [vmem:[#allocation5 + $0x28] sm:$0xf0] }
  0xd8   :  { %v7002_v52 = vld [vmem:[#allocation5 + $0x608] sm:$0xf]  ;;  %2791 = vmatpush.bf16.msra.mxu0 %v6779_v44  ;;  %v6747_v1 = vor.u32 %v9277_v51, %v6746_v49  ;;  %2764 = vmatpush.bf16.msrb.mxu1 %v6235_v48  ;;  %v9241_v48 = vld [vmem:[#allocation5 + $0x30c] sm:$0xf] }
  0xd9   :  { %v9341_v57 = vld [vmem:[#allocation5 + $0x624] sm:$0xf0]  ;;  %v6620_v49 = vld [vmem:[#allocation5 + $0x328] sm:$0xf0] }
  0xda   :  { %v7450_v62 = vld [vmem:[#allocation5 + $0x988] sm:$0xf]  ;;  %2805 = vmatpush.bf16.msra.mxu2 %v7035_v47  ;;  %v7003_v5 = vor.u32 %v9341_v57, %v7002_v52  ;;  %2778 = vmatpush.bf16.msrb.mxu3 %v6491_v53  ;;  %v9169_v51 = vld [vmem:[#allocation5 + $0xcc] sm:$0xf] }
  0xdb   :  { %v9453_v63 = vld [vmem:[#allocation5 + $0x9a4] sm:$0xf0]  ;;  %2765 = vmatmul.bf16.vlgmr.msrb.gmra.mxu1 %v10257_v55  ;;  %v6332_v53 = vld [vmem:[#allocation5 + $0xe8] sm:$0xf0] }
  0xdc   :  { %v7706_v0 = vld [vmem:[#allocation5 + $0xb88] sm:$0xf]  ;;  %2813 = vmatpush.bf16.msra.mxu1 %v7483_v56  ;;  %v7451_v7 = vor.u32 %v9453_v63, %v7450_v62  ;;  %2792 = vmatpush.bf16.msra.mxu0 %v6747_v1  ;;  %v6335_v62 = vor.u32 %v9169_v51, %v6332_v53  ;;  %v6588_v1 = vld [vmem:[#allocation5 + $0x2e8] sm:$0xf0] }
  0xdd   :  { %v9517_v2 = vld [vmem:[#allocation5 + $0xba4] sm:$0xf0]  ;;  %2779 = vmatmul.bf16.vlgmr.msrb.gmra.mxu3 %v10263_v8  ;;  %v9457_v35 = vld [vmem:[#allocation5 + $0x9cc] sm:$0xf] }
  0xde   :  { %v7770_v3 = vld [vmem:[#allocation5 + $0xc08] sm:$0xf]  ;;  %2827 = vmatpush.bf16.msra.mxu3 %v7739_v61  ;;  %v7707_v12 = vor.u32 %v9517_v2, %v7706_v0  ;;  %2806 = vmatpush.bf16.msra.mxu2 %v7003_v5  ;;  %v6623_v61 = vor.u32 %v9241_v48, %v6620_v49  ;;  %v9233_v0 = vld [vmem:[#allocation5 + $0x2cc] sm:$0xf] }
  0xdf   :  { %v9533_v4 = vld [vmem:[#allocation5 + $0xc24] sm:$0xf0]  ;;  %2793 = vmatmul.bf16.vlgmr.msra.gmra.mxu0 %v10255_v54  ;;  %v9161_v2 = vld [vmem:[#allocation5 + $0x8c] sm:$0xf]  ;;  %v6591_v10 = vor.u32 %v9233_v0, %v6588_v1 }
  0xe0   :  { %v7771_v13 = vor.u32 %v9533_v4, %v7770_v3  ;;  %v7418_v15 = vld [vmem:[#allocation5 + $0x948] sm:$0xf]  ;;  %2814 = vmatpush.bf16.msra.mxu1 %v7451_v7  ;;  %v6300_v4 = vld [vmem:[#allocation5 + $0xa8] sm:$0xf0] }
  0xe1   :  { %v9445_v16 = vld [vmem:[#allocation5 + $0x964] sm:$0xf0]  ;;  %2807 = vmatmul.bf16.vlgmr.msra.gmra.mxu2 %v10259_v60  ;;  %v9321_v39 = vld [vmem:[#allocation5 + $0x58c] sm:$0xf] }
  0xe2   :  { %v7674_v17 = vld [vmem:[#allocation5 + $0xb48] sm:$0xf]  ;;  %2855 = vmatpush.bf16.msrb.mxu2 %v6463_v6  ;;  %v7419_v21 = vor.u32 %v9445_v16, %v7418_v15  ;;  %2828 = vmatpush.bf16.msra.mxu3 %v7707_v12  ;;  %v6303_v12 = vor.u32 %v9161_v2, %v6300_v4  ;;  %v9153_v15 = vld [vmem:[#allocation5 + $0x4c] sm:$0xf] }
  0xe3   :  { %v9509_v18 = vld [vmem:[#allocation5 + $0xb64] sm:$0xf0]  ;;  %2848 = vmatpush.bf16.msrb.mxu0 %v7771_v13  ;;  %v6268_v16 = vld [vmem:[#allocation5 + $0x68] sm:$0xf0] }
  0xe4   :  { %v7675_v25 = vor.u32 %v9509_v18, %v7674_v17  ;;  %v7386_v27 = vld [vmem:[#allocation5 + $0x908] sm:$0xf]  ;;  %2815 = vmatpush.bf16.msra.mxu1 %v7419_v21  ;;  %v9521_v51 = vld [vmem:[#allocation5 + $0xbcc] sm:$0xf] }
  0xe5   :  { %v9437_v28 = vld [vmem:[#allocation5 + $0x924] sm:$0xf0]  ;;  %v9449_v53 = vld [vmem:[#allocation5 + $0x98c] sm:$0xf] }
  0xe6   :  { %v7642_v29 = vld [vmem:[#allocation5 + $0xb08] sm:$0xf]  ;;  %2856 = vmatpush.bf16.msrb.mxu2 %v6431_v20  ;;  %v7387_v33 = vor.u32 %v9437_v28, %v7386_v27  ;;  %2829 = vmatpush.bf16.msra.mxu3 %v7675_v25  ;;  %v9393_v25 = vld [vmem:[#allocation5 + $0x7cc] sm:$0xf]  ;;  %v6271_v27 = vor.u32 %v9153_v15, %v6268_v16 }
  0xe7   :  { %v9501_v30 = vld [vmem:[#allocation5 + $0xb24] sm:$0xf0]  ;;  %2869 = vmatpush.bf16.msra.mxu0 %v6719_v19  ;;  %v7231_v36 = vor.u32 %v9393_v25, %v7228_v26  ;;  %v9513_v1 = vld [vmem:[#allocation5 + $0xb8c] sm:$0xf]  ;;  %v2570_v25 = vpop.f32.mrf.mxu0 }
  0xe8   :  { %v7643_v38 = vor.u32 %v9501_v30, %v7642_v29  ;;  %v7354_v40 = vld [vmem:[#allocation5 + $0x8c8] sm:$0xf]  ;;  %2816 = vmatpush.bf16.msra.mxu1 %v7387_v33  ;;  %v9217_v29 = vld [vmem:[#allocation5 + $0x24c] sm:$0xf] }
  0xe9   :  { %v9429_v41 = vld [vmem:[#allocation5 + $0x8e4] sm:$0xf0]  ;;  %v6524_v30 = vld [vmem:[#allocation5 + $0x268] sm:$0xf0] }
  0xea   :  { %v7610_v43 = vld [vmem:[#allocation5 + $0xac8] sm:$0xf]  ;;  %2857 = vmatpush.bf16.msrb.mxu2 %v6399_v32  ;;  %v7355_v47 = vor.u32 %v9429_v41, %v7354_v40  ;;  %2830 = vmatpush.bf16.msra.mxu3 %v7643_v38  ;;  %v6975_v32 = vor.u32 %v9329_v22, %v6972_v23  ;;  %v9145_v33 = vld [vmem:[#allocation5 + $0xc] sm:$0xf]  ;;  %v6527_v41 = vor.u32 %v9217_v29, %v6524_v30 }
  0xeb   :  { %v9493_v44 = vld [vmem:[#allocation5 + $0xae4] sm:$0xf0]  ;;  %2870 = vmatpush.bf16.msra.mxu0 %v6687_v31  ;;  %v7484_v38 = vld [vmem:[#allocation5 + $0x9e8] sm:$0xf0] }
  0xec   :  { %v7611_v52 = vor.u32 %v9493_v44, %v7610_v43  ;;  %v7322_v56 = vld [vmem:[#allocation5 + $0x888] sm:$0xf]  ;;  %2817 = vmatpush.bf16.msra.mxu1 %v7355_v47  ;;  %v6940_v40 = vld [vmem:[#allocation5 + $0x5a8] sm:$0xf0]  ;;  %v7487_v48 = vor.u32 %v9457_v35, %v7484_v38 }
  0xed   :  { %v9421_v57 = vld [vmem:[#allocation5 + $0x8a4] sm:$0xf0]  ;;  %v9385_v43 = vld [vmem:[#allocation5 + $0x78c] sm:$0xf]  ;;  %v6943_v49 = vor.u32 %v9321_v39, %v6940_v40  ;;  %v2584_v40 = vpop.f32.mrf.mxu1 }
  0xee   :  { %v7578_v58 = vld [vmem:[#allocation5 + $0xa88] sm:$0xf]  ;;  %2858 = vmatpush.bf16.msrb.mxu2 %v6367_v46  ;;  %v7323_v63 = vor.u32 %v9421_v57, %v7322_v56  ;;  %2831 = vmatpush.bf16.msra.mxu3 %v7611_v52  ;;  %v7196_v44 = vld [vmem:[#allocation5 + $0x7a8] sm:$0xf0] }
  0xef   :  { %v9485_v59 = vld [vmem:[#allocation5 + $0xaa4] sm:$0xf0]  ;;  %2871 = vmatpush.bf16.msra.mxu0 %v6655_v45  ;;  %v6239_v45 = vor.u32 %v9145_v33, %v6236_v34  ;;  %v9209_v46 = vld [vmem:[#allocation5 + $0x20c] sm:$0xf]  ;;  %v7199_v56 = vor.u32 %v9385_v43, %v7196_v44 }
  0xf0   :  { %v7579_v3 = vor.u32 %v9485_v59, %v7578_v58  ;;  %v7290_v5 = vld [vmem:[#allocation5 + $0x848] sm:$0xf]  ;;  %2818 = vmatpush.bf16.msra.mxu1 %v7323_v63  ;;  %7794 = vmatmul.msk.bf16.vlgmr.msrb.gmra.mxu0 %vm2557_vm0, %v10267_v50  ;;  %v6492_v47 = vld [vmem:[#allocation5 + $0x228] sm:$0xf0] }
  0xf1   :  { %v9413_v6 = vld [vmem:[#allocation5 + $0x864] sm:$0xf0]  ;;  %v7740_v52 = vld [vmem:[#allocation5 + $0xbe8] sm:$0xf0] }
  0xf2   :  { %v7546_v7 = vld [vmem:[#allocation5 + $0xa48] sm:$0xf]  ;;  %2859 = vmatpush.bf16.msrb.mxu2 %v6335_v62  ;;  %v7291_v13 = vor.u32 %v9413_v6, %v7290_v5  ;;  %2832 = vmatpush.bf16.msra.mxu3 %v7579_v3  ;;  %v7452_v57 = vld [vmem:[#allocation5 + $0x9a8] sm:$0xf0]  ;;  %v7743_v0 = vor.u32 %v9521_v51, %v7740_v52  ;;  %v10293_v6 = vld [vmem:[#allocation7] sm:$0xff] }
  0xf3   :  { %v9477_v9 = vld [vmem:[#allocation5 + $0xa64] sm:$0xf0]  ;;  %2872 = vmatpush.bf16.msra.mxu0 %v6623_v61  ;;  %v9313_v58 = vld [vmem:[#allocation5 + $0x54c] sm:$0xf]  ;;  %v6495_v61 = vor.u32 %v9209_v46, %v6492_v47  ;;  %v7455_v2 = vor.u32 %v9449_v53, %v7452_v57  ;;  %v10771_v15 = vperm.slane %v10293_v6, 0 }
  0xf4   :  { %v7547_v17 = vor.u32 %v9477_v9, %v7546_v7  ;;  %v7258_v18 = vld [vmem:[#allocation5 + $0x808] sm:$0xf]  ;;  %2819 = vmatpush.bf16.msra.mxu1 %v7291_v13  ;;  %v6908_v59 = vld [vmem:[#allocation5 + $0x568] sm:$0xf0]  ;;  %v2598_v46 = vpop.f32.mrf.mxu2 }
  0xf5   :  { %v9405_v19 = vld [vmem:[#allocation5 + $0x824] sm:$0xf0]  ;;  %v9377_v62 = vld [vmem:[#allocation5 + $0x74c] sm:$0xf]  ;;  %v6911_v3 = vor.u32 %v9313_v58, %v6908_v59 }
  0xf6   :  { %v7514_v20 = vld [vmem:[#allocation5 + $0xa08] sm:$0xf]  ;;  %2860 = vmatpush.bf16.msrb.mxu2 %v6303_v12  ;;  %v7259_v28 = vor.u32 %v9405_v19, %v7258_v18  ;;  %2833 = vmatpush.bf16.msra.mxu3 %v7547_v17  ;;  %v7164_v63 = vld [vmem:[#allocation5 + $0x768] sm:$0xf0] }
  0xf7   :  { %v9469_v21 = vld [vmem:[#allocation5 + $0xa24] sm:$0xf0]  ;;  %2873 = vmatpush.bf16.msra.mxu0 %v6591_v10  ;;  %v7708_v4 = vld [vmem:[#allocation5 + $0xba8] sm:$0xf0]  ;;  %v7167_v7 = vor.u32 %v9377_v62, %v7164_v63 }
  0xf8   :  { %v7515_v31 = vor.u32 %v9469_v21, %v7514_v20  ;;  %2820 = vmatpush.bf16.msra.mxu1 %v7259_v28  ;;  %v9441_v5 = vld [vmem:[#allocation5 + $0x94c] sm:$0xf]  ;;  %v7711_v14 = vor.u32 %v9513_v1, %v7708_v4  ;;  %v2571_v28 = vadd.f32 %v2570_v25, %v10771_v15  ;;  %v6892_v15 = vld [vmem:[#allocation5 + $0x538] sm:$0xf0] }
  0xf9   :  { %v7420_v9 = vld [vmem:[#allocation5 + $0x968] sm:$0xf0] }
  0xfa   :  { %2861 = vmatpush.bf16.msrb.mxu2 %v6271_v27  ;;  %2834 = vmatpush.bf16.msra.mxu3 %v7515_v31  ;;  %v9305_v10 = vld [vmem:[#allocation5 + $0x50c] sm:$0xf]  ;;  %v7423_v16 = vor.u32 %v9441_v5, %v7420_v9  ;;  %v2585_v44 = vadd.f32 %v2584_v40, %v2571_v28 }
  0xfb   :  { %2874 = vmatpush.bf16.msra.mxu0 %v6559_v24  ;;  %2821 = vmatmul.bf16.vlgmr.msra.gmra.mxu1 %v10271_v37  ;;  %v9369_v12 = vld [vmem:[#allocation5 + $0x70c] sm:$0xf]  ;;  %v6879_v17 = vor.u32 %v9305_v10, %v6876_v11 }
  0xfc   :  { %2883 = vmatpush.bf16.msrb.mxu1 %v6975_v32  ;;  %v7132_v13 = vld [vmem:[#allocation5 + $0x728] sm:$0xf0]  ;;  %v2599_v53 = vadd.f32 %v2598_v46, %v2585_v44  ;;  %v9334_v46 = vld [vmem:[#allocation5 + $0x5ec] sm:$0xf0] }
  0xfd   :  { %2835 = vmatmul.bf16.vlgmr.msra.gmra.mxu3 %v10273_v42  ;;  %v9505_v18 = vld [vmem:[#allocation5 + $0xb4c] sm:$0xf]  ;;  %v7135_v21 = vor.u32 %v9369_v12, %v7132_v13 }
  0xfe   :  { %2897 = vmatpush.bf16.msrb.mxu3 %v7231_v36  ;;  %2862 = vmatpush.bf16.msrb.mxu2 %v6239_v45  ;;  %v7676_v19 = vld [vmem:[#allocation5 + $0xb68] sm:$0xf0] }
  0xff   :  { %2875 = vmatpush.bf16.msra.mxu0 %v6527_v41  ;;  %v9433_v20 = vld [vmem:[#allocation5 + $0x90c] sm:$0xf]  ;;  %v7679_v29 = vor.u32 %v9505_v18, %v7676_v19  ;;  %v6466_v19 = vld [vmem:[#allocation5 + $0x1d0] sm:$0xf] }
 0x100   :  { %2884 = vmatpush.bf16.msrb.mxu1 %v6943_v49  ;;  %v7388_v22 = vld [vmem:[#allocation5 + $0x928] sm:$0xf0] }
 0x101   :  { %2863 = vmatmul.bf16.vlgmr.msrb.gmra.mxu2 %v10257_v55  ;;  %v9297_v23 = vld [vmem:[#allocation5 + $0x4cc] sm:$0xf]  ;;  %v7391_v30 = vor.u32 %v9433_v20, %v7388_v22  ;;  %v9206_v20 = vld [vmem:[#allocation5 + $0x1ec] sm:$0xf0] }
 0x102   :  { %2911 = vmatpush.bf16.msra.mxu2 %v7487_v48  ;;  %2898 = vmatpush.bf16.msrb.mxu3 %v7199_v56  ;;  %v6844_v24 = vld [vmem:[#allocation5 + $0x4e8] sm:$0xf0]  ;;  %v2612_v56 = vpop.f32.mrf.mxu3 }
 0x103   :  { %2876 = vmatpush.bf16.msra.mxu0 %v6495_v61  ;;  %v9361_v26 = vld [vmem:[#allocation5 + $0x6cc] sm:$0xf]  ;;  %v6847_v31 = vor.u32 %v9297_v23, %v6844_v24 }
 0x104   :  { %2885 = vmatpush.bf16.msrb.mxu1 %v6911_v3  ;;  %v7100_v27 = vld [vmem:[#allocation5 + $0x6e8] sm:$0xf0] }
 0x105   :  { %v9497_v32 = vld [vmem:[#allocation5 + $0xb0c] sm:$0xf]  ;;  %v7103_v35 = vor.u32 %v9361_v26, %v7100_v27 }
 0x106   :  { %2912 = vmatpush.bf16.msra.mxu2 %v7455_v2  ;;  %2899 = vmatpush.bf16.msrb.mxu3 %v7167_v7  ;;  %v7644_v33 = vld [vmem:[#allocation5 + $0xb28] sm:$0xf0] }
 0x107   :  { %2925 = vmatpush.bf16.msrb.mxu0 %v7743_v0  ;;  %v9425_v34 = vld [vmem:[#allocation5 + $0x8cc] sm:$0xf]  ;;  %v7647_v45 = vor.u32 %v9497_v32, %v7644_v33  ;;  %v10300_v0 = vadd.f32 %v2612_v56, %v2599_v53  ;;  %v9262_v32 = vld [vmem:[#allocation5 + $0x3ac] sm:$0xf0]  ;;  %v10304_v53 = vpop.f32.mrf.mxu0 }
 0x108   :  { %2877 = vmatmul.bf16.vlgmr.msra.gmra.mxu0 %v10263_v8  ;;  %2886 = vmatpush.bf16.msrb.mxu1 %v6879_v17  ;;  %v7356_v36 = vld [vmem:[#allocation5 + $0x8e8] sm:$0xf0]  ;;  %v9270_v17 = vld [vmem:[#allocation5 + $0x3ec] sm:$0xf0] }
 0x109   :  { %v9289_v38 = vld [vmem:[#allocation5 + $0x48c] sm:$0xf]  ;;  %v7359_v47 = vor.u32 %v9425_v34, %v7356_v36  ;;  %v6434_v36 = vld [vmem:[#allocation5 + $0x190] sm:$0xf] }
 0x10a   :  { %2913 = vmatpush.bf16.msra.mxu2 %v7423_v16  ;;  %2900 = vmatpush.bf16.msrb.mxu3 %v7135_v21  ;;  %v6812_v39 = vld [vmem:[#allocation5 + $0x4a8] sm:$0xf0]  ;;  %v6722_v16 = vld [vmem:[#allocation5 + $0x3d0] sm:$0xf]  ;;  %v10302_v21 = vpop.f32.mrf.mxu2 }
 0x10b   :  { %2926 = vmatpush.bf16.msrb.mxu0 %v7711_v14  ;;  %v9353_v41 = vld [vmem:[#allocation5 + $0x68c] sm:$0xf]  ;;  %v6815_v48 = vor.u32 %v9289_v38, %v6812_v39  ;;  %v6723_v27 = vor.u32 %v9270_v17, %v6722_v16  ;;  %v9198_v38 = vld [vmem:[#allocation5 + $0x1ac] sm:$0xf0] }
 0x10c   :  { %v7068_v43 = vld [vmem:[#allocation5 + $0x6a8] sm:$0xf0]  ;;  %2887 = vmatpush.bf16.msrb.mxu1 %v6847_v31  ;;  %v6467_v31 = vor.u32 %v9206_v20, %v6466_v19  ;;  %v6914_v16 = vld [vmem:[#allocation5 + $0x550] sm:$0xf] }
 0x10d   :  { %v9489_v49 = vld [vmem:[#allocation5 + $0xacc] sm:$0xf]  ;;  %v7071_v57 = vor.u32 %v9353_v41, %v7068_v43  ;;  %v6978_v43 = vld [vmem:[#allocation5 + $0x5d0] sm:$0xf] }
 0x10e   :  { %2914 = vmatpush.bf16.msra.mxu2 %v7391_v30  ;;  %v7612_v51 = vld [vmem:[#allocation5 + $0xae8] sm:$0xf0]  ;;  %2901 = vmatpush.bf16.msrb.mxu3 %v7103_v35  ;;  %v6690_v30 = vld [vmem:[#allocation5 + $0x390] sm:$0xf] }
 0x10f   :  { %2927 = vmatpush.bf16.msrb.mxu0 %v7679_v29  ;;  %v9417_v52 = vld [vmem:[#allocation5 + $0x88c] sm:$0xf]  ;;  %v7615_v1 = vor.u32 %v9489_v49, %v7612_v51  ;;  %v6691_v44 = vor.u32 %v9262_v32, %v6690_v30  ;;  %v6435_v49 = vor.u32 %v9198_v38, %v6434_v36  ;;  %v6658_v51 = vld [vmem:[#allocation5 + $0x350] sm:$0xf] }
 0x110   :  { %v7324_v58 = vld [vmem:[#allocation5 + $0x8a8] sm:$0xf0]  ;;  %2888 = vmatpush.bf16.msrb.mxu1 %v6815_v48  ;;  %v9398_v48 = vld [vmem:[#allocation5 + $0x7ec] sm:$0xf0] }
 0x111   :  { %v9281_v59 = vld [vmem:[#allocation5 + $0x44c] sm:$0xf]  ;;  %v7327_v3 = vor.u32 %v9417_v52, %v7324_v58  ;;  %v9254_v52 = vld [vmem:[#allocation5 + $0x36c] sm:$0xf0] }
 0x112   :  { %v6780_v61 = vld [vmem:[#allocation5 + $0x468] sm:$0xf0]  ;;  %2915 = vmatpush.bf16.msra.mxu2 %v7359_v47  ;;  %2902 = vmatpush.bf16.msrb.mxu3 %v7071_v57  ;;  %v7234_v47 = vld [vmem:[#allocation5 + $0x7d0] sm:$0xf] }
 0x113   :  { %v9345_v62 = vld [vmem:[#allocation5 + $0x64c] sm:$0xf]  ;;  %2928 = vmatpush.bf16.msrb.mxu0 %v7647_v45  ;;  %v6783_v4 = vor.u32 %v9281_v59, %v6780_v61  ;;  %v6402_v57 = vld [vmem:[#allocation5 + $0x150] sm:$0xf]  ;;  %v10307_v59 = vpop.f32.mrf.mxu1  ;;  %v6979_v61 = vor.u32 %v9334_v46, %v6978_v43 }
 0x114   :  { %v7036_v63 = vld [vmem:[#allocation5 + $0x668] sm:$0xf0]  ;;  %v9190_v58 = vld [vmem:[#allocation5 + $0x16c] sm:$0xf0] }
 0x115   :  { %v9481_v2 = vld [vmem:[#allocation5 + $0xa8c] sm:$0xf]  ;;  %v7039_v10 = vor.u32 %v9345_v62, %v7036_v63  ;;  %2889 = vmatpush.bf16.msrb.mxu1 %v6783_v4  ;;  %v7235_v62 = vor.u32 %v9398_v48, %v7234_v47  ;;  %v2654_v63 = vpop.f32.mrf.mxu2  ;;  %v7202_v4 = vld [vmem:[#allocation5 + $0x790] sm:$0xf] }
 0x116   :  { %v7580_v5 = vld [vmem:[#allocation5 + $0xaa8] sm:$0xf0]  ;;  %2916 = vmatpush.bf16.msra.mxu2 %v7327_v3  ;;  %v9326_v3 = vld [vmem:[#allocation5 + $0x5ac] sm:$0xf0] }
 0x117   :  { %v9409_v7 = vld [vmem:[#allocation5 + $0x84c] sm:$0xf]  ;;  %2929 = vmatpush.bf16.msrb.mxu0 %v7615_v1  ;;  %v7583_v18 = vor.u32 %v9481_v2, %v7580_v5  ;;  %2903 = vmatpush.bf16.msrb.mxu3 %v7039_v10  ;;  %v6946_v1 = vld [vmem:[#allocation5 + $0x590] sm:$0xf]  ;;  %v6659_v2 = vor.u32 %v9254_v52, %v6658_v51  ;;  %v10770_v51 = vperm.slane %v10293_v6, 1 }
 0x118   :  { %v7292_v9 = vld [vmem:[#allocation5 + $0x868] sm:$0xf0]  ;;  %v9390_v5 = vld [vmem:[#allocation5 + $0x7ac] sm:$0xf0] }
 0x119   :  { %v9273_v11 = vld [vmem:[#allocation5 + $0x40c] sm:$0xf]  ;;  %v7295_v22 = vor.u32 %v9409_v7, %v7292_v9  ;;  %v6403_v7 = vor.u32 %v9190_v58, %v6402_v57  ;;  %v6626_v9 = vld [vmem:[#allocation5 + $0x310] sm:$0xf] }
 0x11a   :  { %v6748_v12 = vld [vmem:[#allocation5 + $0x428] sm:$0xf0]  ;;  %v9246_v10 = vld [vmem:[#allocation5 + $0x32c] sm:$0xf0] }
 0x11b   :  { %v9337_v13 = vld [vmem:[#allocation5 + $0x60c] sm:$0xf]  ;;  %v6751_v23 = vor.u32 %v9273_v11, %v6748_v12  ;;  %2930 = vmatpush.bf16.msrb.mxu0 %v7583_v18  ;;  %2917 = vmatpush.bf16.msra.mxu2 %v7295_v22  ;;  %v6370_v11 = vld [vmem:[#allocation5 + $0x110] sm:$0xf]  ;;  %v6627_v17 = vor.u32 %v9246_v10, %v6626_v9  ;;  %v2640_v30 = vpop.f32.mrf.mxu1 }
 0x11c   :  { %v7004_v14 = vld [vmem:[#allocation5 + $0x628] sm:$0xf0]  ;;  %v9182_v12 = vld [vmem:[#allocation5 + $0x12c] sm:$0xf0] }
 0x11d   :  { %v9473_v24 = vld [vmem:[#allocation5 + $0xa4c] sm:$0xf]  ;;  %v7007_v26 = vor.u32 %v9337_v13, %v7004_v14  ;;  %2890 = vmatpush.bf16.msrb.mxu1 %v6751_v23  ;;  %v6947_v13 = vor.u32 %v9326_v3, %v6946_v1  ;;  %v7203_v14 = vor.u32 %v9390_v5, %v7202_v4  ;;  %v9318_v18 = vld [vmem:[#allocation5 + $0x56c] sm:$0xf0]  ;;  %v6371_v22 = vor.u32 %v9182_v12, %v6370_v11 }
 0x11e   :  { %v7548_v25 = vld [vmem:[#allocation5 + $0xa68] sm:$0xf0]  ;;  %v7170_v19 = vld [vmem:[#allocation5 + $0x750] sm:$0xf] }
 0x11f   :  { %v9401_v28 = vld [vmem:[#allocation5 + $0x80c] sm:$0xf]  ;;  %v7551_v35 = vor.u32 %v9473_v24, %v7548_v25  ;;  %2904 = vmatpush.bf16.msrb.mxu3 %v7007_v26  ;;  %v9382_v20 = vld [vmem:[#allocation5 + $0x76c] sm:$0xf0]  ;;  %v10312_v25 = vpop.f32.mrf.mxu3  ;;  %v2626_v26 = vpop.f32.mrf.mxu0 }
 0x120   :  { %v7260_v29 = vld [vmem:[#allocation5 + $0x828] sm:$0xf0]  ;;  %2891 = vmatmul.bf16.vlgmr.msrb.gmra.mxu1 %v10255_v54  ;;  %v6594_v23 = vld [vmem:[#allocation5 + $0x2d0] sm:$0xf]  ;;  %v7171_v32 = vor.u32 %v9382_v20, %v7170_v19 }
 0x121   :  { %v9529_v33 = vld [vmem:[#allocation5 + $0xc0c] sm:$0xf]  ;;  %v7263_v39 = vor.u32 %v9401_v28, %v7260_v29  ;;  %2967 = vmatpush.bf16.msra.mxu1 %v6723_v27  ;;  %2931 = vmatpush.bf16.msrb.mxu0 %v7551_v35  ;;  %v9238_v24 = vld [vmem:[#allocation5 + $0x2ec] sm:$0xf0]  ;;  %v2627_v29 = vadd.f32 %v2626_v26, %v10300_v0  ;;  %v10315_v35 = vpop.f32.mrf.mxu2 }
 0x122   :  { %v7772_v34 = vld [vmem:[#allocation5 + $0xc28] sm:$0xf0]  ;;  %2905 = vmatmul.bf16.vlgmr.msrb.gmra.mxu3 %v10259_v60  ;;  %v6338_v27 = vld [vmem:[#allocation5 + $0xd0] sm:$0xf] }
 0x123   :  { %v9465_v40 = vld [vmem:[#allocation5 + $0xa0c] sm:$0xf]  ;;  %v7775_v45 = vor.u32 %v9529_v33, %v7772_v34  ;;  %2953 = vmatpush.bf16.msra.mxu3 %v6467_v31  ;;  %2918 = vmatpush.bf16.msra.mxu2 %v7263_v39  ;;  %v9174_v28 = vld [vmem:[#allocation5 + $0xec] sm:$0xf0]  ;;  %v6915_v31 = vor.u32 %v9318_v18, %v6914_v16  ;;  %v6595_v34 = vor.u32 %v9238_v24, %v6594_v23 }
 0x124   :  { %v7516_v41 = vld [vmem:[#allocation5 + $0xa28] sm:$0xf0]  ;;  %v6882_v33 = vld [vmem:[#allocation5 + $0x510] sm:$0xf] }
 0x125   :  { %v7519_v56 = vor.u32 %v9465_v40, %v7516_v41  ;;  %2968 = vmatpush.bf16.msra.mxu1 %v6691_v44  ;;  %v9310_v36 = vld [vmem:[#allocation5 + $0x52c] sm:$0xf0]  ;;  %v2641_v40 = vadd.f32 %v2640_v30, %v2627_v29  ;;  %v6339_v41 = vor.u32 %v9174_v28, %v6338_v27 }
 0x126   :  { %2919 = vmatmul.bf16.vlgmr.msra.gmra.mxu2 %v10271_v37  ;;  %v7138_v38 = vld [vmem:[#allocation5 + $0x710] sm:$0xf]  ;;  %v6883_v0 = vor.u32 %v9310_v36, %v6882_v33 }
 0x127   :  { %2946 = vmatpush.bf16.msrb.mxu2 %v7775_v45  ;;  %2954 = vmatpush.bf16.msra.mxu3 %v6435_v49  ;;  %v9374_v39 = vld [vmem:[#allocation5 + $0x72c] sm:$0xf0]  ;;  %v10317_v47 = vadd.f32 %v2654_v63, %v2641_v40  ;;  %v2668_v63 = vpop.f32.mrf.mxu3 }
 0x128   :  { %2932 = vmatpush.bf16.msrb.mxu0 %v7519_v56  ;;  %v6562_v43 = vld [vmem:[#allocation5 + $0x290] sm:$0xf]  ;;  %v7139_v48 = vor.u32 %v9374_v39, %v7138_v38  ;;  %v2669_v9 = vadd.f32 %v2668_v63, %v10770_v51  ;;  %v9307_v51 = vld [vmem:[#allocation5 + $0x51c] sm:$0xf] }
 0x129   :  { %2969 = vmatpush.bf16.msra.mxu1 %v6659_v2  ;;  %v9230_v44 = vld [vmem:[#allocation5 + $0x2ac] sm:$0xf0] }
 0x12a   :  { %v6306_v45 = vld [vmem:[#allocation5 + $0x90] sm:$0xf]  ;;  %v6563_v52 = vor.u32 %v9230_v44, %v6562_v43 }
 0x12b   :  { %2981 = vmatpush.bf16.msra.mxu2 %v6979_v61  ;;  %2955 = vmatpush.bf16.msra.mxu3 %v6403_v7  ;;  %v9166_v46 = vld [vmem:[#allocation5 + $0xac] sm:$0xf0] }
 0x12c   :  { %2995 = vmatpush.bf16.msra.mxu0 %v7235_v62  ;;  %v6850_v49 = vld [vmem:[#allocation5 + $0x4d0] sm:$0xf]  ;;  %v6307_v61 = vor.u32 %v9166_v46, %v6306_v45 }
 0x12d   :  { %2933 = vmatmul.bf16.vlgmr.msrb.gmra.mxu0 %v10273_v42  ;;  %2970 = vmatpush.bf16.msra.mxu1 %v6627_v17  ;;  %v9302_v56 = vld [vmem:[#allocation5 + $0x4ec] sm:$0xf0] }
 0x12e   :  { %v7106_v57 = vld [vmem:[#allocation5 + $0x6d0] sm:$0xf]  ;;  %v6851_v4 = vor.u32 %v9302_v56, %v6850_v49  ;;  %v9202_v56 = vld [vmem:[#allocation5 + $0x1d4] sm:$0xf] }
 0x12f   :  { %2982 = vmatpush.bf16.msra.mxu2 %v6947_v13  ;;  %2956 = vmatpush.bf16.msra.mxu3 %v6371_v22  ;;  %v9366_v58 = vld [vmem:[#allocation5 + $0x6ec] sm:$0xf0] }
 0x130   :  { %2996 = vmatpush.bf16.msra.mxu0 %v7203_v14  ;;  %v6530_v62 = vld [vmem:[#allocation5 + $0x250] sm:$0xf]  ;;  %v7107_v5 = vor.u32 %v9366_v58, %v7106_v57  ;;  %v2682_v14 = vpop.f32.mrf.mxu2  ;;  %v6468_v58 = vld [vmem:[#allocation5 + $0x1f0] sm:$0xf0] }
 0x131   :  { %2971 = vmatpush.bf16.msra.mxu1 %v6595_v34  ;;  %v9222_v1 = vld [vmem:[#allocation5 + $0x26c] sm:$0xf0]  ;;  %v10322_v20 = vadd.f32 %v2682_v14, %v2669_v9  ;;  %v10326_v9 = vpop.f32.mrf.mxu0 }
 0x132   :  { %v6274_v2 = vld [vmem:[#allocation5 + $0x50] sm:$0xf]  ;;  %v6531_v10 = vor.u32 %v9222_v1, %v6530_v62 }
 0x133   :  { %2983 = vmatpush.bf16.msra.mxu2 %v6915_v31  ;;  %2957 = vmatpush.bf16.msra.mxu3 %v6339_v41  ;;  %v9158_v3 = vld [vmem:[#allocation5 + $0x6c] sm:$0xf0] }
 0x134   :  { %2997 = vmatpush.bf16.msra.mxu0 %v7171_v32  ;;  %v6818_v7 = vld [vmem:[#allocation5 + $0x490] sm:$0xf]  ;;  %v6275_v16 = vor.u32 %v9158_v3, %v6274_v2 }
 0x135   :  { %2972 = vmatpush.bf16.msra.mxu1 %v6563_v52  ;;  %v9294_v11 = vld [vmem:[#allocation5 + $0x4ac] sm:$0xf0] }
 0x136   :  { %v7074_v12 = vld [vmem:[#allocation5 + $0x690] sm:$0xf]  ;;  %7795 = vmatmul.msk.bf16.vlgmr.msrb.gmra.mxu2 %vm2557_vm0, %v10267_v50  ;;  %v6819_v26 = vor.u32 %v9294_v11, %v6818_v7 }
 0x137   :  { %2984 = vmatpush.bf16.msra.mxu2 %v6883_v0  ;;  %v9358_v13 = vld [vmem:[#allocation5 + $0x6ac] sm:$0xf0]  ;;  %2958 = vmatpush.bf16.msra.mxu3 %v6307_v61 }
 0x138   :  { %2998 = vmatpush.bf16.msra.mxu0 %v7139_v48  ;;  %v6242_v17 = vld [vmem:[#allocation5 + $0x10] sm:$0xf]  ;;  %v7075_v27 = vor.u32 %v9358_v13, %v7074_v12  ;;  %v9266_v12 = vld [vmem:[#allocation5 + $0x3d4] sm:$0xf] }
 0x139   :  { %v6498_v18 = vld [vmem:[#allocation5 + $0x210] sm:$0xf]  ;;  %2973 = vmatpush.bf16.msra.mxu1 %v6531_v10  ;;  %v6471_v10 = vor.u32 %v9202_v56, %v6468_v58  ;;  %v6724_v13 = vld [vmem:[#allocation5 + $0x3f0] sm:$0xf0] }
 0x13a   :  { %v9214_v19 = vld [vmem:[#allocation5 + $0x22c] sm:$0xf0]  ;;  %v9178_v56 = vld [vmem:[#allocation5 + $0x114] sm:$0xf] }
 0x13b   :  { %v9150_v22 = vld [vmem:[#allocation5 + $0x2c] sm:$0xf0]  ;;  %2985 = vmatpush.bf16.msra.mxu2 %v6851_v4  ;;  %v6499_v31 = vor.u32 %v9214_v19, %v6498_v18  ;;  %2959 = vmatpush.bf16.msra.mxu3 %v6275_v16  ;;  %v9194_v16 = vld [vmem:[#allocation5 + $0x194] sm:$0xf] }
 0x13c   :  { %v7746_v23 = vld [vmem:[#allocation5 + $0xbd0] sm:$0xf]  ;;  %2999 = vmatpush.bf16.msra.mxu0 %v7107_v5  ;;  %v6243_v36 = vor.u32 %v9150_v22, %v6242_v17  ;;  %v6436_v17 = vld [vmem:[#allocation5 + $0x1b0] sm:$0xf0] }
 0x13d   :  { %v9526_v24 = vld [vmem:[#allocation5 + $0xbec] sm:$0xf0]  ;;  %2974 = vmatpush.bf16.msra.mxu1 %v6499_v31  ;;  %v10332_v31 = vpop.f32.mrf.mxu3 }
 0x13e   :  { %v7490_v28 = vld [vmem:[#allocation5 + $0x9d0] sm:$0xf]  ;;  %v7747_v38 = vor.u32 %v9526_v24, %v7746_v23  ;;  %v10330_v23 = vpop.f32.mrf.mxu1  ;;  %v6727_v24 = vor.u32 %v9266_v12, %v6724_v13  ;;  %v6340_v12 = vld [vmem:[#allocation5 + $0xf0] sm:$0xf0] }
 0x13f   :  { %v9462_v29 = vld [vmem:[#allocation5 + $0x9ec] sm:$0xf0]  ;;  %2986 = vmatpush.bf16.msra.mxu2 %v6819_v26  ;;  %2960 = vmatpush.bf16.msra.mxu3 %v6243_v36 }
 0x140   :  { %v6786_v30 = vld [vmem:[#allocation5 + $0x450] sm:$0xf]  ;;  %v7491_v39 = vor.u32 %v9462_v29, %v7490_v28  ;;  %3000 = vmatpush.bf16.msra.mxu0 %v7075_v27  ;;  %2975 = vmatmul.bf16.vlgmr.msra.gmra.mxu1 %v10263_v8  ;;  %v6439_v28 = vor.u32 %v9194_v16, %v6436_v17  ;;  %v9258_v29 = vld [vmem:[#allocation5 + $0x394] sm:$0xf] }
 0x141   :  { %v9286_v32 = vld [vmem:[#allocation5 + $0x46c] sm:$0xf0]  ;;  %3023 = vmatpush.bf16.msrb.mxu1 %v7747_v38 }
 0x142   :  { %v7042_v33 = vld [vmem:[#allocation5 + $0x650] sm:$0xf]  ;;  %v6787_v44 = vor.u32 %v9286_v32, %v6786_v30  ;;  %2961 = vmatmul.bf16.vlgmr.msra.gmra.mxu3 %v10257_v55  ;;  %v6692_v30 = vld [vmem:[#allocation5 + $0x3b0] sm:$0xf0] }
 0x143   :  { %v9350_v34 = vld [vmem:[#allocation5 + $0x66c] sm:$0xf0]  ;;  %3009 = vmatpush.bf16.msrb.mxu3 %v7491_v39 }
 0x144   :  { %v7458_v40 = vld [vmem:[#allocation5 + $0x990] sm:$0xf]  ;;  %v7043_v45 = vor.u32 %v9350_v34, %v7042_v33  ;;  %2987 = vmatpush.bf16.msra.mxu2 %v6787_v44  ;;  %v9186_v33 = vld [vmem:[#allocation5 + $0x154] sm:$0xf]  ;;  %v2696_v44 = vpop.f32.mrf.mxu0 }
 0x145   :  { %v7714_v41 = vld [vmem:[#allocation5 + $0xb90] sm:$0xf]  ;;  %v6404_v34 = vld [vmem:[#allocation5 + $0x170] sm:$0xf0]  ;;  %v2724_v17 = vpop.f32.mrf.mxu3 }
 0x146   :  { %v9518_v43 = vld [vmem:[#allocation5 + $0xbac] sm:$0xf0]  ;;  %3001 = vmatpush.bf16.msra.mxu0 %v7043_v45  ;;  %v10336_v45 = vpop.f32.mrf.mxu2 }
 0x147   :  { %v9454_v46 = vld [vmem:[#allocation5 + $0x9ac] sm:$0xf0]  ;;  %v7715_v57 = vor.u32 %v9518_v43, %v7714_v41 }
 0x148   :  { %v6754_v0 = vld [vmem:[#allocation5 + $0x410] sm:$0xf]  ;;  %v7459_v1 = vor.u32 %v9454_v46, %v7458_v40  ;;  %v6695_v40 = vor.u32 %v9258_v29, %v6692_v30  ;;  %v6407_v46 = vor.u32 %v9186_v33, %v6404_v34  ;;  %v6596_v29 = vld [vmem:[#allocation5 + $0x2f0] sm:$0xf0] }
 0x149   :  { %v9278_v48 = vld [vmem:[#allocation5 + $0x42c] sm:$0xf0]  ;;  %3024 = vmatpush.bf16.msrb.mxu1 %v7715_v57  ;;  %v6372_v57 = vld [vmem:[#allocation5 + $0x130] sm:$0xf0] }
 0x14a   :  { %v7010_v49 = vld [vmem:[#allocation5 + $0x610] sm:$0xf]  ;;  %v6755_v63 = vor.u32 %v9278_v48, %v6754_v0  ;;  %3010 = vmatpush.bf16.msrb.mxu3 %v7459_v1  ;;  %v9250_v0 = vld [vmem:[#allocation5 + $0x354] sm:$0xf]  ;;  %v2710_v1 = vpop.f32.mrf.mxu1 }
 0x14b   :  { %v9342_v52 = vld [vmem:[#allocation5 + $0x62c] sm:$0xf0]  ;;  %v6660_v48 = vld [vmem:[#allocation5 + $0x370] sm:$0xf0] }
 0x14c   :  { %v7778_v61 = vld [vmem:[#allocation5 + $0xc10] sm:$0xf]  ;;  %v7011_v4 = vor.u32 %v9342_v52, %v7010_v49  ;;  %2988 = vmatpush.bf16.msra.mxu2 %v6755_v63  ;;  %v2697_v49 = vadd.f32 %v2696_v44, %v10322_v20  ;;  %v6308_v33 = vld [vmem:[#allocation5 + $0xb0] sm:$0xf0] }
 0x14d   :  { %v9534_v62 = vld [vmem:[#allocation5 + $0xc2c] sm:$0xf0] }
 0x14e   :  { %v7682_v2 = vld [vmem:[#allocation5 + $0xb50] sm:$0xf]  ;;  %v7779_v11 = vor.u32 %v9534_v62, %v7778_v61  ;;  %3002 = vmatpush.bf16.msra.mxu0 %v7011_v4  ;;  %v2711_v4 = vadd.f32 %v2710_v1, %v2697_v49 }
 0x14f   :  { %v9510_v3 = vld [vmem:[#allocation5 + $0xb6c] sm:$0xf0]  ;;  %2989 = vmatmul.bf16.vlgmr.msra.gmra.mxu2 %v10255_v54 }
 0x150   :  { %v7426_v5 = vld [vmem:[#allocation5 + $0x950] sm:$0xf]  ;;  %v7683_v14 = vor.u32 %v9510_v3, %v7682_v2  ;;  %3044 = vmatpush.bf16.msrb.mxu2 %v7779_v11  ;;  %v6663_v2 = vor.u32 %v9250_v0, %v6660_v48  ;;  %v9170_v11 = vld [vmem:[#allocation5 + $0xd4] sm:$0xf] }
 0x151   :  { %v9446_v7 = vld [vmem:[#allocation5 + $0x96c] sm:$0xf0]  ;;  %3003 = vmatmul.bf16.vlgmr.msra.gmra.mxu0 %v10259_v60  ;;  %v9394_v0 = vld [vmem:[#allocation5 + $0x7d4] sm:$0xf] }
 0x152   :  { %v7427_v18 = vor.u32 %v9446_v7, %v7426_v5  ;;  %v7650_v19 = vld [vmem:[#allocation5 + $0xb10] sm:$0xf]  ;;  %3051 = vmatpush.bf16.msrb.mxu0 %v6471_v10  ;;  %3025 = vmatpush.bf16.msrb.mxu1 %v7683_v14  ;;  %v6375_v5 = vor.u32 %v9178_v56, %v6372_v57  ;;  %v9242_v7 = vld [vmem:[#allocation5 + $0x314] sm:$0xf] }
 0x153   :  { %v9502_v22 = vld [vmem:[#allocation5 + $0xb2c] sm:$0xf0]  ;;  %v6628_v10 = vld [vmem:[#allocation5 + $0x330] sm:$0xf0] }
 0x154   :  { %v7394_v26 = vld [vmem:[#allocation5 + $0x910] sm:$0xf]  ;;  %v7651_v32 = vor.u32 %v9502_v22, %v7650_v19  ;;  %3011 = vmatpush.bf16.msrb.mxu3 %v7427_v18  ;;  %3065 = vmatpush.bf16.msra.mxu2 %v6727_v24  ;;  %v6631_v18 = vor.u32 %v9242_v7, %v6628_v10  ;;  %v2725_v24 = vadd.f32 %v2724_v17, %v2711_v4  ;;  %v7236_v48 = vld [vmem:[#allocation5 + $0x7f0] sm:$0xf0] }
 0x155   :  { %v9438_v27 = vld [vmem:[#allocation5 + $0x92c] sm:$0xf0]  ;;  %v9330_v56 = vld [vmem:[#allocation5 + $0x5d4] sm:$0xf] }
 0x156   :  { %v7395_v36 = vor.u32 %v9438_v27, %v7394_v26  ;;  %v7618_v38 = vld [vmem:[#allocation5 + $0xad0] sm:$0xf]  ;;  %3052 = vmatpush.bf16.msrb.mxu0 %v6439_v28  ;;  %3026 = vmatpush.bf16.msrb.mxu1 %v7651_v32  ;;  %v10339_v26 = vpop.f32.mrf.mxu0  ;;  %v6343_v27 = vor.u32 %v9170_v11, %v6340_v12  ;;  %v9234_v28 = vld [vmem:[#allocation5 + $0x2d4] sm:$0xf] }
 0x157   :  { %v9494_v39 = vld [vmem:[#allocation5 + $0xaec] sm:$0xf0]  ;;  %v9162_v32 = vld [vmem:[#allocation5 + $0x94] sm:$0xf]  ;;  %v6599_v44 = vor.u32 %v9234_v28, %v6596_v29 }
 0x158   :  { %v7362_v41 = vld [vmem:[#allocation5 + $0x8d0] sm:$0xf]  ;;  %v7619_v52 = vor.u32 %v9494_v39, %v7618_v38  ;;  %3012 = vmatpush.bf16.msrb.mxu3 %v7395_v36  ;;  %3066 = vmatpush.bf16.msra.mxu2 %v6695_v40  ;;  %v2738_v36 = vpop.f32.mrf.mxu2  ;;  %v6311_v49 = vor.u32 %v9162_v32, %v6308_v33  ;;  %v6980_v57 = vld [vmem:[#allocation5 + $0x5f0] sm:$0xf0] }
 0x159   :  { %v9430_v43 = vld [vmem:[#allocation5 + $0x8ec] sm:$0xf0]  ;;  %v9218_v4 = vld [vmem:[#allocation5 + $0x254] sm:$0xf] }
 0x15a   :  { %v7363_v58 = vor.u32 %v9430_v43, %v7362_v41  ;;  %v7586_v61 = vld [vmem:[#allocation5 + $0xa90] sm:$0xf]  ;;  %3053 = vmatpush.bf16.msrb.mxu0 %v6407_v46  ;;  %3027 = vmatpush.bf16.msrb.mxu1 %v7619_v52  ;;  %v2739_v43 = vadd.f32 %v2738_v36, %v2725_v24  ;;  %v9226_v46 = vld [vmem:[#allocation5 + $0x294] sm:$0xf] }
 0x15b   :  { %v9486_v62 = vld [vmem:[#allocation5 + $0xaac] sm:$0xf0]  ;;  %v6564_v52 = vld [vmem:[#allocation5 + $0x2b0] sm:$0xf0] }
 0x15c   :  { %v7330_v3 = vld [vmem:[#allocation5 + $0x890] sm:$0xf]  ;;  %v7587_v20 = vor.u32 %v9486_v62, %v7586_v61  ;;  %3013 = vmatpush.bf16.msrb.mxu3 %v7363_v58  ;;  %3067 = vmatpush.bf16.msra.mxu2 %v6663_v2  ;;  %v9154_v61 = vld [vmem:[#allocation5 + $0x54] sm:$0xf]  ;;  %v7239_v2 = vor.u32 %v9394_v0, %v7236_v48 }
 0x15d   :  { %v9422_v63 = vld [vmem:[#allocation5 + $0x8ac] sm:$0xf0]  ;;  %v6276_v62 = vld [vmem:[#allocation5 + $0x70] sm:$0xf0] }
 0x15e   :  { %v7331_v13 = vor.u32 %v9422_v63, %v7330_v3  ;;  %v7554_v14 = vld [vmem:[#allocation5 + $0xa50] sm:$0xf]  ;;  %3054 = vmatpush.bf16.msrb.mxu0 %v6375_v5  ;;  %3028 = vmatpush.bf16.msrb.mxu1 %v7587_v20  ;;  %v6567_v3 = vor.u32 %v9226_v46, %v6564_v52  ;;  %v6983_v63 = vor.u32 %v9330_v56, %v6980_v57  ;;  %v9386_v5 = vld [vmem:[#allocation5 + $0x794] sm:$0xf]  ;;  %v2752_v10 = vpop.f32.mrf.mxu0 }
 0x15f   :  { %v9478_v16 = vld [vmem:[#allocation5 + $0xa6c] sm:$0xf0]  ;;  %7796 = vmatmul.msk.bf16.vlgmr.msrb.gmra.mxu2 %vm2557_vm0, %v10267_v50  ;;  %v7204_v7 = vld [vmem:[#allocation5 + $0x7b0] sm:$0xf0]  ;;  %v6279_v20 = vor.u32 %v9154_v61, %v6276_v62 }
 0x160   :  { %v7298_v19 = vld [vmem:[#allocation5 + $0x850] sm:$0xf]  ;;  %v7555_v30 = vor.u32 %v9478_v16, %v7554_v14  ;;  %3014 = vmatpush.bf16.msrb.mxu3 %v7331_v13  ;;  %3068 = vmatpush.bf16.msra.mxu2 %v6631_v18  ;;  %v6532_v11 = vld [vmem:[#allocation5 + $0x270] sm:$0xf0]  ;;  %v2753_v14 = vadd.f32 %v2752_v10, %v2739_v43  ;;  %v7207_v18 = vor.u32 %v9386_v5, %v7204_v7 }
 0x161   :  { %v9414_v22 = vld [vmem:[#allocation5 + $0x86c] sm:$0xf0]  ;;  %v9322_v12 = vld [vmem:[#allocation5 + $0x594] sm:$0xf] }
 0x162   :  { %v7266_v34 = vld [vmem:[#allocation5 + $0x810] sm:$0xf]  ;;  %v7299_v38 = vor.u32 %v9414_v22, %v7298_v19  ;;  %3055 = vmatpush.bf16.msrb.mxu0 %v6343_v27  ;;  %3029 = vmatpush.bf16.msrb.mxu1 %v7555_v30  ;;  %v6948_v13 = vld [vmem:[#allocation5 + $0x5b0] sm:$0xf0]  ;;  %v10344_v24 = vpack.c.bf16 %v2753_v14, %v10317_v47  ;;  %v6535_v27 = vor.u32 %v9218_v4, %v6532_v11 }
 0x163   :  { %v9406_v39 = vld [vmem:[#allocation5 + $0x82c] sm:$0xf0]  ;;  %v9146_v16 = vld [vmem:[#allocation5 + $0x14] sm:$0xf]  ;;  %v6951_v28 = vor.u32 %v9322_v12, %v6948_v13 }
 0x164   :  { %v7522_v40 = vld [vmem:[#allocation5 + $0xa10] sm:$0xf]  ;;  %3015 = vmatpush.bf16.msrb.mxu3 %v7299_v38  ;;  %v7267_v1 = vor.u32 %v9406_v39, %v7266_v34  ;;  %3069 = vmatpush.bf16.msra.mxu2 %v6599_v44  ;;  %v6244_v17 = vld [vmem:[#allocation5 + $0x30] sm:$0xf0]  ;;  %10777 = vst [vmem:[#allocation25_spill] sm:$0xff] %v10344_v24 }
 0x165   :  { %v9470_v41 = vld [vmem:[#allocation5 + $0xa2c] sm:$0xf0]  ;;  %v9458_v19 = vld [vmem:[#allocation5 + $0x9d4] sm:$0xf]  ;;  %v6247_v33 = vor.u32 %v9146_v16, %v6244_v17  ;;  %v8042_v24 = vld [vmem:[#allocation8 + $0x1e0] sm:$0xf] }
 0x166   :  { %v7523_v58 = vor.u32 %v9470_v41, %v7522_v40  ;;  %3056 = vmatpush.bf16.msrb.mxu0 %v6311_v49  ;;  %v7492_v22 = vld [vmem:[#allocation5 + $0x9f0] sm:$0xf0] }
 0x167   :  { %v9210_v29 = vld [vmem:[#allocation5 + $0x214] sm:$0xf]  ;;  %v7495_v39 = vor.u32 %v9458_v19, %v7492_v22 }
 0x168   :  { %3030 = vmatpush.bf16.msrb.mxu1 %v7523_v58  ;;  %3016 = vmatpush.bf16.msrb.mxu3 %v7267_v1  ;;  %v9378_v30 = vld [vmem:[#allocation5 + $0x754] sm:$0xf] }
 0x169   :  { %3070 = vmatpush.bf16.msra.mxu2 %v6567_v3  ;;  %v7172_v32 = vld [vmem:[#allocation5 + $0x770] sm:$0xf0] }
 0x16a   :  { %3057 = vmatpush.bf16.msrb.mxu0 %v6279_v20  ;;  %v6500_v34 = vld [vmem:[#allocation5 + $0x230] sm:$0xf0]  ;;  %v7175_v41 = vor.u32 %v9378_v30, %v7172_v32 }
 0x16b   :  { %v9314_v36 = vld [vmem:[#allocation5 + $0x554] sm:$0xf]  ;;  %3031 = vmatmul.bf16.vlgmr.msrb.gmra.mxu1 %v10273_v42  ;;  %3017 = vmatmul.bf16.vlgmr.msrb.gmra.mxu3 %v10271_v37  ;;  %v6503_v46 = vor.u32 %v9210_v29, %v6500_v34 }
 0x16c   :  { %3093 = vmatpush.bf16.msra.mxu1 %v7239_v2  ;;  %3079 = vmatpush.bf16.msra.mxu3 %v6983_v63  ;;  %v6916_v38 = vld [vmem:[#allocation5 + $0x570] sm:$0xf0] }
 0x16d   :  { %v9522_v40 = vld [vmem:[#allocation5 + $0xbd4] sm:$0xf]  ;;  %3071 = vmatpush.bf16.msra.mxu2 %v6535_v27  ;;  %v6919_v0 = vor.u32 %v9314_v36, %v6916_v38 }
 0x16e   :  { %v7748_v47 = vld [vmem:[#allocation5 + $0xbf0] sm:$0xf0]  ;;  %3058 = vmatpush.bf16.msrb.mxu0 %v6247_v33 }
 0x16f   :  { %v9450_v43 = vld [vmem:[#allocation5 + $0x994] sm:$0xf]  ;;  %v7751_v52 = vor.u32 %v9522_v40, %v7748_v47 }
 0x170   :  { %3094 = vmatpush.bf16.msra.mxu1 %v7207_v18  ;;  %v7460_v44 = vld [vmem:[#allocation5 + $0x9b0] sm:$0xf0]  ;;  %3080 = vmatpush.bf16.msra.mxu3 %v6951_v28 }
 0x171   :  { %v9370_v48 = vld [vmem:[#allocation5 + $0x714] sm:$0xf]  ;;  %v7463_v58 = vor.u32 %v9450_v43, %v7460_v44  ;;  %3072 = vmatpush.bf16.msra.mxu2 %v6503_v46  ;;  %3059 = vmatmul.bf16.vlgmr.msrb.gmra.mxu0 %v10257_v55 }
 0x172   :  { %v7140_v49 = vld [vmem:[#allocation5 + $0x730] sm:$0xf0]  ;;  %3107 = vmatpush.bf16.msra.mxu0 %v7495_v39 }
 0x173   :  { %v9306_v56 = vld [vmem:[#allocation5 + $0x514] sm:$0xf]  ;;  %v7143_v1 = vor.u32 %v9370_v48, %v7140_v49 }
 0x174   :  { %v6884_v57 = vld [vmem:[#allocation5 + $0x530] sm:$0xf0]  ;;  %3095 = vmatpush.bf16.msra.mxu1 %v7175_v41  ;;  %3081 = vmatpush.bf16.msra.mxu3 %v6919_v0 }
 0x175   :  { %v9514_v61 = vld [vmem:[#allocation5 + $0xb94] sm:$0xf]  ;;  %v6887_v63 = vor.u32 %v9306_v56, %v6884_v57  ;;  %3121 = vmatpush.bf16.msrb.mxu2 %v7751_v52 }
 0x176   :  { %v7716_v62 = vld [vmem:[#allocation5 + $0xbb0] sm:$0xf0]  ;;  %3108 = vmatpush.bf16.msra.mxu0 %v7463_v58  ;;  %3073 = vmatmul.bf16.vlgmr.msra.gmra.mxu2 %v10263_v8 }
 0x177   :  { %v9442_v2 = vld [vmem:[#allocation5 + $0x954] sm:$0xf]  ;;  %v7719_v7 = vor.u32 %v9514_v61, %v7716_v62 }
 0x178   :  { %v7428_v3 = vld [vmem:[#allocation5 + $0x970] sm:$0xf0]  ;;  %3096 = vmatpush.bf16.msra.mxu1 %v7143_v1  ;;  %3082 = vmatpush.bf16.msra.mxu3 %v6887_v63  ;;  %v6474_v63 = vld [vmem:[#allocation5 + $0x1d8] sm:$0xf] }
 0x179   :  { %v9362_v4 = vld [vmem:[#allocation5 + $0x6d4] sm:$0xf]  ;;  %v7431_v11 = vor.u32 %v9442_v2, %v7428_v3  ;;  %3122 = vmatpush.bf16.msrb.mxu2 %v7719_v7 }
 0x17a   :  { %v7108_v5 = vld [vmem:[#allocation5 + $0x6f0] sm:$0xf0] }
 0x17b   :  { %v9298_v10 = vld [vmem:[#allocation5 + $0x4d4] sm:$0xf]  ;;  %v7111_v14 = vor.u32 %v9362_v4, %v7108_v5  ;;  %3109 = vmatpush.bf16.msra.mxu0 %v7431_v11  ;;  %v9207_v4 = vld [vmem:[#allocation5 + $0x1f4] sm:$0xf0] }
 0x17c   :  { %v6852_v20 = vld [vmem:[#allocation5 + $0x4f0] sm:$0xf0] }
 0x17d   :  { %v9506_v12 = vld [vmem:[#allocation5 + $0xb54] sm:$0xf]  ;;  %v6855_v18 = vor.u32 %v9298_v10, %v6852_v20  ;;  %3097 = vmatpush.bf16.msra.mxu1 %v7111_v14 }
 0x17e   :  { %v7684_v13 = vld [vmem:[#allocation5 + $0xb70] sm:$0xf0] }
 0x17f   :  { %v9434_v16 = vld [vmem:[#allocation5 + $0x914] sm:$0xf]  ;;  %v7687_v27 = vor.u32 %v9506_v12, %v7684_v13  ;;  %3083 = vmatpush.bf16.msra.mxu3 %v6855_v18 }
 0x180   :  { %v7396_v17 = vld [vmem:[#allocation5 + $0x930] sm:$0xf0] }
 0x181   :  { %v9354_v19 = vld [vmem:[#allocation5 + $0x694] sm:$0xf]  ;;  %v7399_v30 = vor.u32 %v9434_v16, %v7396_v17  ;;  %3123 = vmatpush.bf16.msrb.mxu2 %v7687_v27  ;;  %v6475_v16 = vor.u32 %v9207_v4, %v6474_v63  ;;  %v6730_v17 = vld [vmem:[#allocation5 + $0x3d8] sm:$0xf]  ;;  %v10352_v4 = vpop.f32.mrf.mxu2 }
 0x182   :  { %v7076_v22 = vld [vmem:[#allocation5 + $0x6b0] sm:$0xf0]  ;;  %v6442_v27 = vld [vmem:[#allocation5 + $0x198] sm:$0xf] }
 0x183   :  { %v9290_v28 = vld [vmem:[#allocation5 + $0x494] sm:$0xf]  ;;  %v7079_v34 = vor.u32 %v9354_v19, %v7076_v22  ;;  %3110 = vmatpush.bf16.msra.mxu0 %v7399_v30  ;;  %v9271_v22 = vld [vmem:[#allocation5 + $0x3f4] sm:$0xf0] }
 0x184   :  { %v6820_v29 = vld [vmem:[#allocation5 + $0x4b0] sm:$0xf0]  ;;  %v9255_v63 = vld [vmem:[#allocation5 + $0x374] sm:$0xf0] }
 0x185   :  { %v9498_v32 = vld [vmem:[#allocation5 + $0xb14] sm:$0xf]  ;;  %v6823_v39 = vor.u32 %v9290_v28, %v6820_v29  ;;  %3098 = vmatpush.bf16.msra.mxu1 %v7079_v34  ;;  %v9199_v28 = vld [vmem:[#allocation5 + $0x1b4] sm:$0xf0] }
 0x186   :  { %v7652_v33 = vld [vmem:[#allocation5 + $0xb30] sm:$0xf0] }
 0x187   :  { %v9426_v36 = vld [vmem:[#allocation5 + $0x8d4] sm:$0xf]  ;;  %v7655_v41 = vor.u32 %v9498_v32, %v7652_v33  ;;  %3084 = vmatpush.bf16.msra.mxu3 %v6823_v39  ;;  %v6986_v39 = vld [vmem:[#allocation5 + $0x5d8] sm:$0xf] }
 0x188   :  { %v7364_v38 = vld [vmem:[#allocation5 + $0x8f0] sm:$0xf0] }
 0x189   :  { %v9346_v40 = vld [vmem:[#allocation5 + $0x654] sm:$0xf]  ;;  %v7367_v46 = vor.u32 %v9426_v36, %v7364_v38  ;;  %3124 = vmatpush.bf16.msrb.mxu2 %v7655_v41  ;;  %v6731_v36 = vor.u32 %v9271_v22, %v6730_v17  ;;  %v6443_v38 = vor.u32 %v9199_v28, %v6442_v27  ;;  %v6346_v27 = vld [vmem:[#allocation5 + $0xd8] sm:$0xf] }
 0x18a   :  { %v7044_v47 = vld [vmem:[#allocation5 + $0x670] sm:$0xf0]  ;;  %v9175_v28 = vld [vmem:[#allocation5 + $0xf4] sm:$0xf0] }
 0x18b   :  { %v9282_v43 = vld [vmem:[#allocation5 + $0x454] sm:$0xf]  ;;  %v7047_v49 = vor.u32 %v9346_v40, %v7044_v47  ;;  %3111 = vmatpush.bf16.msra.mxu0 %v7367_v46  ;;  %v9335_v40 = vld [vmem:[#allocation5 + $0x5f4] sm:$0xf0] }
 0x18c   :  { %v6788_v44 = vld [vmem:[#allocation5 + $0x470] sm:$0xf0]  ;;  %v6698_v47 = vld [vmem:[#allocation5 + $0x398] sm:$0xf] }
 0x18d   :  { %v9490_v0 = vld [vmem:[#allocation5 + $0xad4] sm:$0xf]  ;;  %v6791_v58 = vor.u32 %v9282_v43, %v6788_v44  ;;  %3099 = vmatpush.bf16.msra.mxu1 %v7047_v49  ;;  %v9263_v43 = vld [vmem:[#allocation5 + $0x3b4] sm:$0xf0] }
 0x18e   :  { %v7620_v48 = vld [vmem:[#allocation5 + $0xaf0] sm:$0xf0]  ;;  %v6410_v44 = vld [vmem:[#allocation5 + $0x158] sm:$0xf] }
 0x18f   :  { %v9418_v52 = vld [vmem:[#allocation5 + $0x894] sm:$0xf]  ;;  %v7623_v2 = vor.u32 %v9490_v0, %v7620_v48  ;;  %3085 = vmatpush.bf16.msra.mxu3 %v6791_v58  ;;  %v9191_v46 = vld [vmem:[#allocation5 + $0x174] sm:$0xf0]  ;;  %v6699_v58 = vor.u32 %v9263_v43, %v6698_v47  ;;  %v10356_v47 = vpop.f32.mrf.mxu2 }
 0x190   :  { %v7332_v56 = vld [vmem:[#allocation5 + $0x8b0] sm:$0xf0]  ;;  %v6314_v43 = vld [vmem:[#allocation5 + $0x98] sm:$0xf] }
 0x191   :  { %v9274_v57 = vld [vmem:[#allocation5 + $0x414] sm:$0xf]  ;;  %v7335_v5 = vor.u32 %v9418_v52, %v7332_v56  ;;  %3125 = vmatpush.bf16.msrb.mxu2 %v7623_v2  ;;  %v6987_v52 = vor.u32 %v9335_v40, %v6986_v39  ;;  %v7242_v56 = vld [vmem:[#allocation5 + $0x7d8] sm:$0xf] }
 0x192   :  { %v6756_v61 = vld [vmem:[#allocation5 + $0x430] sm:$0xf0]  ;;  %v6602_v39 = vld [vmem:[#allocation5 + $0x2d8] sm:$0xf] }
 0x193   :  { %v9338_v62 = vld [vmem:[#allocation5 + $0x614] sm:$0xf]  ;;  %v6759_v14 = vor.u32 %v9274_v57, %v6756_v61  ;;  %3112 = vmatpush.bf16.msra.mxu0 %v7335_v5  ;;  %v9399_v57 = vld [vmem:[#allocation5 + $0x7f4] sm:$0xf0]  ;;  %v6411_v61 = vor.u32 %v9191_v46, %v6410_v44 }
 0x194   :  { %v7012_v1 = vld [vmem:[#allocation5 + $0x630] sm:$0xf0]  ;;  %v7243_v5 = vor.u32 %v9399_v57, %v7242_v56  ;;  %v9239_v40 = vld [vmem:[#allocation5 + $0x2f4] sm:$0xf0] }
 0x195   :  { %v9482_v3 = vld [vmem:[#allocation5 + $0xa94] sm:$0xf]  ;;  %v7015_v11 = vor.u32 %v9338_v62, %v7012_v1  ;;  %3086 = vmatpush.bf16.msra.mxu3 %v6759_v14  ;;  %v6954_v62 = vld [vmem:[#allocation5 + $0x598] sm:$0xf] }
 0x196   :  { %v7588_v7 = vld [vmem:[#allocation5 + $0xab0] sm:$0xf0]  ;;  %v9327_v1 = vld [vmem:[#allocation5 + $0x5b4] sm:$0xf0] }
 0x197   :  { %v9530_v10 = vld [vmem:[#allocation5 + $0xc14] sm:$0xf]  ;;  %v7591_v18 = vor.u32 %v9482_v3, %v7588_v7  ;;  %3100 = vmatpush.bf16.msra.mxu1 %v7015_v11  ;;  %v6666_v3 = vld [vmem:[#allocation5 + $0x358] sm:$0xf] }
 0x198   :  { %v7780_v20 = vld [vmem:[#allocation5 + $0xc30] sm:$0xf0]  ;;  %3087 = vmatmul.bf16.vlgmr.msra.gmra.mxu3 %v10255_v54  ;;  %v6378_v7 = vld [vmem:[#allocation5 + $0x118] sm:$0xf] }
 0x199   :  { %v9410_v12 = vld [vmem:[#allocation5 + $0x854] sm:$0xf]  ;;  %v7783_v19 = vor.u32 %v9530_v10, %v7780_v20  ;;  %3126 = vmatpush.bf16.msrb.mxu2 %v7591_v18  ;;  %v9183_v10 = vld [vmem:[#allocation5 + $0x134] sm:$0xf0]  ;;  %v6955_v20 = vor.u32 %v9327_v1, %v6954_v62 }
 0x19a   :  { %v7300_v13 = vld [vmem:[#allocation5 + $0x870] sm:$0xf0]  ;;  %3101 = vmatmul.bf16.vlgmr.msra.gmra.mxu1 %v10259_v60  ;;  %v7210_v11 = vld [vmem:[#allocation5 + $0x798] sm:$0xf]  ;;  %v6379_v17 = vor.u32 %v9183_v10, %v6378_v7  ;;  %v10360_v7 = vpop.f32.mrf.mxu0 }
 0x19b   :  { %v7303_v29 = vor.u32 %v9410_v12, %v7300_v13  ;;  %v9474_v30 = vld [vmem:[#allocation5 + $0xa54] sm:$0xf]  ;;  %3149 = vmatpush.bf16.msrb.mxu1 %v6475_v16  ;;  %3142 = vmatpush.bf16.msrb.mxu3 %v7783_v19  ;;  %v9391_v12 = vld [vmem:[#allocation5 + $0x7b4] sm:$0xf0]  ;;  %v6667_v13 = vor.u32 %v9255_v63, %v6666_v3 }
 0x19c   :  { %v7556_v32 = vld [vmem:[#allocation5 + $0xa70] sm:$0xf0]  ;;  %v6922_v14 = vld [vmem:[#allocation5 + $0x558] sm:$0xf]  ;;  %v7211_v22 = vor.u32 %v9391_v12, %v7210_v11 }
 0x19d   :  { %v9402_v33 = vld [vmem:[#allocation5 + $0x814] sm:$0xf]  ;;  %v7559_v41 = vor.u32 %v9474_v30, %v7556_v32  ;;  %3113 = vmatpush.bf16.msra.mxu0 %v7303_v29  ;;  %v9319_v16 = vld [vmem:[#allocation5 + $0x574] sm:$0xf0] }
 0x19e   :  { %v7268_v34 = vld [vmem:[#allocation5 + $0x830] sm:$0xf0]  ;;  %v6634_v18 = vld [vmem:[#allocation5 + $0x318] sm:$0xf]  ;;  %v6923_v29 = vor.u32 %v9319_v16, %v6922_v14 }
 0x19f   :  { %v7271_v0 = vor.u32 %v9402_v33, %v7268_v34  ;;  %v9466_v48 = vld [vmem:[#allocation5 + $0xa14] sm:$0xf]  ;;  %3163 = vmatpush.bf16.msra.mxu3 %v6731_v36  ;;  %3150 = vmatpush.bf16.msrb.mxu1 %v6443_v38  ;;  %v9247_v19 = vld [vmem:[#allocation5 + $0x334] sm:$0xf0]  ;;  %v6347_v38 = vor.u32 %v9175_v28, %v6346_v27 }
 0x1a0   :  { %v7524_v49 = vld [vmem:[#allocation5 + $0xa30] sm:$0xf0]  ;;  %3127 = vmatpush.bf16.msrb.mxu2 %v7559_v41  ;;  %v7178_v30 = vld [vmem:[#allocation5 + $0x758] sm:$0xf]  ;;  %v6635_v33 = vor.u32 %v9247_v19, %v6634_v18 }
 0x1a1   :  { %v7527_v2 = vor.u32 %v9466_v48, %v7524_v49  ;;  %3114 = vmatpush.bf16.msra.mxu0 %v7271_v0  ;;  %v9383_v32 = vld [vmem:[#allocation5 + $0x774] sm:$0xf0]  ;;  %v6603_v49 = vor.u32 %v9239_v40, %v6602_v39 }
 0x1a2   :  { %v6890_v34 = vld [vmem:[#allocation5 + $0x518] sm:$0xf]  ;;  %v7179_v41 = vor.u32 %v9383_v32, %v7178_v30  ;;  %v10362_v30 = vpop.f32.mrf.mxu2 }
 0x1a3   :  { %3164 = vmatpush.bf16.msra.mxu3 %v6699_v58  ;;  %3151 = vmatpush.bf16.msrb.mxu1 %v6411_v61  ;;  %v9311_v36 = vld [vmem:[#allocation5 + $0x534] sm:$0xf0] }
 0x1a4   :  { %3128 = vmatpush.bf16.msrb.mxu2 %v7527_v2  ;;  %3115 = vmatmul.bf16.vlgmr.msra.gmra.mxu0 %v10271_v37  ;;  %v9167_v44 = vld [vmem:[#allocation5 + $0xb4] sm:$0xf0]  ;;  %v6891_v46 = vor.u32 %v9311_v36, %v6890_v34 }
 0x1a5   :  { %3177 = vmatpush.bf16.msrb.mxu0 %v6987_v52  ;;  %v7146_v0 = vld [vmem:[#allocation5 + $0x718] sm:$0xf]  ;;  %v6315_v57 = vor.u32 %v9167_v44, %v6314_v43 }
 0x1a6   :  { %v9375_v48 = vld [vmem:[#allocation5 + $0x734] sm:$0xf0] }
 0x1a7   :  { %3129 = vmatmul.bf16.vlgmr.msrb.gmra.mxu2 %v10273_v42  ;;  %3165 = vmatpush.bf16.msra.mxu3 %v6667_v13  ;;  %v6858_v52 = vld [vmem:[#allocation5 + $0x4d8] sm:$0xf]  ;;  %v7147_v62 = vor.u32 %v9375_v48, %v7146_v0 }
 0x1a8   :  { %3191 = vmatpush.bf16.msra.mxu2 %v7243_v5  ;;  %3152 = vmatpush.bf16.msrb.mxu1 %v6379_v17  ;;  %v9303_v56 = vld [vmem:[#allocation5 + $0x4f4] sm:$0xf0] }
 0x1a9   :  { %3178 = vmatpush.bf16.msrb.mxu0 %v6955_v20  ;;  %v6570_v58 = vld [vmem:[#allocation5 + $0x298] sm:$0xf]  ;;  %7797 = vmatmul.msk.bf16.vlgmr.msrb.gmra.mxu3 %vm2557_vm0, %v10267_v50  ;;  %v6859_v3 = vor.u32 %v9303_v56, %v6858_v52 }
 0x1aa   :  { %v9231_v61 = vld [vmem:[#allocation5 + $0x2b4] sm:$0xf0] }
 0x1ab   :  { %3166 = vmatpush.bf16.msra.mxu3 %v6635_v33  ;;  %v6282_v1 = vld [vmem:[#allocation5 + $0x58] sm:$0xf]  ;;  %v6571_v10 = vor.u32 %v9231_v61, %v6570_v58 }
 0x1ac   :  { %3192 = vmatpush.bf16.msra.mxu2 %v7211_v22  ;;  %3153 = vmatpush.bf16.msrb.mxu1 %v6347_v38  ;;  %v9159_v2 = vld [vmem:[#allocation5 + $0x74] sm:$0xf0] }
 0x1ad   :  { %3179 = vmatpush.bf16.msrb.mxu0 %v6923_v29  ;;  %v7114_v63 = vld [vmem:[#allocation5 + $0x6d8] sm:$0xf]  ;;  %v6283_v12 = vor.u32 %v9159_v2, %v6282_v1  ;;  %v10364_v2 = vpop.f32.mrf.mxu0 }
 0x1ae   :  { %v9367_v5 = vld [vmem:[#allocation5 + $0x6f4] sm:$0xf0] }
 0x1af   :  { %3167 = vmatpush.bf16.msra.mxu3 %v6603_v49  ;;  %v6826_v20 = vld [vmem:[#allocation5 + $0x498] sm:$0xf]  ;;  %v7115_v16 = vor.u32 %v9367_v5, %v7114_v63 }
 0x1b0   :  { %3193 = vmatpush.bf16.msra.mxu2 %v7179_v41  ;;  %v9295_v11 = vld [vmem:[#allocation5 + $0x4b4] sm:$0xf0]  ;;  %3154 = vmatpush.bf16.msrb.mxu1 %v6315_v57 }
 0x1b1   :  { %3180 = vmatpush.bf16.msrb.mxu0 %v6891_v46  ;;  %v6538_v13 = vld [vmem:[#allocation5 + $0x258] sm:$0xf]  ;;  %v6827_v22 = vor.u32 %v9295_v11, %v6826_v20 }
 0x1b2   :  { %v9223_v14 = vld [vmem:[#allocation5 + $0x274] sm:$0xf0] }
 0x1b3   :  { %v6250_v17 = vld [vmem:[#allocation5 + $0x18] sm:$0xf]  ;;  %3168 = vmatpush.bf16.msra.mxu3 %v6571_v10  ;;  %v6539_v32 = vor.u32 %v9223_v14, %v6538_v13 }
 0x1b4   :  { %3194 = vmatpush.bf16.msra.mxu2 %v7147_v62  ;;  %v9151_v18 = vld [vmem:[#allocation5 + $0x34] sm:$0xf0]  ;;  %3155 = vmatpush.bf16.msrb.mxu1 %v6283_v12 }
 0x1b5   :  { %v7082_v19 = vld [vmem:[#allocation5 + $0x698] sm:$0xf]  ;;  %3181 = vmatpush.bf16.msrb.mxu0 %v6859_v3  ;;  %v6251_v36 = vor.u32 %v9151_v18, %v6250_v17  ;;  %v9203_v18 = vld [vmem:[#allocation5 + $0x1dc] sm:$0xf] }
 0x1b6   :  { %v9359_v27 = vld [vmem:[#allocation5 + $0x6b4] sm:$0xf0] }
 0x1b7   :  { %v7498_v28 = vld [vmem:[#allocation5 + $0x9d8] sm:$0xf]  ;;  %v7083_v40 = vor.u32 %v9359_v27, %v7082_v19  ;;  %3169 = vmatpush.bf16.msra.mxu3 %v6539_v32  ;;  %v6476_v19 = vld [vmem:[#allocation5 + $0x1f8] sm:$0xf0] }
 0x1b8   :  { %v9463_v29 = vld [vmem:[#allocation5 + $0x9f4] sm:$0xf0]  ;;  %3195 = vmatpush.bf16.msra.mxu2 %v7115_v16  ;;  %3156 = vmatpush.bf16.msrb.mxu1 %v6251_v36  ;;  %v10366_v16 = vpop.f32.mrf.mxu2  ;;  %v9267_v27 = vld [vmem:[#allocation5 + $0x3dc] sm:$0xf]  ;;  %v10369_v36 = vpop.f32.mrf.mxu1 }
 0x1b9   :  { %v6794_v33 = vld [vmem:[#allocation5 + $0x458] sm:$0xf]  ;;  %v7499_v41 = vor.u32 %v9463_v29, %v7498_v28  ;;  %3182 = vmatpush.bf16.msrb.mxu0 %v6827_v22  ;;  %v6732_v28 = vld [vmem:[#allocation5 + $0x3f8] sm:$0xf0] }
 0x1ba   :  { %v9287_v34 = vld [vmem:[#allocation5 + $0x474] sm:$0xf0] }
 0x1bb   :  { %v6506_v38 = vld [vmem:[#allocation5 + $0x218] sm:$0xf]  ;;  %v6795_v0 = vor.u32 %v9287_v34, %v6794_v33  ;;  %3157 = vmatmul.bf16.vlgmr.msrb.gmra.mxu1 %v10257_v55 }
 0x1bc   :  { %v9215_v39 = vld [vmem:[#allocation5 + $0x234] sm:$0xf0]  ;;  %3196 = vmatpush.bf16.msra.mxu2 %v7083_v40  ;;  %3205 = vmatpush.bf16.msra.mxu1 %v7499_v41  ;;  %v10372_v41 = vpop.f32.mrf.mxu3 }
 0x1bd   :  { %v7754_v43 = vld [vmem:[#allocation5 + $0xbd8] sm:$0xf]  ;;  %v6507_v56 = vor.u32 %v9215_v39, %v6506_v38  ;;  %3183 = vmatpush.bf16.msrb.mxu0 %v6795_v0  ;;  %v6479_v38 = vor.u32 %v9203_v18, %v6476_v19 }
 0x1be   :  { %v9527_v44 = vld [vmem:[#allocation5 + $0xbf4] sm:$0xf0] }
 0x1bf   :  { %v7050_v46 = vld [vmem:[#allocation5 + $0x658] sm:$0xf]  ;;  %v7755_v61 = vor.u32 %v9527_v44, %v7754_v43  ;;  %3170 = vmatpush.bf16.msra.mxu3 %v6507_v56  ;;  %v6735_v43 = vor.u32 %v9267_v27, %v6732_v28  ;;  %v9195_v44 = vld [vmem:[#allocation5 + $0x19c] sm:$0xf] }
 0x1c0   :  { %v9351_v48 = vld [vmem:[#allocation5 + $0x674] sm:$0xf0]  ;;  %v10380_v18 = vpop.f32.mrf.mxu1 }
 0x1c1   :  { %v7466_v49 = vld [vmem:[#allocation5 + $0x998] sm:$0xf]  ;;  %v7051_v3 = vor.u32 %v9351_v48, %v7050_v46  ;;  %v6444_v46 = vld [vmem:[#allocation5 + $0x1b8] sm:$0xf0] }
 0x1c2   :  { %v9455_v52 = vld [vmem:[#allocation5 + $0x9b4] sm:$0xf0]  ;;  %3171 = vmatmul.bf16.vlgmr.msra.gmra.mxu3 %v10263_v8  ;;  %v9259_v48 = vld [vmem:[#allocation5 + $0x39c] sm:$0xf] }
 0x1c3   :  { %v6762_v57 = vld [vmem:[#allocation5 + $0x418] sm:$0xf]  ;;  %v7467_v63 = vor.u32 %v9455_v52, %v7466_v49  ;;  %3219 = vmatpush.bf16.msrb.mxu3 %v7755_v61  ;;  %3197 = vmatpush.bf16.msra.mxu2 %v7051_v3  ;;  %v6700_v49 = vld [vmem:[#allocation5 + $0x3b8] sm:$0xf0] }
 0x1c4   :  { %v9279_v58 = vld [vmem:[#allocation5 + $0x434] sm:$0xf0]  ;;  %v6703_v3 = vor.u32 %v9259_v48, %v6700_v49  ;;  %v10382_v28 = vpop.f32.mrf.mxu3 }
 0x1c5   :  { %v7786_v62 = vld [vmem:[#allocation5 + $0xc18] sm:$0xf]  ;;  %v6763_v11 = vor.u32 %v9279_v58, %v6762_v57  ;;  %3206 = vmatpush.bf16.msra.mxu1 %v7467_v63  ;;  %v6447_v58 = vor.u32 %v9195_v44, %v6444_v46  ;;  %v9187_v63 = vld [vmem:[#allocation5 + $0x15c] sm:$0xf] }
 0x1c6   :  { %v9535_v1 = vld [vmem:[#allocation5 + $0xc34] sm:$0xf0] }
 0x1c7   :  { %v7722_v5 = vld [vmem:[#allocation5 + $0xb98] sm:$0xf]  ;;  %v7787_v17 = vor.u32 %v9535_v1, %v7786_v62  ;;  %3184 = vmatpush.bf16.msrb.mxu0 %v6763_v11  ;;  %v10375_v1 = vpop.f32.mrf.mxu0  ;;  %v6668_v11 = vld [vmem:[#allocation5 + $0x378] sm:$0xf0] }
 0x1c8   :  { %v9519_v10 = vld [vmem:[#allocation5 + $0xbb4] sm:$0xf0] }
 0x1c9   :  { %v7018_v20 = vld [vmem:[#allocation5 + $0x618] sm:$0xf]  ;;  %v7723_v22 = vor.u32 %v9519_v10, %v7722_v5  ;;  %v6412_v5 = vld [vmem:[#allocation5 + $0x178] sm:$0xf0] }
 0x1ca   :  { %v9343_v12 = vld [vmem:[#allocation5 + $0x634] sm:$0xf0]  ;;  %3185 = vmatmul.bf16.vlgmr.msrb.gmra.mxu0 %v10255_v54  ;;  %v6415_v19 = vor.u32 %v9187_v63, %v6412_v5 }
 0x1cb   :  { %v7434_v13 = vld [vmem:[#allocation5 + $0x958] sm:$0xf]  ;;  %v7019_v29 = vor.u32 %v9343_v12, %v7018_v20  ;;  %3240 = vmatpush.bf16.msra.mxu0 %v7787_v17  ;;  %3220 = vmatpush.bf16.msrb.mxu3 %v7723_v22  ;;  %v9251_v20 = vld [vmem:[#allocation5 + $0x35c] sm:$0xf]  ;;  %v10378_v12 = vpop.f32.mrf.mxu2 }
 0x1cc   :  { %v9447_v14 = vld [vmem:[#allocation5 + $0x974] sm:$0xf0] }
 0x1cd   :  { %v7435_v32 = vor.u32 %v9447_v14, %v7434_v13  ;;  %v7690_v33 = vld [vmem:[#allocation5 + $0xb58] sm:$0xf]  ;;  %3198 = vmatpush.bf16.msra.mxu2 %v7019_v29  ;;  %v6671_v29 = vor.u32 %v9251_v20, %v6668_v11 }
 0x1ce   :  { %v9511_v34 = vld [vmem:[#allocation5 + $0xb74] sm:$0xf0] }
 0x1cf   :  { %v7402_v39 = vld [vmem:[#allocation5 + $0x918] sm:$0xf]  ;;  %v7691_v0 = vor.u32 %v9511_v34, %v7690_v33  ;;  %3207 = vmatpush.bf16.msra.mxu1 %v7435_v32  ;;  %3261 = vmatpush.bf16.msrb.mxu0 %v6735_v43  ;;  %v9179_v32 = vld [vmem:[#allocation5 + $0x11c] sm:$0xf]  ;;  %v10384_v49 = vpop.f32.mrf.mxu0 }
 0x1d0   :  { %v9439_v40 = vld [vmem:[#allocation5 + $0x934] sm:$0xf0]  ;;  %3199 = vmatmul.bf16.vlgmr.msra.gmra.mxu2 %v10259_v60  ;;  %v6380_v33 = vld [vmem:[#allocation5 + $0x138] sm:$0xf0]  ;;  %10778 = vst [vmem:[#allocation26_spill] sm:$0xff] %v10384_v49 }
 0x1d1   :  { %v7403_v52 = vor.u32 %v9439_v40, %v7402_v39  ;;  %v7658_v56 = vld [vmem:[#allocation5 + $0xb18] sm:$0xf]  ;;  %3247 = vmatpush.bf16.msrb.mxu2 %v6479_v38  ;;  %3221 = vmatpush.bf16.msrb.mxu3 %v7691_v0  ;;  %v9243_v38 = vld [vmem:[#allocation5 + $0x31c] sm:$0xf]  ;;  %v6383_v46 = vor.u32 %v9179_v32, %v6380_v33 }
 0x1d2   :  { %v9503_v57 = vld [vmem:[#allocation5 + $0xb34] sm:$0xf0]  ;;  %v6636_v39 = vld [vmem:[#allocation5 + $0x338] sm:$0xf0] }
 0x1d3   :  { %v7370_v61 = vld [vmem:[#allocation5 + $0x8d8] sm:$0xf]  ;;  %v7659_v10 = vor.u32 %v9503_v57, %v7658_v56  ;;  %3208 = vmatpush.bf16.msra.mxu1 %v7403_v52  ;;  %3262 = vmatpush.bf16.msrb.mxu0 %v6703_v3  ;;  %v6639_v52 = vor.u32 %v9243_v38, %v6636_v39  ;;  %v9171_v56 = vld [vmem:[#allocation5 + $0xdc] sm:$0xf]  ;;  %v10386_v3 = vpop.f32.mrf.mxu2  ;;  %v10390_v38 = vpop.f32.mrf.mxu3 }
 0x1d4   :  { %v9431_v62 = vld [vmem:[#allocation5 + $0x8f4] sm:$0xf0]  ;;  %v6348_v57 = vld [vmem:[#allocation5 + $0xf8] sm:$0xf0] }
 0x1d5   :  { %v7371_v13 = vor.u32 %v9431_v62, %v7370_v61  ;;  %v7626_v14 = vld [vmem:[#allocation5 + $0xad8] sm:$0xf]  ;;  %3248 = vmatpush.bf16.msrb.mxu2 %v6447_v58  ;;  %3222 = vmatpush.bf16.msrb.mxu3 %v7659_v10  ;;  %v9235_v61 = vld [vmem:[#allocation5 + $0x2dc] sm:$0xf]  ;;  %v6351_v20 = vor.u32 %v9171_v56, %v6348_v57 }
 0x1d6   :  { %v9495_v17 = vld [vmem:[#allocation5 + $0xaf4] sm:$0xf0]  ;;  %v6604_v62 = vld [vmem:[#allocation5 + $0x2f8] sm:$0xf0] }
 0x1d7   :  { %v7338_v22 = vld [vmem:[#allocation5 + $0x898] sm:$0xf]  ;;  %v7627_v34 = vor.u32 %v9495_v17, %v7626_v14  ;;  %3209 = vmatpush.bf16.msra.mxu1 %v7371_v13  ;;  %3263 = vmatpush.bf16.msrb.mxu0 %v6671_v29  ;;  %v9163_v14 = vld [vmem:[#allocation5 + $0x9c] sm:$0xf]  ;;  %v6607_v17 = vor.u32 %v9235_v61, %v6604_v62  ;;  %v10388_v29 = vpop.f32.mrf.mxu1 }
 0x1d8   :  { %v9423_v27 = vld [vmem:[#allocation5 + $0x8b4] sm:$0xf0]  ;;  %v9227_v33 = vld [vmem:[#allocation5 + $0x29c] sm:$0xf] }
 0x1d9   :  { %v7339_v40 = vor.u32 %v9423_v27, %v7338_v22  ;;  %v7594_v43 = vld [vmem:[#allocation5 + $0xa98] sm:$0xf]  ;;  %3249 = vmatpush.bf16.msrb.mxu2 %v6415_v19  ;;  %3223 = vmatpush.bf16.msrb.mxu3 %v7627_v34  ;;  %v6316_v19 = vld [vmem:[#allocation5 + $0xb8] sm:$0xf0] }
 0x1da   :  { %v9487_v44 = vld [vmem:[#allocation5 + $0xab4] sm:$0xf0]  ;;  %v9331_v22 = vld [vmem:[#allocation5 + $0x5dc] sm:$0xf]  ;;  %7798 = vmatmul.msk.bf16.vlgmr.msra.gmra.mxu0 %vm2557_vm0, %v10267_v50 }
 0x1db   :  { %v7306_v0 = vld [vmem:[#allocation5 + $0x858] sm:$0xf]  ;;  %v7595_v58 = vor.u32 %v9487_v44, %v7594_v43  ;;  %3210 = vmatpush.bf16.msra.mxu1 %v7339_v40  ;;  %3264 = vmatpush.bf16.msrb.mxu0 %v6639_v52  ;;  %v6988_v27 = vld [vmem:[#allocation5 + $0x5f8] sm:$0xf0]  ;;  %v6319_v44 = vor.u32 %v9163_v14, %v6316_v19 }
 0x1dc   :  { %v9415_v48 = vld [vmem:[#allocation5 + $0x874] sm:$0xf0]  ;;  %v6572_v34 = vld [vmem:[#allocation5 + $0x2b8] sm:$0xf0] }
 0x1dd   :  { %v7307_v63 = vor.u32 %v9415_v48, %v7306_v0  ;;  %v7562_v5 = vld [vmem:[#allocation5 + $0xa58] sm:$0xf]  ;;  %3250 = vmatpush.bf16.msrb.mxu2 %v6383_v46  ;;  %3224 = vmatpush.bf16.msrb.mxu3 %v7595_v58  ;;  %v6991_v46 = vor.u32 %v9331_v22, %v6988_v27  ;;  %v9395_v0 = vld [vmem:[#allocation5 + $0x7dc] sm:$0xf]  ;;  %v6575_v56 = vor.u32 %v9227_v33, %v6572_v34 }
 0x1de   :  { %v9479_v10 = vld [vmem:[#allocation5 + $0xa74] sm:$0xf0]  ;;  %v7244_v48 = vld [vmem:[#allocation5 + $0x7f8] sm:$0xf0] }
 0x1df   :  { %v7274_v11 = vld [vmem:[#allocation5 + $0x818] sm:$0xf]  ;;  %v7563_v32 = vor.u32 %v9479_v10, %v7562_v5  ;;  %3211 = vmatpush.bf16.msra.mxu1 %v7307_v63  ;;  %v9155_v52 = vld [vmem:[#allocation5 + $0x5c] sm:$0xf]  ;;  %3265 = vmatpush.bf16.msrb.mxu0 %v6607_v17  ;;  %v10394_v10 = vpop.f32.mrf.mxu0 }
 0x1e0   :  { %v9407_v13 = vld [vmem:[#allocation5 + $0x834] sm:$0xf0]  ;;  %v6284_v57 = vld [vmem:[#allocation5 + $0x78] sm:$0xf0]  ;;  %10779 = vst [vmem:[#allocation27_spill] sm:$0xff] %v10394_v10 }
 0x1e1   :  { %v7275_v39 = vor.u32 %v9407_v13, %v7274_v11  ;;  %v7530_v40 = vld [vmem:[#allocation5 + $0xa18] sm:$0xf]  ;;  %3251 = vmatpush.bf16.msrb.mxu2 %v6351_v20  ;;  %v9323_v58 = vld [vmem:[#allocation5 + $0x59c] sm:$0xf]  ;;  %3225 = vmatpush.bf16.msrb.mxu3 %v7563_v32  ;;  %v10396_v20 = vpop.f32.mrf.mxu2  ;;  %v7247_v11 = vor.u32 %v9395_v0, %v7244_v48  ;;  %v6287_v14 = vor.u32 %v9155_v52, %v6284_v57 }
 0x1e2   :  { %v9471_v43 = vld [vmem:[#allocation5 + $0xa34] sm:$0xf0]  ;;  %v6956_v61 = vld [vmem:[#allocation5 + $0x5b8] sm:$0xf0] }
 0x1e3   :  { %v7531_v62 = vor.u32 %v9471_v43, %v7530_v40  ;;  %v9219_v63 = vld [vmem:[#allocation5 + $0x25c] sm:$0xf]  ;;  %3212 = vmatpush.bf16.msra.mxu1 %v7275_v39  ;;  %v6959_v19 = vor.u32 %v9323_v58, %v6956_v61  ;;  %3266 = vmatpush.bf16.msrb.mxu0 %v6575_v56  ;;  %v10398_v43 = vpop.f32.mrf.mxu1 }
 0x1e4   :  { %v6540_v5 = vld [vmem:[#allocation5 + $0x278] sm:$0xf0] }
 0x1e5   :  { %v9387_v13 = vld [vmem:[#allocation5 + $0x79c] sm:$0xf]  ;;  %3252 = vmatpush.bf16.msrb.mxu2 %v6319_v44  ;;  %v6543_v33 = vor.u32 %v9219_v63, %v6540_v5  ;;  %3226 = vmatpush.bf16.msrb.mxu3 %v7531_v62  ;;  %v10401_v44 = vpop.f32.mrf.mxu3 }
 0x1e6   :  { %v7212_v17 = vld [vmem:[#allocation5 + $0x7b8] sm:$0xf0]  ;;  %3213 = vmatmul.bf16.vlgmr.msra.gmra.mxu1 %v10271_v37  ;;  %10780 = vst [vmem:[#allocation28_spill] sm:$0xff] %v10401_v44  ;;  %v9566_v44 = vld [vmem:[#allocation8 + $0xec] sm:$0xf0] }
 0x1e7   :  { %3275 = vmatpush.bf16.msrb.mxu1 %v6991_v46  ;;  %v9147_v22 = vld [vmem:[#allocation5 + $0x1c] sm:$0xf]  ;;  %v7215_v46 = vor.u32 %v9387_v13, %v7212_v17  ;;  %3267 = vmatpush.bf16.msrb.mxu0 %v6543_v33 }
 0x1e8   :  { %v6252_v27 = vld [vmem:[#allocation5 + $0x38] sm:$0xf0]  ;;  %3227 = vmatmul.bf16.vlgmr.msrb.gmra.mxu3 %v10273_v42 }
 0x1e9   :  { %v9211_v32 = vld [vmem:[#allocation5 + $0x21c] sm:$0xf]  ;;  %3289 = vmatpush.bf16.msra.mxu3 %v7247_v11  ;;  %3253 = vmatpush.bf16.msrb.mxu2 %v6287_v14  ;;  %v6255_v56 = vor.u32 %v9147_v22, %v6252_v27  ;;  %v6895_v14 = vor.u32 %v9307_v51, %v6892_v15  ;;  %v10404_v27 = vpop.f32.mrf.mxu0  ;;  %v10406_v33 = vpop.f32.mrf.mxu2 }
 0x1ea   :  { %v9315_v34 = vld [vmem:[#allocation5 + $0x55c] sm:$0xf]  ;;  %10781 = vst [vmem:[#allocation29_spill] sm:$0xff] %v10406_v33 }
 0x1eb   :  { %v6924_v40 = vld [vmem:[#allocation5 + $0x578] sm:$0xf0]  ;;  %3276 = vmatpush.bf16.msrb.mxu1 %v6959_v19 }
 0x1ec   :  { %v6508_v39 = vld [vmem:[#allocation5 + $0x238] sm:$0xf0]  ;;  %v6927_v58 = vor.u32 %v9315_v34, %v6924_v40 }
 0x1ed   :  { %v9459_v0 = vld [vmem:[#allocation5 + $0x9dc] sm:$0xf]  ;;  %v6511_v5 = vor.u32 %v9211_v32, %v6508_v39  ;;  %3290 = vmatpush.bf16.msra.mxu3 %v7215_v46  ;;  %3254 = vmatpush.bf16.msrb.mxu2 %v6255_v56 }
 0x1ee   :  { %v7500_v48 = vld [vmem:[#allocation5 + $0x9f8] sm:$0xf0] }
 0x1ef   :  { %v9523_v52 = vld [vmem:[#allocation5 + $0xbdc] sm:$0xf]  ;;  %v7503_v62 = vor.u32 %v9459_v0, %v7500_v48  ;;  %3277 = vmatpush.bf16.msrb.mxu1 %v6927_v58  ;;  %3268 = vmatpush.bf16.msrb.mxu0 %v6511_v5 }
 0x1f0   :  { %v7756_v57 = vld [vmem:[#allocation5 + $0xbf8] sm:$0xf0]  ;;  %3255 = vmatmul.bf16.vlgmr.msrb.gmra.mxu2 %v10257_v55 }
 0x1f1   :  { %v9379_v61 = vld [vmem:[#allocation5 + $0x75c] sm:$0xf]  ;;  %v7759_v49 = vor.u32 %v9523_v52, %v7756_v57  ;;  %3303 = vmatpush.bf16.msra.mxu2 %v7503_v62  ;;  %v10409_v52 = vpop.f32.mrf.mxu1 }
 0x1f2   :  { %v7180_v63 = vld [vmem:[#allocation5 + $0x778] sm:$0xf0]  ;;  %3269 = vmatmul.bf16.vlgmr.msrb.gmra.mxu0 %v10263_v8  ;;  %v10783_v8 = vperm.slane %v10293_v6, 1 }
 0x1f3   :  { %v9451_v50 = vld [vmem:[#allocation5 + $0x99c] sm:$0xf]  ;;  %v7183_v11 = vor.u32 %v9379_v61, %v7180_v63  ;;  %3317 = vmatpush.bf16.msra.mxu0 %v7759_v49  ;;  %3278 = vmatpush.bf16.msrb.mxu1 %v6895_v14 }
 0x1f4   :  { %v7468_v10 = vld [vmem:[#allocation5 + $0x9b8] sm:$0xf0] }
 0x1f5   :  { %v9515_v13 = vld [vmem:[#allocation5 + $0xb9c] sm:$0xf]  ;;  %v7471_v32 = vor.u32 %v9451_v50, %v7468_v10  ;;  %3291 = vmatpush.bf16.msra.mxu3 %v7183_v11  ;;  %v10412_v50 = vpop.f32.mrf.mxu3 }
 0x1f6   :  { %v7724_v17 = vld [vmem:[#allocation5 + $0xbb8] sm:$0xf0] }
 0x1f7   :  { %v9371_v19 = vld [vmem:[#allocation5 + $0x71c] sm:$0xf]  ;;  %v7727_v39 = vor.u32 %v9515_v13, %v7724_v17  ;;  %3304 = vmatpush.bf16.msra.mxu2 %v7471_v32  ;;  %v10782_v17 = vperm.slane %v10293_v6, 0 }
 0x1f8   :  { %v7148_v22 = vld [vmem:[#allocation5 + $0x738] sm:$0xf0] }
 0x1f9   :  { %v9299_v34 = vld [vmem:[#allocation5 + $0x4dc] sm:$0xf]  ;;  %v7151_v46 = vor.u32 %v9371_v19, %v7148_v22  ;;  %3318 = vmatpush.bf16.msra.mxu0 %v7727_v39  ;;  %v2573_v14 = vadd.f32 %v10304_v53, %v10782_v17  ;;  %v2671_v19 = vadd.f32 %v10332_v31, %v10783_v8 }
 0x1fa   :  { %v6860_v40 = vld [vmem:[#allocation5 + $0x4f8] sm:$0xf0] }
 0x1fb   :  { %v9443_v0 = vld [vmem:[#allocation5 + $0x95c] sm:$0xf]  ;;  %v6863_v57 = vor.u32 %v9299_v34, %v6860_v40  ;;  %3292 = vmatpush.bf16.msra.mxu3 %v7151_v46 }
 0x1fc   :  { %v7436_v48 = vld [vmem:[#allocation5 + $0x978] sm:$0xf0] }
 0x1fd   :  { %v9507_v15 = vld [vmem:[#allocation5 + $0xb5c] sm:$0xf]  ;;  %v7439_v49 = vor.u32 %v9443_v0, %v7436_v48  ;;  %3279 = vmatpush.bf16.msrb.mxu1 %v6863_v57  ;;  %v2587_v57 = vadd.f32 %v10307_v59, %v2573_v14  ;;  %v10430_v14 = vld [vmem:[#allocation7] sm:$0xff] }
 0x1fe   :  { %v7692_v51 = vld [vmem:[#allocation5 + $0xb78] sm:$0xf0]  ;;  %10785 = vst [vmem:[#allocation31_spill] sm:$0xff] %v10430_v14 }
 0x1ff   :  { %v9363_v56 = vld [vmem:[#allocation5 + $0x6dc] sm:$0xf]  ;;  %v7695_v63 = vor.u32 %v9507_v15, %v7692_v51  ;;  %3305 = vmatpush.bf16.msra.mxu2 %v7439_v49  ;;  %v10420_v51 = vpop.f32.mrf.mxu0  ;;  %v10426_v49 = vpop.f32.mrf.mxu1 }
 0x200   :  { %v7116_v58 = vld [vmem:[#allocation5 + $0x6f8] sm:$0xf0] }
 0x201   :  { %v9291_v10 = vld [vmem:[#allocation5 + $0x49c] sm:$0xf]  ;;  %v7119_v62 = vor.u32 %v9363_v56, %v7116_v58  ;;  %3319 = vmatpush.bf16.msra.mxu0 %v7695_v63  ;;  %v10422_v56 = vpop.f32.mrf.mxu2  ;;  %v2685_v58 = vadd.f32 %v10336_v45, %v2671_v19  ;;  %v583_v45 = vperm.slane %v10430_v14, 2  ;;  %v584_v19 = vperm.slane %v10430_v14, 3 }
 0x202   :  { %v6828_v61 = vld [vmem:[#allocation5 + $0x4b8] sm:$0xf0]  ;;  %10784 = vst [vmem:[#allocation30_spill] sm:$0xff] %v10422_v56  ;;  %v9598_v56 = vld [vmem:[#allocation8 + $0x1ec] sm:$0xf0] }
 0x203   :  { %v9435_v5 = vld [vmem:[#allocation5 + $0x91c] sm:$0xf]  ;;  %v6831_v22 = vor.u32 %v9291_v10, %v6828_v61  ;;  %3293 = vmatpush.bf16.msra.mxu3 %v7119_v62  ;;  %v2769_v14 = vadd.f32 %v10388_v29, %v583_v45 }
 0x204   :  { %v7404_v55 = vld [vmem:[#allocation5 + $0x938] sm:$0xf0] }
 0x205   :  { %v9499_v11 = vld [vmem:[#allocation5 + $0xb1c] sm:$0xf]  ;;  %v7407_v40 = vor.u32 %v9435_v5, %v7404_v55  ;;  %3280 = vmatpush.bf16.msrb.mxu1 %v6831_v22  ;;  %v10428_v5 = vpop.f32.mrf.mxu3 }
 0x206   :  { %v7660_v13 = vld [vmem:[#allocation5 + $0xb38] sm:$0xf0] }
 0x207   :  { %v9355_v32 = vld [vmem:[#allocation5 + $0x69c] sm:$0xf]  ;;  %v7663_v48 = vor.u32 %v9499_v11, %v7660_v13  ;;  %3306 = vmatpush.bf16.msra.mxu2 %v7407_v40  ;;  %v2601_v40 = vadd.f32 %v10302_v21, %v2587_v57  ;;  %v2867_v21 = vadd.f32 %v10378_v12, %v584_v19  ;;  %v9562_v12 = vld [vmem:[#allocation8 + $0xcc] sm:$0xf0] }
 0x208   :  { %v7084_v34 = vld [vmem:[#allocation5 + $0x6b8] sm:$0xf0] }
 0x209   :  { %v9283_v39 = vld [vmem:[#allocation5 + $0x45c] sm:$0xf]  ;;  %v7087_v6 = vor.u32 %v9355_v32, %v7084_v34  ;;  %3320 = vmatpush.bf16.msra.mxu0 %v7663_v48 }
 0x20a   :  { %v6796_v0 = vld [vmem:[#allocation5 + $0x478] sm:$0xf0] }
 0x20b   :  { %v9427_v46 = vld [vmem:[#allocation5 + $0x8dc] sm:$0xf]  ;;  %v6799_v10 = vor.u32 %v9283_v39, %v6796_v0  ;;  %3294 = vmatpush.bf16.msra.mxu3 %v7087_v6  ;;  %v2699_v0 = vadd.f32 %v10339_v26, %v2685_v58  ;;  %v10438_v26 = vpop.f32.mrf.mxu0 }
 0x20c   :  { %v7372_v15 = vld [vmem:[#allocation5 + $0x8f8] sm:$0xf0] }
 0x20d   :  { %v9491_v53 = vld [vmem:[#allocation5 + $0xadc] sm:$0xf]  ;;  %v7375_v55 = vor.u32 %v9427_v46, %v7372_v15  ;;  %3281 = vmatpush.bf16.msrb.mxu1 %v6799_v10 }
 0x20e   :  { %v7628_v31 = vld [vmem:[#allocation5 + $0xaf8] sm:$0xf0] }
 0x20f   :  { %v9347_v61 = vld [vmem:[#allocation5 + $0x65c] sm:$0xf]  ;;  %v7631_v17 = vor.u32 %v9491_v53, %v7628_v31  ;;  %v7914_v53 = vld [vmem:[#allocation8 + $0xe0] sm:$0xf]  ;;  %3307 = vmatpush.bf16.msra.mxu2 %v7375_v55  ;;  %v2615_v55 = vadd.f32 %v10312_v25, %v2601_v40 }
 0x210   :  { %v7052_v63 = vld [vmem:[#allocation5 + $0x678] sm:$0xf0] }
 0x211   :  { %v9275_v11 = vld [vmem:[#allocation5 + $0x41c] sm:$0xf]  ;;  %v7055_v22 = vor.u32 %v9347_v61, %v7052_v63  ;;  %3321 = vmatpush.bf16.msra.mxu0 %v7631_v17  ;;  %v7898_v17 = vld [vmem:[#allocation8 + $0xc0] sm:$0xf] }
 0x212   :  { %v6764_v13 = vld [vmem:[#allocation5 + $0x438] sm:$0xf0] }
 0x213   :  { %v9419_v62 = vld [vmem:[#allocation5 + $0x89c] sm:$0xf]  ;;  %v6767_v48 = vor.u32 %v9275_v11, %v6764_v13  ;;  %3295 = vmatpush.bf16.msra.mxu3 %v7055_v22  ;;  %v2713_v11 = vadd.f32 %v10369_v36, %v2699_v0  ;;  %v7915_v13 = vor.u32 %v9566_v44, %v7914_v53  ;;  %v2629_v22 = vadd.f32 %v10326_v9, %v2615_v55  ;;  %v2908_v0 = vpop.f32.mrf.mxu3  ;;  %v8170_v9 = vld [vmem:[#allocation8 + $0x2e0] sm:$0xf]  ;;  %v9626_v55 = vld [vmem:[#allocation8 + $0x2cc] sm:$0xf0] }
 0x214   :  { %v7340_v8 = vld [vmem:[#allocation5 + $0x8b8] sm:$0xf0]  ;;  %v8298_v53 = vld [vmem:[#allocation8 + $0x3e0] sm:$0xf] }
 0x215   :  { %v9531_v32 = vld [vmem:[#allocation5 + $0xc1c] sm:$0xf]  ;;  %v7343_v31 = vor.u32 %v9419_v62, %v7340_v8  ;;  %3282 = vmatpush.bf16.msrb.mxu1 %v6767_v48  ;;  %v8043_v62 = vor.u32 %v9598_v56, %v8042_v24  ;;  %v10442_v8 = vpop.f32.mrf.mxu2  ;;  %v2783_v24 = vadd.f32 %v10390_v38, %v2769_v14  ;;  %v2865_v56 = vadd.f32 %v10366_v16, %v584_v19  ;;  %v7882_v14 = vld [vmem:[#allocation8 + $0xa0] sm:$0xf] }
 0x216   :  { %v7788_v59 = vld [vmem:[#allocation5 + $0xc38] sm:$0xf0] }
 0x217   :  { %v9483_v34 = vld [vmem:[#allocation5 + $0xa9c] sm:$0xf]  ;;  %v7791_v33 = vor.u32 %v9531_v32, %v7788_v59  ;;  %3308 = vmatpush.bf16.msra.mxu2 %v7343_v31  ;;  %v8026_v32 = vld [vmem:[#allocation8 + $0x1c0] sm:$0xf]  ;;  %v9594_v59 = vld [vmem:[#allocation8 + $0x1cc] sm:$0xf0] }
 0x218   :  { %v7596_v39 = vld [vmem:[#allocation5 + $0xab8] sm:$0xf0]  ;;  %3283 = vmatmul.bf16.vlgmr.msrb.gmra.mxu1 %v10255_v54  ;;  %v9662_v31 = vld [vmem:[#allocation8 + $0x3ec] sm:$0xf0] }
 0x219   :  { %v9339_v46 = vld [vmem:[#allocation5 + $0x61c] sm:$0xf]  ;;  %v7599_v6 = vor.u32 %v9483_v34, %v7596_v39  ;;  %3338 = vmatpush.bf16.msra.mxu1 %v7791_v33  ;;  %v2767_v34 = vadd.f32 %v10380_v18, %v583_v45  ;;  %v2894_v39 = vpop.f32.mrf.mxu1  ;;  %v2881_v33 = vadd.f32 %v10420_v51, %v2867_v21  ;;  %v2727_v18 = vadd.f32 %v10372_v41, %v2713_v11  ;;  %v9558_v51 = vld [vmem:[#allocation8 + $0xac] sm:$0xf0] }
 0x21a   :  { %v7020_v15 = vld [vmem:[#allocation5 + $0x638] sm:$0xf0]  ;;  %v7899_v45 = vor.u32 %v9562_v12, %v7898_v17  ;;  %v9590_v41 = vld [vmem:[#allocation8 + $0x1ac] sm:$0xf0]  ;;  %v2879_v21 = vadd.f32 %v10404_v27, %v2865_v56  ;;  %v2643_v11 = vadd.f32 %v10330_v23, %v2629_v22  ;;  %v7866_v12 = vld [vmem:[#allocation8 + $0x80] sm:$0xf] }
 0x21b   :  { %v9411_v61 = vld [vmem:[#allocation5 + $0x85c] sm:$0xf]  ;;  %v7023_v57 = vor.u32 %v9339_v46, %v7020_v15  ;;  %3322 = vmatpush.bf16.msra.mxu0 %v7599_v6  ;;  %v9630_v46 = vld [vmem:[#allocation8 + $0x2ec] sm:$0xf0]  ;;  %v8027_v15 = vor.u32 %v9594_v59, %v8026_v32  ;;  %v2895_v38 = vadd.f32 %v2894_v39, %v2881_v33  ;;  %v2781_v19 = vadd.f32 %v10382_v28, %v2767_v34  ;;  %v8266_v56 = vld [vmem:[#allocation8 + $0x3a0] sm:$0xf] }
 0x21c   :  { %v7308_v63 = vld [vmem:[#allocation5 + $0x878] sm:$0xf0]  ;;  %v8171_v6 = vor.u32 %v9630_v46, %v8170_v9  ;;  %v7883_v28 = vor.u32 %v9558_v51, %v7882_v14  ;;  %v2893_v17 = vadd.f32 %v10426_v49, %v2879_v21  ;;  %v9554_v27 = vld [vmem:[#allocation8 + $0x8c] sm:$0xf0]  ;;  %v7850_v33 = vld [vmem:[#allocation8 + $0x60] sm:$0xf] }
 0x21d   :  { %v9475_v58 = vld [vmem:[#allocation5 + $0xa5c] sm:$0xf]  ;;  %v7311_v29 = vor.u32 %v9411_v61, %v7308_v63  ;;  %3296 = vmatpush.bf16.msra.mxu3 %v7023_v57  ;;  %4993 = vmatpush.bf16.msrb.mxu1 %v8043_v62  ;;  %v8010_v61 = vld [vmem:[#allocation8 + $0x1a0] sm:$0xf]  ;;  %v2797_v63 = vadd.f32 %v10375_v1, %v2783_v24  ;;  %v2909_v57 = vadd.f32 %v2908_v0, %v2895_v38  ;;  %v9658_v62 = vld [vmem:[#allocation8 + $0x3cc] sm:$0xf0] }
 0x21e   :  { %v7564_v10 = vld [vmem:[#allocation5 + $0xa78] sm:$0xf0]  ;;  %v8011_v1 = vor.u32 %v9590_v41, %v8010_v61  ;;  %v2795_v59 = vadd.f32 %v10364_v2, %v2781_v19  ;;  %v9586_v22 = vld [vmem:[#allocation8 + $0x18c] sm:$0xf0]  ;;  %v2907_v39 = vadd.f32 %v10428_v5, %v2893_v17  ;;  %v2657_v2 = vadd.f32 %v10315_v35, %v2643_v11  ;;  %v7978_v46 = vld [vmem:[#allocation8 + $0x160] sm:$0xf] }
 0x21f   :  { %v7567_v25 = vor.u32 %v9475_v58, %v7564_v10  ;;  %v9403_v36 = vld [vmem:[#allocation5 + $0x81c] sm:$0xf]  ;;  %3309 = vmatpush.bf16.msra.mxu2 %v7311_v29  ;;  %v8299_v58 = vor.u32 %v9662_v31, %v8298_v53  ;;  %v8154_v10 = vld [vmem:[#allocation8 + $0x2c0] sm:$0xf]  ;;  %v2936_v29 = vpop.f32.mrf.mxu0  ;;  %v2811_v34 = vadd.f32 %v10362_v30, %v2797_v63  ;;  %v2923_v49 = vadd.f32 %v10396_v20, %v2909_v57  ;;  %v9654_v30 = vld [vmem:[#allocation8 + $0x3ac] sm:$0xf0] }
 0x220   :  { %v7276_v40 = vld [vmem:[#allocation5 + $0x838] sm:$0xf0]  ;;  %3297 = vmatmul.bf16.vlgmr.msra.gmra.mxu3 %v10259_v60  ;;  %v8282_v60 = vld [vmem:[#allocation8 + $0x3c0] sm:$0xf]  ;;  %v8155_v23 = vor.u32 %v9626_v55, %v8154_v10  ;;  %v7867_v24 = vor.u32 %v9554_v27, %v7866_v12  ;;  %v9550_v0 = vld [vmem:[#allocation8 + $0x6c] sm:$0xf0]  ;;  %v2809_v9 = vadd.f32 %v10356_v47, %v2795_v59 }
 0x221   :  { %v9467_v44 = vld [vmem:[#allocation5 + $0xa1c] sm:$0xf]  ;;  %4979 = vmatpush.bf16.msrb.mxu3 %v7915_v13  ;;  %v7279_v16 = vor.u32 %v9403_v36, %v7276_v40  ;;  %3323 = vmatpush.bf16.msra.mxu0 %v7567_v25  ;;  %v2741_v13 = vadd.f32 %v10352_v4, %v2727_v18  ;;  %v7994_v4 = vld [vmem:[#allocation8 + $0x180] sm:$0xf]  ;;  %v10463_v25 = vpop.f32.mrf.mxu3  ;;  %v10465_v36 = vpop.f32.mrf.mxu2  ;;  %v8283_v40 = vor.u32 %v9658_v62, %v8282_v60  ;;  %v9618_v31 = vld [vmem:[#allocation8 + $0x28c] sm:$0xf0] }
 0x222   :  { %v7532_v48 = vld [vmem:[#allocation5 + $0xa38] sm:$0xf0]  ;;  %4994 = vmatpush.bf16.msrb.mxu1 %v8027_v15  ;;  %v2825_v5 = vadd.f32 %v10409_v52, %v2811_v34  ;;  %v7995_v20 = vor.u32 %v9586_v22, %v7994_v4  ;;  %v2937_v15 = vadd.f32 %v2936_v29, %v2923_v49  ;;  %v10476_v52 = vpop.f32.mrf.mxu1  ;;  %v8122_v53 = vld [vmem:[#allocation8 + $0x280] sm:$0xf]  ;;  %v2823_v38 = vadd.f32 %v10398_v43, %v2809_v9  ;;  %v9650_v14 = vld [vmem:[#allocation8 + $0x38c] sm:$0xf0] }
 0x223   :  { %v7535_v54 = vor.u32 %v9467_v44, %v7532_v48  ;;  %3310 = vmatpush.bf16.msra.mxu2 %v7279_v16  ;;  %v2755_v32 = vadd.f32 %v10360_v7, %v2741_v13  ;;  %v8138_v7 = vld [vmem:[#allocation8 + $0x2a0] sm:$0xf]  ;;  %v9622_v44 = vld [vmem:[#allocation8 + $0x2ac] sm:$0xf0]  ;;  %v7851_v16 = vor.u32 %v9550_v0, %v7850_v33  ;;  %v10786_v51 = vld [vmem:[#allocation30_spill] sm:$0xff]  ;;  %v8123_v43 = vor.u32 %v9618_v31, %v8122_v53 }
 0x224   :  { %v8139_v35 = vor.u32 %v9622_v44, %v8138_v7  ;;  %v2839_v18 = vadd.f32 %v10412_v50, %v2825_v5  ;;  %v8250_v47 = vld [vmem:[#allocation8 + $0x380] sm:$0xf]  ;;  %v2951_v19 = vadd.f32 %v10786_v51, %v2937_v15  ;;  %v10788_v21 = vld [vmem:[#allocation28_spill] sm:$0xff]  ;;  %v9578_v10 = vld [vmem:[#allocation8 + $0x14c] sm:$0xf0] }
 0x225   :  { %4980 = vmatpush.bf16.msrb.mxu3 %v7899_v45  ;;  %3324 = vmatpush.bf16.msra.mxu0 %v7535_v54  ;;  %v10471_v48 = vpack.c.bf16 %v2755_v32, %v2657_v2  ;;  %v2921_v45 = vadd.f32 %v10386_v3, %v2907_v39  ;;  %v7834_v3 = vld [vmem:[#allocation8 + $0x40] sm:$0xf]  ;;  %v2837_v57 = vadd.f32 %v10788_v21, %v2823_v38  ;;  %v10789_v11 = vld [vmem:[#allocation27_spill] sm:$0xff]  ;;  %v10790_v62 = vld [vmem:[#allocation24_spill] sm:$0xff] }
 0x226   :  { %3311 = vmatmul.bf16.vlgmr.msra.gmra.mxu2 %v10271_v37  ;;  %4995 = vmatpush.bf16.msrb.mxu1 %v8011_v1  ;;  %v9582_v37 = vld [vmem:[#allocation8 + $0x16c] sm:$0xf0]  ;;  %v10787_v61 = vld [vmem:[#allocation25_spill] sm:$0xff]  ;;  %v2853_v13 = vadd.f32 %v10789_v11, %v2839_v18  ;;  %v8251_v17 = vor.u32 %v9650_v14, %v8250_v47 }
 0x227   :  { %5007 = vmatpush.bf16.msrb.mxu2 %v8171_v6  ;;  %v10480_v54 = vpop.f32.mrf.mxu0  ;;  %v7979_v50 = vor.u32 %v9582_v37, %v7978_v46  ;;  %v9546_v6 = vld [vmem:[#allocation8 + $0x4c] sm:$0xf0]  ;;  %v3353_v41 = vunpack.c.l.bf16 %v10787_v61  ;;  %v3361_v63 = vunpack.c.l.bf16 %v10471_v48  ;;  %v3362_v55 = vunpack.c.h.bf16 %v10471_v48  ;;  %v8106_v29 = vld [vmem:[#allocation8 + $0x260] sm:$0xf] }
 0x228   :  { %3325 = vmatmul.bf16.vlgmr.msra.gmra.mxu0 %v10273_v42  ;;  %v8267_v42 = vor.u32 %v9654_v30, %v8266_v56  ;;  %7799 = vmatmul.msk.bf16.vlgmr.msra.gmra.mxu1 %vm2557_vm0, %v10790_v62  ;;  %v9614_v1 = vld [vmem:[#allocation8 + $0x26c] sm:$0xf0]  ;;  %v7835_v12 = vor.u32 %v9546_v6, %v7834_v3  ;;  %v8234_v27 = vld [vmem:[#allocation8 + $0x360] sm:$0xf]  ;;  %v10493_v4 = vpack.c.bf16 %v2951_v19, %v2853_v13  ;;  %v10792_v56 = vld [vmem:[#allocation26_spill] sm:$0xff]  ;;  %v3354_v0 = vunpack.c.h.bf16 %v10787_v61 }
 0x229   :  { %5021 = vmatpush.bf16.msrb.mxu0 %v8299_v58  ;;  %4981 = vmatpush.bf16.msrb.mxu3 %v7883_v28  ;;  %v7962_v58 = vld [vmem:[#allocation8 + $0x140] sm:$0xf]  ;;  %v2935_v28 = vadd.f32 %v10438_v26, %v2921_v45  ;;  %v10488_v60 = vpop.f32.mrf.mxu2  ;;  %v9646_v32 = vld [vmem:[#allocation8 + $0x36c] sm:$0xf0]  ;;  %v10495_v22 = vpop.f32.mrf.mxu3  ;;  %v3369_v49 = vmul.f32 0.20019531, %v3353_v41  ;;  %v3377_v2 = vmul.f32 0.20019531, %v3361_v63  ;;  %v2851_v30 = vadd.f32 %v10792_v56, %v2837_v57 }
 0x22a   :  { %4996 = vmatpush.bf16.msrb.mxu1 %v7995_v20  ;;  %v10791_v59 = vld [vmem:[#allocation29_spill] sm:$0xff]  ;;  %v7963_v26 = vor.u32 %v9578_v10, %v7962_v58  ;;  %v9542_v39 = vld [vmem:[#allocation8 + $0x2c] sm:$0xf0]  ;;  %v8235_v5 = vor.u32 %v9646_v32, %v8234_v27  ;;  %v3363_v45 = vunpack.c.l.bf16 %v10493_v4  ;;  %v10508_v15 = vpop.f32.mrf.mxu1  ;;  %v3370_v57 = vmul.f32 0.20019531, %v3354_v0 }
 0x22b   :  { %5008 = vmatpush.bf16.msrb.mxu2 %v8155_v23  ;;  %v2949_v23 = vadd.f32 %v10791_v59, %v2935_v28  ;;  %v7818_v34 = vld [vmem:[#allocation8 + $0x20] sm:$0xf]  ;;  %v9574_v44 = vld [vmem:[#allocation8 + $0x12c] sm:$0xf0]  ;;  %v3364_v58 = vunpack.c.h.bf16 %v10493_v4 }
 0x22c   :  { %v7946_v7 = vld [vmem:[#allocation8 + $0x120] sm:$0xf]  ;;  %v9610_v33 = vld [vmem:[#allocation8 + $0x24c] sm:$0xf0]  ;;  %v7819_v9 = vor.u32 %v9542_v39, %v7818_v34  ;;  %v3379_v62 = vmul.f32 0.20019531, %v3363_v45  ;;  %v3409_v39 = vmax.f32 %v3353_v41, %v3369_v49  ;;  %v3410_v56 = vmax.f32 %v3354_v0, %v3370_v57 }
 0x22d   :  { %5022 = vmatpush.bf16.msrb.mxu0 %v8283_v40  ;;  %4982 = vmatpush.bf16.msrb.mxu3 %v7867_v24  ;;  %v8107_v40 = vor.u32 %v9614_v1, %v8106_v29  ;;  %v3378_v24 = vmul.f32 0.20019531, %v3362_v55  ;;  %v8090_v20 = vld [vmem:[#allocation8 + $0x240] sm:$0xf]  ;;  %v9642_v46 = vld [vmem:[#allocation8 + $0x34c] sm:$0xf0]  ;;  %v10505_v18 = vpack.c.bf16 %v2949_v23, %v2851_v30  ;;  %v3380_v30 = vmul.f32 0.20019531, %v3364_v58 }
 0x22e   :  { %4997 = vmatpush.bf16.msrb.mxu1 %v7979_v50  ;;  %v7802_v37 = vld [vmem:[#allocation8] sm:$0xf]  ;;  %v9538_v53 = vld [vmem:[#allocation8 + $0xc] sm:$0xf0] }
 0x22f   :  { %5009 = vmatpush.bf16.msrb.mxu2 %v8139_v35  ;;  %v8218_v35 = vld [vmem:[#allocation8 + $0x340] sm:$0xf]  ;;  %v9570_v38 = vld [vmem:[#allocation8 + $0x10c] sm:$0xf0]  ;;  %v10510_v19 = vpop.f32.mrf.mxu0  ;;  %v7803_v10 = vor.u32 %v9538_v53, %v7802_v37  ;;  %v3355_v28 = vunpack.c.l.bf16 %v10505_v18  ;;  %v3356_v27 = vunpack.c.h.bf16 %v10505_v18 }
 0x230   :  { %v7930_v31 = vld [vmem:[#allocation8 + $0x100] sm:$0xf]  ;;  %v9694_v14 = vld [vmem:[#allocation8 + $0x4ec] sm:$0xf0]  ;;  %v8219_v50 = vor.u32 %v9642_v46, %v8218_v35  ;;  %v3419_v46 = vmax.f32 %v3363_v45, %v3379_v62 }
 0x231   :  { %5023 = vmatpush.bf16.msrb.mxu0 %v8267_v42  ;;  %4983 = vmatpush.bf16.msrb.mxu3 %v7851_v16  ;;  %v7947_v42 = vor.u32 %v9574_v44, %v7946_v7  ;;  %v8091_v16 = vor.u32 %v9610_v33, %v8090_v20  ;;  %v8426_v47 = vld [vmem:[#allocation8 + $0x4e0] sm:$0xf]  ;;  %v9726_v3 = vld [vmem:[#allocation8 + $0x5ec] sm:$0xf0]  ;;  %v10520_v29 = vpop.f32.mrf.mxu2  ;;  %v7931_v1 = vor.u32 %v9570_v38, %v7930_v31  ;;  %v3372_v41 = vmul.f32 0.20019531, %v3356_v27 }
 0x232   :  { %4998 = vmatpush.bf16.msrb.mxu1 %v7963_v26  ;;  %v8554_v51 = vld [vmem:[#allocation8 + $0x5e0] sm:$0xf]  ;;  %v9606_v21 = vld [vmem:[#allocation8 + $0x22c] sm:$0xf0]  ;;  %v10529_v20 = vpop.f32.mrf.mxu1  ;;  %v3420_v31 = vmax.f32 %v3364_v58, %v3380_v30 }
 0x233   :  { %5010 = vmatpush.bf16.msrb.mxu2 %v8123_v43  ;;  %v8074_v6 = vld [vmem:[#allocation8 + $0x220] sm:$0xf]  ;;  %v3417_v43 = vmax.f32 %v3361_v63, %v3377_v2  ;;  %v9638_v13 = vld [vmem:[#allocation8 + $0x32c] sm:$0xf0]  ;;  %v3418_v63 = vmax.f32 %v3362_v55, %v3378_v24  ;;  %v8555_v32 = vor.u32 %v9726_v3, %v8554_v51 }
 0x234   :  { %v8202_v11 = vld [vmem:[#allocation8 + $0x320] sm:$0xf]  ;;  %v8075_v59 = vor.u32 %v9606_v21, %v8074_v6  ;;  %v9690_v26 = vld [vmem:[#allocation8 + $0x4cc] sm:$0xf0] }
 0x235   :  { %5024 = vmatpush.bf16.msrb.mxu0 %v8251_v17  ;;  %4984 = vmatpush.bf16.msrb.mxu3 %v7835_v12  ;;  %v10518_v17 = vpop.f32.mrf.mxu3  ;;  %v8427_v12 = vor.u32 %v9694_v14, %v8426_v47  ;;  %v8410_v23 = vld [vmem:[#allocation8 + $0x4c0] sm:$0xf]  ;;  %v9722_v7 = vld [vmem:[#allocation8 + $0x5cc] sm:$0xf0]  ;;  %v10527_v24 = vpack.c.bf16 %v3417_v43, %v3409_v39  ;;  %v10531_v61 = vpack.c.bf16 %v3418_v63, %v3410_v56 }
 0x236   :  { %4999 = vmatpush.bf16.msrb.mxu1 %v7947_v42  ;;  %v8538_v34 = vld [vmem:[#allocation8 + $0x5c0] sm:$0xf]  ;;  %v9602_v2 = vld [vmem:[#allocation8 + $0x20c] sm:$0xf0]  ;;  %v8411_v33 = vor.u32 %v9690_v26, %v8410_v23  ;;  %v3412_v14 = vmax.f32 %v3356_v27, %v3372_v41 }
 0x237   :  { %5011 = vmatpush.bf16.msrb.mxu2 %v8107_v40  ;;  %v8203_v40 = vor.u32 %v9638_v13, %v8202_v11  ;;  %v8058_v44 = vld [vmem:[#allocation8 + $0x200] sm:$0xf]  ;;  %v9634_v55 = vld [vmem:[#allocation8 + $0x30c] sm:$0xf0]  ;;  %v8539_v49 = vor.u32 %v9722_v7, %v8538_v34  ;;  %v3060_v37 = vpop.f32.mrf.mxu0 }
 0x238   :  { %v8186_v48 = vld [vmem:[#allocation8 + $0x300] sm:$0xf]  ;;  %v9686_v35 = vld [vmem:[#allocation8 + $0x4ac] sm:$0xf0] }
 0x239   :  { %5025 = vmatpush.bf16.msrb.mxu0 %v8235_v5  ;;  %4985 = vmatpush.bf16.msrb.mxu3 %v7819_v9  ;;  %v3371_v5 = vmul.f32 0.20019531, %v3355_v28  ;;  %v8059_v9 = vor.u32 %v9602_v2, %v8058_v44  ;;  %v8394_v0 = vld [vmem:[#allocation8 + $0x4a0] sm:$0xf]  ;;  %v8187_v18 = vor.u32 %v9634_v55, %v8186_v48  ;;  %v9718_v53 = vld [vmem:[#allocation8 + $0x5ac] sm:$0xf0] }
 0x23a   :  { %5000 = vmatpush.bf16.msrb.mxu1 %v7931_v1  ;;  %v8522_v42 = vld [vmem:[#allocation8 + $0x5a0] sm:$0xf]  ;;  %v8395_v47 = vor.u32 %v9686_v35, %v8394_v0  ;;  %v10793_v51 = vld [vmem:[#allocation31_spill] sm:$0xff]  ;;  %v10548_v63 = vpop.f32.mrf.mxu1 }
 0x23b   :  { %5012 = vmatpush.bf16.msrb.mxu2 %v8091_v16  ;;  %v3411_v38 = vmax.f32 %v3355_v28, %v3371_v5  ;;  %v3074_v16 = vpop.f32.mrf.mxu2  ;;  %v8523_v4 = vor.u32 %v9718_v53, %v8522_v42  ;;  %v8378_v45 = vld [vmem:[#allocation8 + $0x480] sm:$0xf]  ;;  %v9682_v3 = vld [vmem:[#allocation8 + $0x48c] sm:$0xf0]  ;;  %v585_v21 = vperm.slane %v10793_v51, 4 }
 0x23c   :  { %v8506_v43 = vld [vmem:[#allocation8 + $0x580] sm:$0xf]  ;;  %v9714_v58 = vld [vmem:[#allocation8 + $0x58c] sm:$0xf0]  ;;  %v8379_v11 = vor.u32 %v9682_v3, %v8378_v45  ;;  %v9596_v45 = vld [vmem:[#allocation8 + $0x1e4] sm:$0xf] }
 0x23d   :  { %5026 = vmatpush.bf16.msrb.mxu0 %v8219_v50  ;;  %4986 = vmatpush.bf16.msrb.mxu3 %v7803_v10  ;;  %v586_v50 = vperm.slane %v10793_v51, 5  ;;  %v10538_v6 = vpack.c.bf16 %v3419_v46, %v3411_v38  ;;  %v10541_v57 = vpop.f32.mrf.mxu3  ;;  %v10543_v10 = vpack.c.bf16 %v3420_v31, %v3412_v14  ;;  %v8507_v28 = vor.u32 %v9714_v58, %v8506_v43  ;;  %v8362_v62 = vld [vmem:[#allocation8 + $0x460] sm:$0xf]  ;;  %v9678_v1 = vld [vmem:[#allocation8 + $0x46c] sm:$0xf0] }
 0x23e   :  { %5049 = vmatpush.bf16.msra.mxu1 %v8555_v32  ;;  %v8490_v27 = vld [vmem:[#allocation8 + $0x560] sm:$0xf]  ;;  %v9710_v32 = vld [vmem:[#allocation8 + $0x56c] sm:$0xf0]  ;;  %v8363_v23 = vor.u32 %v9678_v1, %v8362_v62  ;;  %v2965_v48 = vadd.f32 %v10495_v22, %v585_v21  ;;  %v7916_v51 = vld [vmem:[#allocation8 + $0xf0] sm:$0xf0] }
 0x23f   :  { %5013 = vmatpush.bf16.msrb.mxu2 %v8075_v59  ;;  %5001 = vmatmul.bf16.vlgmr.msrb.gmra.mxu1 %v10531_v61  ;;  %v3061_v13 = vadd.f32 %v3060_v37, %v586_v50  ;;  %v3062_v59 = vpop.f32.mrf.mxu0  ;;  %v8491_v34 = vor.u32 %v9710_v32, %v8490_v27  ;;  %v8346_v39 = vld [vmem:[#allocation8 + $0x440] sm:$0xf]  ;;  %v9706_v30 = vld [vmem:[#allocation8 + $0x54c] sm:$0xf0]  ;;  %v7900_v62 = vld [vmem:[#allocation8 + $0xd0] sm:$0xf0] }
 0x240   :  { %4987 = vmatmul.bf16.vlgmr.msrb.gmra.mxu3 %v10527_v24  ;;  %v8474_v56 = vld [vmem:[#allocation8 + $0x540] sm:$0xf]  ;;  %v9670_v41 = vld [vmem:[#allocation8 + $0x42c] sm:$0xf0]  ;;  %v3063_v46 = vadd.f32 %v3062_v59, %v586_v50  ;;  %v2979_v37 = vadd.f32 %v10508_v15, %v2965_v48  ;;  %v8044_v50 = vld [vmem:[#allocation8 + $0x1f0] sm:$0xf0] }
 0x241   :  { %5035 = vmatpush.bf16.msra.mxu3 %v8427_v12  ;;  %5027 = vmatpush.bf16.msrb.mxu0 %v8203_v40  ;;  %v2963_v12 = vadd.f32 %v10463_v25, %v585_v21  ;;  %v3075_v26 = vadd.f32 %v3074_v16, %v3061_v13  ;;  %v9674_v40 = vld [vmem:[#allocation8 + $0x44c] sm:$0xf0]  ;;  %v8475_v5 = vor.u32 %v9706_v30, %v8474_v56  ;;  %v8458_v0 = vld [vmem:[#allocation8 + $0x520] sm:$0xf]  ;;  %v8028_v27 = vld [vmem:[#allocation8 + $0x1d0] sm:$0xf0] }
 0x242   :  { %5050 = vmatpush.bf16.msra.mxu1 %v8539_v49  ;;  %v8347_v25 = vor.u32 %v9674_v40, %v8346_v39  ;;  %v9702_v35 = vld [vmem:[#allocation8 + $0x52c] sm:$0xf0]  ;;  %v8314_v53 = vld [vmem:[#allocation8 + $0x400] sm:$0xf]  ;;  %v2993_v43 = vadd.f32 %v10465_v36, %v2979_v37  ;;  %v9556_v39 = vld [vmem:[#allocation8 + $0xa4] sm:$0xf] }
 0x243   :  { %5014 = vmatpush.bf16.msrb.mxu2 %v8059_v9  ;;  %v2977_v7 = vadd.f32 %v10476_v52, %v2963_v12  ;;  %v3076_v2 = vpop.f32.mrf.mxu2  ;;  %v3102_v9 = vpop.f32.mrf.mxu1  ;;  %v8459_v42 = vor.u32 %v9702_v35, %v8458_v0  ;;  %v9666_v22 = vld [vmem:[#allocation8 + $0x40c] sm:$0xf0]  ;;  %v8442_v31 = vld [vmem:[#allocation8 + $0x500] sm:$0xf]  ;;  %v9592_v12 = vld [vmem:[#allocation8 + $0x1c4] sm:$0xf] }
 0x244   :  { %v9698_v14 = vld [vmem:[#allocation8 + $0x50c] sm:$0xf0]  ;;  %v8315_v15 = vor.u32 %v9666_v22, %v8314_v53  ;;  %v7884_v40 = vld [vmem:[#allocation8 + $0xb0] sm:$0xf0]  ;;  %v9588_v56 = vld [vmem:[#allocation8 + $0x1a4] sm:$0xf] }
 0x245   :  { %5036 = vmatpush.bf16.msra.mxu3 %v8411_v33  ;;  %5028 = vmatpush.bf16.msrb.mxu0 %v8187_v18  ;;  %v3088_v44 = vpop.f32.mrf.mxu3  ;;  %v8330_v33 = vld [vmem:[#allocation8 + $0x420] sm:$0xf]  ;;  %v2991_v49 = vadd.f32 %v10442_v8, %v2977_v7  ;;  %v9564_v8 = vld [vmem:[#allocation8 + $0xe4] sm:$0xf]  ;;  %v8012_v30 = vld [vmem:[#allocation8 + $0x1b0] sm:$0xf0] }
 0x246   :  { %5015 = vmatmul.bf16.vlgmr.msrb.gmra.mxu2 %v10538_v6  ;;  %5051 = vmatpush.bf16.msra.mxu1 %v8523_v4  ;;  %v3089_v55 = vadd.f32 %v3088_v44, %v3075_v26  ;;  %v8331_v52 = vor.u32 %v9670_v41, %v8330_v33  ;;  %v3077_v4 = vadd.f32 %v3076_v2, %v3063_v46  ;;  %v9552_v33 = vld [vmem:[#allocation8 + $0x84] sm:$0xf]  ;;  %v7868_v41 = vld [vmem:[#allocation8 + $0x90] sm:$0xf0] }
 0x247   :  { %v3005_v38 = vadd.f32 %v10480_v54, %v2991_v49  ;;  %v3116_v16 = vpop.f32.mrf.mxu0  ;;  %v7919_v13 = vor.u32 %v9564_v8, %v7916_v51  ;;  %v8047_v54 = vor.u32 %v9596_v45, %v8044_v50  ;;  %v9584_v0 = vld [vmem:[#allocation8 + $0x184] sm:$0xf]  ;;  %v7871_v46 = vor.u32 %v9552_v33, %v7868_v41  ;;  %v7852_v53 = vld [vmem:[#allocation8 + $0x70] sm:$0xf0] }
 0x248   :  { %5029 = vmatmul.bf16.vlgmr.msrb.gmra.mxu0 %v10543_v10  ;;  %v3103_v18 = vadd.f32 %v3102_v9, %v3089_v55  ;;  %v7836_v8 = vld [vmem:[#allocation8 + $0x50] sm:$0xf0]  ;;  %v9576_v50 = vld [vmem:[#allocation8 + $0x144] sm:$0xf] }
 0x249   :  { %5037 = vmatpush.bf16.msra.mxu3 %v8395_v47  ;;  %v3019_v3 = vadd.f32 %v10518_v17, %v3005_v38  ;;  %v3007_v17 = vadd.f32 %v10510_v19, %v2993_v43  ;;  %v7887_v19 = vor.u32 %v9556_v39, %v7884_v40  ;;  %v9580_v38 = vld [vmem:[#allocation8 + $0x164] sm:$0xf]  ;;  %v8682_v43 = vld [vmem:[#allocation8 + $0x6e0] sm:$0xf]  ;;  %v9754_v40 = vld [vmem:[#allocation8 + $0x6cc] sm:$0xf0] }
 0x24a   :  { %5052 = vmatpush.bf16.msra.mxu1 %v8507_v28  ;;  %v3117_v58 = vadd.f32 %v3116_v16, %v3103_v18  ;;  %v9560_v28 = vld [vmem:[#allocation8 + $0xc4] sm:$0xf]  ;;  %v7980_v16 = vld [vmem:[#allocation8 + $0x170] sm:$0xf0]  ;;  %v8666_v39 = vld [vmem:[#allocation8 + $0x6c0] sm:$0xf] }
 0x24b   :  { %v3130_v21 = vpop.f32.mrf.mxu2  ;;  %v3033_v32 = vadd.f32 %v10529_v20, %v3019_v3  ;;  %v3104_v59 = vpop.f32.mrf.mxu1  ;;  %v7903_v36 = vor.u32 %v9560_v28, %v7900_v62  ;;  %v3021_v7 = vadd.f32 %v10541_v57, %v3007_v17  ;;  %v7996_v57 = vld [vmem:[#allocation8 + $0x190] sm:$0xf0]  ;;  %v7983_v45 = vor.u32 %v9580_v38, %v7980_v16  ;;  %v9692_v41 = vld [vmem:[#allocation8 + $0x4e4] sm:$0xf] }
 0x24c   :  { %v7999_v18 = vor.u32 %v9584_v0, %v7996_v57  ;;  %v7964_v3 = vld [vmem:[#allocation8 + $0x150] sm:$0xf0]  ;;  %v9750_v0 = vld [vmem:[#allocation8 + $0x6ac] sm:$0xf0]  ;;  %v8778_v57 = vld [vmem:[#allocation8 + $0x7a0] sm:$0xf] }
 0x24d   :  { %5038 = vmatpush.bf16.msra.mxu3 %v8379_v11  ;;  %v3090_v47 = vpop.f32.mrf.mxu3  ;;  %v8443_v11 = vor.u32 %v9698_v14, %v8442_v31  ;;  %v3047_v20 = vadd.f32 %v10488_v60, %v3033_v32  ;;  %v3035_v49 = vadd.f32 %v10548_v63, %v3021_v7  ;;  %v9544_v14 = vld [vmem:[#allocation8 + $0x44] sm:$0xf]  ;;  %v7820_v32 = vld [vmem:[#allocation8 + $0x30] sm:$0xf0]  ;;  %v8794_v7 = vld [vmem:[#allocation8 + $0x7c0] sm:$0xf] }
 0x24e   :  { %5053 = vmatpush.bf16.msra.mxu1 %v8491_v34  ;;  %v3091_v1 = vadd.f32 %v3090_v47, %v3077_v4  ;;  %v8031_v34 = vor.u32 %v9592_v12, %v8028_v27  ;;  %v7839_v62 = vor.u32 %v9544_v14, %v7836_v8  ;;  %v7967_v27 = vor.u32 %v9576_v50, %v7964_v3  ;;  %v7948_v17 = vld [vmem:[#allocation8 + $0x130] sm:$0xf0]  ;;  %v9746_v14 = vld [vmem:[#allocation8 + $0x68c] sm:$0xf0] }
 0x24f   :  { %v3049_v22 = vadd.f32 %v10520_v29, %v3035_v49  ;;  %v7932_v33 = vld [vmem:[#allocation8 + $0x110] sm:$0xf0] }
 0x250   :  { %v3105_v44 = vadd.f32 %v3104_v59, %v3091_v1  ;;  %v9540_v1 = vld [vmem:[#allocation8 + $0x24] sm:$0xf]  ;;  %v8428_v49 = vld [vmem:[#allocation8 + $0x4f0] sm:$0xf0] }
 0x251   :  { %5039 = vmatpush.bf16.msra.mxu3 %v8363_v23  ;;  %v3131_v23 = vadd.f32 %v3130_v21, %v3117_v58  ;;  %v9758_v58 = vld [vmem:[#allocation8 + $0x6ec] sm:$0xf0]  ;;  %v9572_v59 = vld [vmem:[#allocation8 + $0x124] sm:$0xf]  ;;  %v8412_v38 = vld [vmem:[#allocation8 + $0x4d0] sm:$0xf0] }
 0x252   :  { %5054 = vmatpush.bf16.msra.mxu1 %v8475_v5  ;;  %v8015_v5 = vor.u32 %v9588_v56, %v8012_v30  ;;  %v8683_v29 = vor.u32 %v9758_v58, %v8682_v43  ;;  %v8540_v8 = vld [vmem:[#allocation8 + $0x5d0] sm:$0xf0] }
 0x253   :  { %v3132_v55 = vpop.f32.mrf.mxu2  ;;  %v10571_v43 = vpop.f32.mrf.mxu1 }
 0x254   :  { %5063 = vmatpush.bf16.msra.mxu2 %v8683_v29  ;;  %v9742_v29 = vld [vmem:[#allocation8 + $0x66c] sm:$0xf0] }
 0x255   :  { %5040 = vmatpush.bf16.msra.mxu3 %v8347_v25  ;;  %v3144_v26 = vpop.f32.mrf.mxu3  ;;  %v3118_v25 = vpop.f32.mrf.mxu0 }
 0x256   :  { %5055 = vmatpush.bf16.msra.mxu1 %v8459_v42  ;;  %v3145_v2 = vadd.f32 %v3144_v26, %v3131_v23  ;;  %v3119_v9 = vadd.f32 %v3118_v25, %v3105_v44  ;;  %v9548_v42 = vld [vmem:[#allocation8 + $0x64] sm:$0xf]  ;;  %v8667_v44 = vor.u32 %v9754_v40, %v8666_v39  ;;  %v8508_v40 = vld [vmem:[#allocation8 + $0x590] sm:$0xf0] }
 0x257   :  { %v7855_v63 = vor.u32 %v9548_v42, %v7852_v53  ;;  %v9536_v25 = vld [vmem:[#allocation8 + $0x4] sm:$0xf] }
 0x258   :  { %v3347_v48 = vpack.c.bf16 %v3145_v2, %v3047_v20  ;;  %v3133_v35 = vadd.f32 %v3132_v55, %v3119_v9  ;;  %v9786_v2 = vld [vmem:[#allocation8 + $0x7cc] sm:$0xf0]  ;;  %v7823_v20 = vor.u32 %v9540_v1, %v7820_v32  ;;  %5064 = vmatpush.bf16.msra.mxu2 %v8667_v44  ;;  %v8650_v9 = vld [vmem:[#allocation8 + $0x6a0] sm:$0xf]  ;;  %v9712_v39 = vld [vmem:[#allocation8 + $0x584] sm:$0xf] }
 0x259   :  { %5041 = vmatpush.bf16.msra.mxu3 %v8331_v52  ;;  %v8795_v55 = vor.u32 %v9786_v2, %v8794_v7  ;;  %v9774_v1 = vld [vmem:[#allocation8 + $0x76c] sm:$0xf0] }
 0x25a   :  { %5056 = vmatpush.bf16.msra.mxu1 %v8443_v11  ;;  %v3357_v52 = vunpack.c.l.bf16 %v3347_v48  ;;  %v3358_v37 = vunpack.c.h.bf16 %v3347_v48  ;;  %v8810_v11 = vld [vmem:[#allocation8 + $0x7e0] sm:$0xf]  ;;  %v9568_v48 = vld [vmem:[#allocation8 + $0x104] sm:$0xf]  ;;  %v9770_v44 = vld [vmem:[#allocation8 + $0x74c] sm:$0xf0] }
 0x25b   :  { %v7935_v53 = vor.u32 %v9568_v48, %v7932_v33  ;;  %v8511_v48 = vor.u32 %v9712_v39, %v8508_v40  ;;  %v8714_v33 = vld [vmem:[#allocation8 + $0x720] sm:$0xf]  ;;  %v9696_v39 = vld [vmem:[#allocation8 + $0x504] sm:$0xf] }
 0x25c   :  { %v3373_v51 = vmul.f32 0.20019531, %v3357_v52  ;;  %v3374_v4 = vmul.f32 0.20019531, %v3358_v37 }
 0x25d   :  { %5042 = vmatpush.bf16.msra.mxu3 %v8315_v15  ;;  %v3146_v60 = vpop.f32.mrf.mxu3 }
 0x25e   :  { %5105 = vmatpush.bf16.msrb.mxu1 %v8047_v54  ;;  %v3147_v31 = vadd.f32 %v3146_v60, %v3133_v35  ;;  %v3413_v23 = vmax.f32 %v3357_v52, %v3373_v51  ;;  %v10569_v35 = vpop.f32.mrf.mxu0  ;;  %v8556_v52 = vld [vmem:[#allocation8 + $0x5f0] sm:$0xf0]  ;;  %v9782_v60 = vld [vmem:[#allocation8 + $0x7ac] sm:$0xf0] }
 0x25f   :  { %v8779_v42 = vor.u32 %v9782_v60, %v8778_v57  ;;  %v9766_v57 = vld [vmem:[#allocation8 + $0x72c] sm:$0xf0] }
 0x260   :  { %v3351_v47 = vpack.c.bf16 %v3147_v31, %v3049_v22  ;;  %v8431_v22 = vor.u32 %v9692_v41, %v8428_v49  ;;  %v9688_v31 = vld [vmem:[#allocation8 + $0x4c4] sm:$0xf] }
 0x261   :  { %5091 = vmatpush.bf16.msrb.mxu3 %v7919_v13  ;;  %v9790_v13 = vld [vmem:[#allocation8 + $0x7ec] sm:$0xf0]  ;;  %v8415_v3 = vor.u32 %v9688_v31, %v8412_v38  ;;  %v9708_v49 = vld [vmem:[#allocation8 + $0x564] sm:$0xf]  ;;  %v8570_v38 = vld [vmem:[#allocation8 + $0x600] sm:$0xf] }
 0x262   :  { %5106 = vmatpush.bf16.msrb.mxu1 %v8031_v34  ;;  %v3365_v21 = vunpack.c.l.bf16 %v3351_v47  ;;  %v3366_v15 = vunpack.c.h.bf16 %v3351_v47  ;;  %v8811_v12 = vor.u32 %v9790_v13, %v8810_v11  ;;  %v9720_v47 = vld [vmem:[#allocation8 + $0x5c4] sm:$0xf]  ;;  %v8618_v11 = vld [vmem:[#allocation8 + $0x660] sm:$0xf] }
 0x263   :  { %v8543_v58 = vor.u32 %v9720_v47, %v8540_v8  ;;  %v8746_v13 = vld [vmem:[#allocation8 + $0x760] sm:$0xf]  ;;  %v9628_v8 = vld [vmem:[#allocation8 + $0x2e4] sm:$0xf] }
 0x264   :  { %v3381_v54 = vmul.f32 0.20019531, %v3365_v21  ;;  %v3382_v28 = vmul.f32 0.20019531, %v3366_v15  ;;  %5077 = vmatpush.bf16.msra.mxu0 %v8811_v12  ;;  %v8747_v12 = vor.u32 %v9774_v1, %v8746_v13  ;;  %v8698_v47 = vld [vmem:[#allocation8 + $0x700] sm:$0xf]  ;;  %v8332_v13 = vld [vmem:[#allocation8 + $0x430] sm:$0xf0] }
 0x265   :  { %5092 = vmatpush.bf16.msrb.mxu3 %v7903_v36  ;;  %v3414_v36 = vmax.f32 %v3358_v37, %v3374_v4  ;;  %v8651_v37 = vor.u32 %v9750_v0, %v8650_v9  ;;  %v8762_v4 = vld [vmem:[#allocation8 + $0x780] sm:$0xf]  ;;  %v10576_v41 = vpop.f32.mrf.mxu3  ;;  %v8492_v9 = vld [vmem:[#allocation8 + $0x570] sm:$0xf0] }
 0x266   :  { %5107 = vmatpush.bf16.msrb.mxu1 %v8015_v5  ;;  %v3421_v26 = vmax.f32 %v3365_v21, %v3381_v54  ;;  %v3422_v34 = vmax.f32 %v3366_v15, %v3382_v28  ;;  %v7951_v5 = vor.u32 %v9572_v59, %v7948_v17  ;;  %v9684_v21 = vld [vmem:[#allocation8 + $0x4a4] sm:$0xf]  ;;  %v8396_v15 = vld [vmem:[#allocation8 + $0x4b0] sm:$0xf0]  ;;  %v8495_v31 = vor.u32 %v9708_v49, %v8492_v9 }
 0x267   :  { %5065 = vmatpush.bf16.msra.mxu2 %v8651_v37  ;;  %v9716_v54 = vld [vmem:[#allocation8 + $0x5a4] sm:$0xf]  ;;  %v8524_v28 = vld [vmem:[#allocation8 + $0x5b0] sm:$0xf0]  ;;  %v8399_v32 = vor.u32 %v9684_v21, %v8396_v15  ;;  %v8715_v37 = vor.u32 %v9766_v57, %v8714_v33  ;;  %v10583_v21 = vpop.f32.mrf.mxu2  ;;  %v9599_v33 = vld [vmem:[#allocation8 + $0x1f4] sm:$0xf0] }
 0x268   :  { %v10563_v56 = vpack.c.bf16 %v3421_v26, %v3413_v23  ;;  %v10565_v30 = vpack.c.bf16 %v3422_v34, %v3414_v36  ;;  %5078 = vmatpush.bf16.msra.mxu0 %v8795_v55  ;;  %v9680_v59 = vld [vmem:[#allocation8 + $0x484] sm:$0xf]  ;;  %v8380_v17 = vld [vmem:[#allocation8 + $0x490] sm:$0xf0]  ;;  %v8527_v23 = vor.u32 %v9716_v54, %v8524_v28  ;;  %v8602_v36 = vld [vmem:[#allocation8 + $0x640] sm:$0xf] }
 0x269   :  { %5093 = vmatpush.bf16.msrb.mxu3 %v7887_v19  ;;  %v7804_v19 = vld [vmem:[#allocation8 + $0x10] sm:$0xf0]  ;;  %v9738_v26 = vld [vmem:[#allocation8 + $0x64c] sm:$0xf0]  ;;  %v8730_v34 = vld [vmem:[#allocation8 + $0x740] sm:$0xf] }
 0x26a   :  { %5108 = vmatpush.bf16.msrb.mxu1 %v7999_v18  ;;  %5043 = vmatmul.bf16.vlgmr.msra.gmra.mxu3 %v10563_v56  ;;  %v7807_v18 = vor.u32 %v9536_v25, %v7804_v19  ;;  %v8603_v7 = vor.u32 %v9738_v26, %v8602_v36  ;;  %v8731_v2 = vor.u32 %v9770_v44, %v8730_v34  ;;  %v9676_v25 = vld [vmem:[#allocation8 + $0x464] sm:$0xf]  ;;  %v8364_v19 = vld [vmem:[#allocation8 + $0x470] sm:$0xf0]  ;;  %v8586_v55 = vld [vmem:[#allocation8 + $0x620] sm:$0xf] }
 0x26b   :  { %5057 = vmatmul.bf16.vlgmr.msra.gmra.mxu1 %v10565_v30  ;;  %v9700_v54 = vld [vmem:[#allocation8 + $0x524] sm:$0xf]  ;;  %v8460_v28 = vld [vmem:[#allocation8 + $0x530] sm:$0xf0] }
 0x26c   :  { %5079 = vmatpush.bf16.msra.mxu0 %v8779_v42  ;;  %v8348_v42 = vld [vmem:[#allocation8 + $0x450] sm:$0xf0]  ;;  %v9664_v26 = vld [vmem:[#allocation8 + $0x404] sm:$0xf] }
 0x26d   :  { %5094 = vmatpush.bf16.msrb.mxu3 %v7871_v46  ;;  %v9724_v46 = vld [vmem:[#allocation8 + $0x5e4] sm:$0xf]  ;;  %v8156_v1 = vld [vmem:[#allocation8 + $0x2d0] sm:$0xf0] }
 0x26e   :  { %5109 = vmatpush.bf16.msrb.mxu1 %v7983_v45  ;;  %v8559_v16 = vor.u32 %v9724_v46, %v8556_v52  ;;  %v9778_v45 = vld [vmem:[#allocation8 + $0x78c] sm:$0xf0]  ;;  %v10579_v46 = vpop.f32.mrf.mxu1  ;;  %v9672_v52 = vld [vmem:[#allocation8 + $0x444] sm:$0xf]  ;;  %v8316_v34 = vld [vmem:[#allocation8 + $0x410] sm:$0xf0] }
 0x26f   :  { %v8763_v50 = vor.u32 %v9778_v45, %v8762_v4  ;;  %v8351_v15 = vor.u32 %v9672_v52, %v8348_v42  ;;  %v8444_v44 = vld [vmem:[#allocation8 + $0x510] sm:$0xf0]  ;;  %v9563_v42 = vld [vmem:[#allocation8 + $0xd4] sm:$0xf0] }
 0x270   :  { %v8268_v9 = vld [vmem:[#allocation8 + $0x3b0] sm:$0xf0]  ;;  %v8447_v52 = vor.u32 %v9696_v39, %v8444_v44  ;;  %v9555_v39 = vld [vmem:[#allocation8 + $0x94] sm:$0xf0]  ;;  %v9608_v44 = vld [vmem:[#allocation8 + $0x244] sm:$0xf] }
 0x271   :  { %5095 = vmatpush.bf16.msrb.mxu3 %v7855_v63  ;;  %v8634_v63 = vld [vmem:[#allocation8 + $0x680] sm:$0xf]  ;;  %5080 = vmatpush.bf16.msra.mxu0 %v8763_v50  ;;  %v9660_v50 = vld [vmem:[#allocation8 + $0x3e4] sm:$0xf] }
 0x272   :  { %5110 = vmatpush.bf16.msrb.mxu1 %v7967_v27  ;;  %v8635_v51 = vor.u32 %v9746_v14, %v8634_v63  ;;  %v10573_v27 = vpop.f32.mrf.mxu0  ;;  %v9762_v14 = vld [vmem:[#allocation8 + $0x70c] sm:$0xf0] }
 0x273   :  { %v8699_v4 = vor.u32 %v9762_v14, %v8698_v47  ;;  %v8034_v47 = vld [vmem:[#allocation8 + $0x1c8] sm:$0xf] }
 0x274   :  { %5066 = vmatpush.bf16.msra.mxu2 %v8635_v51  ;;  %v8172_v51 = vld [vmem:[#allocation8 + $0x2f0] sm:$0xf0] }
 0x275   :  { %5096 = vmatpush.bf16.msrb.mxu3 %v7839_v62  ;;  %v8619_v62 = vor.u32 %v9742_v29, %v8618_v11  ;;  %5081 = vmatpush.bf16.msra.mxu0 %v8747_v12  ;;  %v8175_v45 = vor.u32 %v9628_v8, %v8172_v51  ;;  %v9656_v12 = vld [vmem:[#allocation8 + $0x3c4] sm:$0xf]  ;;  %v8252_v8 = vld [vmem:[#allocation8 + $0x390] sm:$0xf0] }
 0x276   :  { %5111 = vmatpush.bf16.msrb.mxu1 %v7951_v5  ;;  %v9734_v5 = vld [vmem:[#allocation8 + $0x62c] sm:$0xf0] }
 0x277   :  { %v8587_v0 = vor.u32 %v9734_v5, %v8586_v55  ;;  %v9652_v55 = vld [vmem:[#allocation8 + $0x3a4] sm:$0xf]  ;;  %v8050_v5 = vld [vmem:[#allocation8 + $0x1e8] sm:$0xf] }
 0x278   :  { %5067 = vmatpush.bf16.msra.mxu2 %v8619_v62  ;;  %v9624_v62 = vld [vmem:[#allocation8 + $0x2c4] sm:$0xf]  ;;  %v8271_v57 = vor.u32 %v9652_v55, %v8268_v9 }
 0x279   :  { %5097 = vmatpush.bf16.msrb.mxu3 %v7823_v20  ;;  %v8383_v20 = vor.u32 %v9680_v59, %v8380_v17  ;;  %5082 = vmatpush.bf16.msra.mxu0 %v8731_v2  ;;  %v8159_v59 = vor.u32 %v9624_v62, %v8156_v1  ;;  %v8284_v17 = vld [vmem:[#allocation8 + $0x3d0] sm:$0xf0]  ;;  %v7922_v2 = vld [vmem:[#allocation8 + $0xe8] sm:$0xf] }
 0x27a   :  { %5112 = vmatpush.bf16.msrb.mxu1 %v7935_v53  ;;  %v10581_v60 = vpop.f32.mrf.mxu0  ;;  %v9704_v53 = vld [vmem:[#allocation8 + $0x544] sm:$0xf]  ;;  %v8287_v40 = vor.u32 %v9656_v12, %v8284_v17  ;;  %v8236_v1 = vld [vmem:[#allocation8 + $0x370] sm:$0xf0]  ;;  %v10601_v17 = vld [vmem:[#allocation7] sm:$0xff] }
 0x27c   :  { %5068 = vmatpush.bf16.msra.mxu2 %v8603_v7  ;;  %v8463_v7 = vor.u32 %v9700_v54, %v8460_v28  ;;  %v8018_v54 = vld [vmem:[#allocation8 + $0x1a8] sm:$0xf]  ;;  %v9591_v28 = vld [vmem:[#allocation8 + $0x1b4] sm:$0xf0] }
 0x27d   :  { %5098 = vmatpush.bf16.msrb.mxu3 %v7807_v18  ;;  %5113 = vmatmul.bf16.vlgmr.msrb.gmra.mxu1 %v10531_v61  ;;  %v8367_v18 = vor.u32 %v9676_v25, %v8364_v19  ;;  %v9620_v19 = vld [vmem:[#allocation8 + $0x2a4] sm:$0xf] }
 0x27e   :  { %5161 = vmatpush.bf16.msra.mxu1 %v8559_v16  ;;  %v9730_v16 = vld [vmem:[#allocation8 + $0x60c] sm:$0xf0]  ;;  %5083 = vmatpush.bf16.msra.mxu0 %v8715_v37 }
 0x27f   :  { %v8571_v63 = vor.u32 %v9730_v16, %v8570_v38  ;;  %v8124_v38 = vld [vmem:[#allocation8 + $0x290] sm:$0xf0]  ;;  %v9648_v16 = vld [vmem:[#allocation8 + $0x384] sm:$0xf] }
 0x280   :  { %5099 = vmatmul.bf16.vlgmr.msrb.gmra.mxu3 %v10527_v24  ;;  %5069 = vmatpush.bf16.msra.mxu2 %v8587_v0  ;;  %v8319_v0 = vor.u32 %v9664_v26, %v8316_v34  ;;  %v7874_v34 = vld [vmem:[#allocation8 + $0x88] sm:$0xf] }
 0x281   :  { %5147 = vmatpush.bf16.msra.mxu3 %v8431_v22  ;;  %v8476_v22 = vld [vmem:[#allocation8 + $0x550] sm:$0xf0] }
 0x282   :  { %5162 = vmatpush.bf16.msra.mxu1 %v8543_v58  ;;  %v9668_v58 = vld [vmem:[#allocation8 + $0x424] sm:$0xf]  ;;  %v8479_v29 = vor.u32 %v9704_v53, %v8476_v22  ;;  %5084 = vmatpush.bf16.msra.mxu0 %v8699_v4  ;;  %v10589_v25 = vpop.f32.mrf.mxu0  ;;  %v10591_v53 = vpop.f32.mrf.mxu2  ;;  %v8051_v22 = vor.u32 %v9599_v33, %v8050_v5  ;;  %v8255_v4 = vor.u32 %v9648_v16, %v8252_v8  ;;  %v8220_v5 = vld [vmem:[#allocation8 + $0x350] sm:$0xf0]  ;;  %v7986_v16 = vld [vmem:[#allocation8 + $0x168] sm:$0xf] }
 0x283   :  { %v8335_v36 = vor.u32 %v9668_v58, %v8332_v13  ;;  %v9644_v13 = vld [vmem:[#allocation8 + $0x364] sm:$0xf] }
 0x284   :  { %5070 = vmatpush.bf16.msra.mxu2 %v8571_v63  ;;  %v9595_v63 = vld [vmem:[#allocation8 + $0x1d4] sm:$0xf0] }
 0x285   :  { %5148 = vmatpush.bf16.msra.mxu3 %v8415_v3  ;;  %v8300_v3 = vld [vmem:[#allocation8 + $0x3f0] sm:$0xf0]  ;;  %v8035_v58 = vor.u32 %v9595_v63, %v8034_v47  ;;  %v9583_v47 = vld [vmem:[#allocation8 + $0x174] sm:$0xf0] }
 0x286   :  { %5163 = vmatpush.bf16.msra.mxu1 %v8527_v23  ;;  %v8303_v11 = vor.u32 %v9660_v50, %v8300_v3  ;;  %v10587_v23 = vpop.f32.mrf.mxu3  ;;  %v7890_v3 = vld [vmem:[#allocation8 + $0xa8] sm:$0xf] }
 0x288   :  { %5119 = vmatpush.bf16.msrb.mxu2 %v8175_v45  ;;  %5133 = vmatpush.bf16.msrb.mxu0 %v8303_v11  ;;  %v9612_v11 = vld [vmem:[#allocation8 + $0x264] sm:$0xf] }
 0x289   :  { %5149 = vmatpush.bf16.msra.mxu3 %v8399_v32  ;;  %v10585_v32 = vpop.f32.mrf.mxu1 }
 0x28a   :  { %5164 = vmatpush.bf16.msra.mxu1 %v8511_v48  ;;  %v8140_v48 = vld [vmem:[#allocation8 + $0x2b0] sm:$0xf0]  ;;  %v10598_v12 = vpop.f32.mrf.mxu0 }
 0x28b   :  { %v8143_v49 = vor.u32 %v9620_v19, %v8140_v48  ;;  %v8002_v19 = vld [vmem:[#allocation8 + $0x188] sm:$0xf]  ;;  %v9587_v48 = vld [vmem:[#allocation8 + $0x194] sm:$0xf0] }
 0x28c   :  { %5120 = vmatpush.bf16.msrb.mxu2 %v8159_v59  ;;  %5134 = vmatpush.bf16.msrb.mxu0 %v8287_v40  ;;  %v8239_v59 = vor.u32 %v9644_v13, %v8236_v1  ;;  %v3256_v40 = vpop.f32.mrf.mxu2  ;;  %v9600_v13 = vld [vmem:[#allocation8 + $0x204] sm:$0xf] }
 0x28d   :  { %5150 = vmatpush.bf16.msra.mxu3 %v8383_v20  ;;  %v9567_v20 = vld [vmem:[#allocation8 + $0xf4] sm:$0xf0]  ;;  %v9632_v1 = vld [vmem:[#allocation8 + $0x304] sm:$0xf] }
 0x28e   :  { %5165 = vmatpush.bf16.msra.mxu1 %v8495_v31  ;;  %v7923_v37 = vor.u32 %v9567_v20, %v7922_v2  ;;  %v9616_v31 = vld [vmem:[#allocation8 + $0x284] sm:$0xf]  ;;  %v10593_v51 = vpop.f32.mrf.mxu3  ;;  %v8092_v2 = vld [vmem:[#allocation8 + $0x250] sm:$0xf0] }
 0x28f   :  { %v8127_v14 = vor.u32 %v9616_v31, %v8124_v38  ;;  %v9640_v20 = vld [vmem:[#allocation8 + $0x344] sm:$0xf]  ;;  %v8095_v55 = vor.u32 %v9608_v44, %v8092_v2 }
 0x290   :  { %5121 = vmatpush.bf16.msrb.mxu2 %v8143_v49  ;;  %5135 = vmatpush.bf16.msrb.mxu0 %v8271_v57  ;;  %v8223_v33 = vor.u32 %v9640_v20, %v8220_v5  ;;  %v588_v49 = vperm.slane %v10601_v17, 7  ;;  %v7858_v57 = vld [vmem:[#allocation8 + $0x68] sm:$0xf]  ;;  %v9636_v31 = vld [vmem:[#allocation8 + $0x324] sm:$0xf] }
 0x291   :  { %5151 = vmatpush.bf16.msra.mxu3 %v8367_v18  ;;  %v7906_v18 = vld [vmem:[#allocation8 + $0xc8] sm:$0xf]  ;;  %v10595_v45 = vpop.f32.mrf.mxu1  ;;  %v9575_v5 = vld [vmem:[#allocation8 + $0x134] sm:$0xf0] }
 0x292   :  { %5166 = vmatpush.bf16.msra.mxu1 %v8479_v29  ;;  %v7907_v50 = vor.u32 %v9563_v42, %v7906_v18  ;;  %v8108_v29 = vld [vmem:[#allocation8 + $0x270] sm:$0xf0]  ;;  %v8003_v18 = vor.u32 %v9587_v48, %v8002_v19  ;;  %v9604_v42 = vld [vmem:[#allocation8 + $0x224] sm:$0xf]  ;;  %v7826_v19 = vld [vmem:[#allocation8 + $0x28] sm:$0xf] }
 0x293   :  { %v8111_v62 = vor.u32 %v9612_v11, %v8108_v29  ;;  %v7987_v11 = vor.u32 %v9583_v47, %v7986_v16  ;;  %v7970_v29 = vld [vmem:[#allocation8 + $0x148] sm:$0xf] }
 0x294   :  { %5122 = vmatpush.bf16.msrb.mxu2 %v8127_v14  ;;  %5136 = vmatpush.bf16.msrb.mxu0 %v8255_v4  ;;  %v8204_v14 = vld [vmem:[#allocation8 + $0x330] sm:$0xf0]  ;;  %v3257_v4 = vadd.f32 %v3256_v40, %v588_v49  ;;  %v8562_v47 = vld [vmem:[#allocation8 + $0x5e8] sm:$0xf] }
 0x295   :  { %5152 = vmatpush.bf16.msra.mxu3 %v8351_v15  ;;  %v9559_v15 = vld [vmem:[#allocation8 + $0xb4] sm:$0xf0]  ;;  %v8207_v8 = vor.u32 %v9636_v31, %v8204_v14  ;;  %v8434_v31 = vld [vmem:[#allocation8 + $0x4e8] sm:$0xf] }
 0x296   :  { %5167 = vmatpush.bf16.msra.mxu1 %v8463_v7  ;;  %v7891_v26 = vor.u32 %v9559_v15, %v7890_v3  ;;  %v8019_v7 = vor.u32 %v9591_v28, %v8018_v54  ;;  %v7842_v3 = vld [vmem:[#allocation8 + $0x48] sm:$0xf]  ;;  %v9547_v15 = vld [vmem:[#allocation8 + $0x54] sm:$0xf0] }
 0x297   :  { %v9579_v28 = vld [vmem:[#allocation8 + $0x154] sm:$0xf0] }
 0x298   :  { %5123 = vmatpush.bf16.msrb.mxu2 %v8111_v62  ;;  %5137 = vmatpush.bf16.msrb.mxu0 %v8239_v59  ;;  %v8188_v59 = vld [vmem:[#allocation8 + $0x310] sm:$0xf0]  ;;  %v7971_v20 = vor.u32 %v9579_v28, %v7970_v29  ;;  %v8418_v29 = vld [vmem:[#allocation8 + $0x4c8] sm:$0xf]  ;;  %v9723_v28 = vld [vmem:[#allocation8 + $0x5d4] sm:$0xf0] }
 0x299   :  { %5153 = vmatpush.bf16.msra.mxu3 %v8335_v36  ;;  %v587_v36 = vperm.slane %v10601_v17, 6  ;;  %v3284_v9 = vpop.f32.mrf.mxu1 }
 0x29a   :  { %5168 = vmatpush.bf16.msra.mxu1 %v8447_v52  ;;  %v9551_v52 = vld [vmem:[#allocation8 + $0x74] sm:$0xf0] }
 0x29b   :  { %v3159_v38 = vadd.f32 %v10571_v43, %v587_v36  ;;  %v8060_v43 = vld [vmem:[#allocation8 + $0x210] sm:$0xf0]  ;;  %v3161_v44 = vadd.f32 %v10579_v46, %v587_v36  ;;  %v9539_v46 = vld [vmem:[#allocation8 + $0x14] sm:$0xf0]  ;;  %v7938_v36 = vld [vmem:[#allocation8 + $0x108] sm:$0xf] }
 0x29c   :  { %5124 = vmatpush.bf16.msrb.mxu2 %v8095_v55  ;;  %5138 = vmatpush.bf16.msrb.mxu0 %v8223_v33  ;;  %v8063_v62 = vor.u32 %v9600_v13, %v8060_v43  ;;  %v7954_v55 = vld [vmem:[#allocation8 + $0x128] sm:$0xf]  ;;  %v9691_v13 = vld [vmem:[#allocation8 + $0x4d4] sm:$0xf0] }
 0x29d   :  { %5154 = vmatpush.bf16.msra.mxu3 %v8319_v0  ;;  %5169 = vmatmul.bf16.vlgmr.msra.gmra.mxu1 %v10565_v30  ;;  %v7875_v0 = vor.u32 %v9555_v39, %v7874_v34  ;;  %v3173_v54 = vadd.f32 %v10576_v41, %v3159_v38  ;;  %v8191_v34 = vor.u32 %v9632_v1, %v8188_v59  ;;  %v9543_v41 = vld [vmem:[#allocation8 + $0x34] sm:$0xf0] }
 0x29e   :  { %5217 = vmatpush.bf16.msrb.mxu1 %v8051_v22  ;;  %v8076_v22 = vld [vmem:[#allocation8 + $0x230] sm:$0xf0]  ;;  %v3271_v39 = vadd.f32 %v10598_v12, %v3257_v4  ;;  %v3175_v12 = vadd.f32 %v10587_v23, %v3161_v44  ;;  %v9695_v38 = vld [vmem:[#allocation8 + $0x4f4] sm:$0xf0]  ;;  %v8530_v44 = vld [vmem:[#allocation8 + $0x5a8] sm:$0xf] }
 0x29f   :  { %v8079_v63 = vor.u32 %v9604_v42, %v8076_v22  ;;  %v3187_v48 = vadd.f32 %v10569_v35, %v3173_v54  ;;  %v9571_v22 = vld [vmem:[#allocation8 + $0x114] sm:$0xf0]  ;;  %v8435_v17 = vor.u32 %v9695_v38, %v8434_v31  ;;  %v8546_v54 = vld [vmem:[#allocation8 + $0x5c8] sm:$0xf] }
 0x2a0   :  { %5155 = vmatmul.bf16.vlgmr.msra.gmra.mxu3 %v10563_v56  ;;  %5139 = vmatpush.bf16.msrb.mxu0 %v8207_v8  ;;  %v3285_v33 = vadd.f32 %v3284_v9, %v3271_v39  ;;  %v3189_v4 = vadd.f32 %v10573_v27, %v3175_v12  ;;  %v8419_v27 = vor.u32 %v9691_v13, %v8418_v29  ;;  %v9687_v39 = vld [vmem:[#allocation8 + $0x4b4] sm:$0xf0] }
 0x2a1   :  { %5203 = vmatpush.bf16.msrb.mxu3 %v7923_v37  ;;  %v10605_v37 = vpop.f32.mrf.mxu3  ;;  %5125 = vmatpush.bf16.msrb.mxu2 %v8079_v63  ;;  %v3286_v40 = vpop.f32.mrf.mxu1  ;;  %v9727_v63 = vld [vmem:[#allocation8 + $0x5f4] sm:$0xf0] }
 0x2a2   :  { %5218 = vmatpush.bf16.msrb.mxu1 %v8035_v58  ;;  %v3272_v58 = vpop.f32.mrf.mxu0  ;;  %v9711_v31 = vld [vmem:[#allocation8 + $0x574] sm:$0xf0] }
 0x2a4   :  { %5140 = vmatpush.bf16.msrb.mxu0 %v8191_v34  ;;  %v8402_v34 = vld [vmem:[#allocation8 + $0x4a8] sm:$0xf] }
 0x2a5   :  { %5204 = vmatpush.bf16.msrb.mxu3 %v7907_v50  ;;  %v7859_v50 = vor.u32 %v9551_v52, %v7858_v57  ;;  %5126 = vmatpush.bf16.msrb.mxu2 %v8063_v62  ;;  %v7955_v57 = vor.u32 %v9575_v5, %v7954_v55  ;;  %v7810_v52 = vld [vmem:[#allocation8 + $0x8] sm:$0xf]  ;;  %v9683_v55 = vld [vmem:[#allocation8 + $0x494] sm:$0xf0] }
 0x2a6   :  { %5219 = vmatpush.bf16.msrb.mxu1 %v8019_v7  ;;  %v7843_v7 = vor.u32 %v9547_v15, %v7842_v3  ;;  %v7811_v8 = vor.u32 %v9539_v46, %v7810_v52 }
 0x2a9   :  { %5205 = vmatpush.bf16.msrb.mxu3 %v7891_v26  ;;  %v3258_v26 = vpop.f32.mrf.mxu2  ;;  %v3298_v2 = vpop.f32.mrf.mxu3 }
 0x2aa   :  { %5220 = vmatpush.bf16.msrb.mxu1 %v8003_v18  ;;  %v3201_v18 = vadd.f32 %v10583_v21, %v3187_v48  ;;  %v3259_v42 = vadd.f32 %v3258_v26, %v588_v49  ;;  %v3299_v35 = vadd.f32 %v3298_v2, %v3285_v33  ;;  %v3326_v16 = vpop.f32.mrf.mxu0  ;;  %v7939_v21 = vor.u32 %v9571_v22, %v7938_v36  ;;  %v8386_v48 = vld [vmem:[#allocation8 + $0x488] sm:$0xf] }
 0x2ab   :  { %v8547_v26 = vor.u32 %v9723_v28, %v8546_v54  ;;  %v8514_v33 = vld [vmem:[#allocation8 + $0x588] sm:$0xf]  ;;  %v8387_v46 = vor.u32 %v9683_v55, %v8386_v48  ;;  %v9667_v55 = vld [vmem:[#allocation8 + $0x414] sm:$0xf0] }
 0x2ac   :  { %v3215_v23 = vadd.f32 %v10585_v32, %v3201_v18  ;;  %v3273_v3 = vadd.f32 %v3272_v58, %v3259_v42  ;;  %v3203_v32 = vadd.f32 %v10591_v53, %v3189_v4  ;;  %v9719_v53 = vld [vmem:[#allocation8 + $0x5b4] sm:$0xf0]  ;;  %v8370_v42 = vld [vmem:[#allocation8 + $0x468] sm:$0xf] }
 0x2ad   :  { %5206 = vmatpush.bf16.msrb.mxu3 %v7875_v0  ;;  %v7827_v0 = vor.u32 %v9543_v41, %v7826_v19  ;;  %v8531_v41 = vor.u32 %v9719_v53, %v8530_v44  ;;  %v8498_v22 = vld [vmem:[#allocation8 + $0x568] sm:$0xf]  ;;  %v9703_v44 = vld [vmem:[#allocation8 + $0x534] sm:$0xf0] }
 0x2ae   :  { %5221 = vmatpush.bf16.msrb.mxu1 %v7987_v11  ;;  %v3229_v49 = vadd.f32 %v10593_v51, %v3215_v23  ;;  %v8563_v11 = vor.u32 %v9727_v63, %v8562_v47  ;;  %v3287_v62 = vadd.f32 %v3286_v40, %v3273_v3  ;;  %v3217_v59 = vadd.f32 %v10595_v45, %v3203_v32  ;;  %v9756_v23 = vld [vmem:[#allocation8 + $0x6e4] sm:$0xf]  ;;  %v8482_v3 = vld [vmem:[#allocation8 + $0x548] sm:$0xf] }
 0x2af   :  { %v8403_v45 = vor.u32 %v9687_v39, %v8402_v34  ;;  %v9752_v32 = vld [vmem:[#allocation8 + $0x6c4] sm:$0xf]  ;;  %v8338_v34 = vld [vmem:[#allocation8 + $0x428] sm:$0xf]  ;;  %v9671_v39 = vld [vmem:[#allocation8 + $0x434] sm:$0xf0] }
 0x2b0   :  { %v3243_v51 = vadd.f32 %v10581_v60, %v3229_v49  ;;  %v3231_v40 = vadd.f32 %v10605_v37, %v3217_v59  ;;  %v9675_v49 = vld [vmem:[#allocation8 + $0x454] sm:$0xf0]  ;;  %v8322_v48 = vld [vmem:[#allocation8 + $0x408] sm:$0xf] }
 0x2b1   :  { %5207 = vmatpush.bf16.msrb.mxu3 %v7859_v50  ;;  %v3312_v9 = vpop.f32.mrf.mxu2  ;;  %v3340_v50 = vpop.f32.mrf.mxu1 }
 0x2b2   :  { %5222 = vmatpush.bf16.msrb.mxu1 %v7971_v20  ;;  %v3313_v14 = vadd.f32 %v3312_v9, %v3299_v35  ;;  %v3300_v43 = vpop.f32.mrf.mxu3  ;;  %v3328_v19 = vpop.f32.mrf.mxu0  ;;  %v3245_v12 = vadd.f32 %v10589_v25, %v3231_v40  ;;  %v9679_v35 = vld [vmem:[#allocation8 + $0x474] sm:$0xf0]  ;;  %v8684_v25 = vld [vmem:[#allocation8 + $0x6f0] sm:$0xf0] }
 0x2b3   :  { %v3301_v58 = vadd.f32 %v3300_v43, %v3287_v62  ;;  %v8371_v63 = vor.u32 %v9679_v35, %v8370_v42  ;;  %v8687_v54 = vor.u32 %v9756_v23, %v8684_v25  ;;  %v8668_v62 = vld [vmem:[#allocation8 + $0x6d0] sm:$0xf0]  ;;  %v8036_v23 = vld [vmem:[#allocation8 + $0x1d8] sm:$0xf0] }
 0x2b4   :  { %v3327_v15 = vadd.f32 %v3326_v16, %v3313_v14  ;;  %v9788_v14 = vld [vmem:[#allocation8 + $0x7e4] sm:$0xf]  ;;  %v8671_v53 = vor.u32 %v9752_v32, %v8668_v62  ;;  %v8636_v35 = vld [vmem:[#allocation8 + $0x690] sm:$0xf0] }
 0x2b5   :  { %5208 = vmatpush.bf16.msrb.mxu3 %v7843_v7  ;;  %v9768_v32 = vld [vmem:[#allocation8 + $0x744] sm:$0xf]  ;;  %v8732_v62 = vld [vmem:[#allocation8 + $0x750] sm:$0xf0] }
 0x2b6   :  { %5223 = vmatpush.bf16.msrb.mxu1 %v7955_v57  ;;  %v3341_v1 = vadd.f32 %v3340_v50, %v3327_v15  ;;  %v8499_v50 = vor.u32 %v9711_v31, %v8498_v22  ;;  %v9707_v15 = vld [vmem:[#allocation8 + $0x554] sm:$0xf0]  ;;  %v9776_v22 = vld [vmem:[#allocation8 + $0x784] sm:$0xf]  ;;  %v8764_v31 = vld [vmem:[#allocation8 + $0x790] sm:$0xf0] }
 0x2b8   :  { %v3348_v2 = vpack.c.bf16 %v3341_v1, %v3243_v51  ;;  %v8483_v51 = vor.u32 %v9707_v15, %v8482_v3  ;;  %v9557_v3 = vld [vmem:[#allocation8 + $0xac] sm:$0xf]  ;;  %v7892_v15 = vld [vmem:[#allocation8 + $0xb8] sm:$0xf0] }
 0x2b9   :  { %5209 = vmatpush.bf16.msrb.mxu3 %v7827_v0  ;;  %v3314_v7 = vpop.f32.mrf.mxu2  ;;  %v3342_v5 = vpop.f32.mrf.mxu1  ;;  %v9715_v0 = vld [vmem:[#allocation8 + $0x594] sm:$0xf0] }
 0x2ba   :  { %5224 = vmatpush.bf16.msrb.mxu1 %v7939_v21  ;;  %v3315_v20 = vadd.f32 %v3314_v7, %v3301_v58  ;;  %v3359_v57 = vunpack.c.l.bf16 %v3348_v2  ;;  %v3360_v52 = vunpack.c.h.bf16 %v3348_v2  ;;  %v8515_v18 = vor.u32 %v9715_v0, %v8514_v33  ;;  %v8812_v21 = vld [vmem:[#allocation8 + $0x7f0] sm:$0xf0]  ;;  %v9784_v58 = vld [vmem:[#allocation8 + $0x7c4] sm:$0xf]  ;;  %v8466_v7 = vld [vmem:[#allocation8 + $0x528] sm:$0xf] }
 0x2bb   :  { %v8815_v28 = vor.u32 %v9788_v14, %v8812_v21  ;;  %v9748_v2 = vld [vmem:[#allocation8 + $0x6a4] sm:$0xf]  ;;  %v9699_v33 = vld [vmem:[#allocation8 + $0x514] sm:$0xf0]  ;;  %v9565_v0 = vld [vmem:[#allocation8 + $0xec] sm:$0xf]  ;;  %v8767_v14 = vor.u32 %v9776_v22, %v8764_v31 }
 0x2bc   :  { %v3329_v60 = vadd.f32 %v3328_v19, %v3315_v20  ;;  %v3375_v38 = vmul.f32 0.20019531, %v3359_v57  ;;  %v3376_v16 = vmul.f32 0.20019531, %v3360_v52  ;;  %v8652_v20 = vld [vmem:[#allocation8 + $0x6b0] sm:$0xf0]  ;;  %v9780_v19 = vld [vmem:[#allocation8 + $0x7a4] sm:$0xf] }
 0x2bd   :  { %5210 = vmatpush.bf16.msrb.mxu3 %v7811_v8  ;;  %5225 = vmatmul.bf16.vlgmr.msrb.gmra.mxu1 %v10531_v61  ;;  %v8748_v21 = vld [vmem:[#allocation8 + $0x770] sm:$0xf0]  ;;  %v9545_v22 = vld [vmem:[#allocation8 + $0x4c] sm:$0xf]  ;;  %v7844_v31 = vld [vmem:[#allocation8 + $0x58] sm:$0xf0] }
 0x2be   :  { %5273 = vmatpush.bf16.msra.mxu1 %v8563_v11  ;;  %v3343_v37 = vadd.f32 %v3342_v5, %v3329_v60  ;;  %v3415_v11 = vmax.f32 %v3359_v57, %v3375_v38  ;;  %v3416_v29 = vmax.f32 %v3360_v52, %v3376_v16  ;;  %v8467_v60 = vor.u32 %v9703_v44, %v8466_v7  ;;  %v8450_v5 = vld [vmem:[#allocation8 + $0x508] sm:$0xf]  ;;  %v9597_v57 = vld [vmem:[#allocation8 + $0x1ec] sm:$0xf]  ;;  %v8052_v52 = vld [vmem:[#allocation8 + $0x1f8] sm:$0xf0] }
 0x2bf   :  { %v8451_v42 = vor.u32 %v9699_v33, %v8450_v5  ;;  %v8055_v16 = vor.u32 %v9597_v57, %v8052_v52  ;;  %v8735_v44 = vor.u32 %v9768_v32, %v8732_v62  ;;  %v9760_v57 = vld [vmem:[#allocation8 + $0x704] sm:$0xf]  ;;  %v8700_v52 = vld [vmem:[#allocation8 + $0x710] sm:$0xf0]  ;;  %v9655_v62 = vld [vmem:[#allocation8 + $0x3b4] sm:$0xf0] }
 0x2c0   :  { %5211 = vmatmul.bf16.vlgmr.msrb.gmra.mxu3 %v10527_v24  ;;  %v3352_v36 = vpack.c.bf16 %v3343_v37, %v3245_v12  ;;  %v7924_v12 = vld [vmem:[#allocation8 + $0xf8] sm:$0xf0]  ;;  %v8655_v37 = vor.u32 %v9748_v2, %v8652_v20  ;;  %v9764_v2 = vld [vmem:[#allocation8 + $0x724] sm:$0xf]  ;;  %v8716_v20 = vld [vmem:[#allocation8 + $0x730] sm:$0xf0] }
 0x2c1   :  { %5259 = vmatpush.bf16.msra.mxu3 %v8435_v17  ;;  %v8354_v17 = vld [vmem:[#allocation8 + $0x448] sm:$0xf]  ;;  %v7927_v38 = vor.u32 %v9565_v0, %v7924_v12  ;;  %v8719_v33 = vor.u32 %v9764_v2, %v8716_v20  ;;  %v9728_v0 = vld [vmem:[#allocation8 + $0x604] sm:$0xf]  ;;  %v8572_v12 = vld [vmem:[#allocation8 + $0x610] sm:$0xf0] }
 0x2c2   :  { %5274 = vmatpush.bf16.msra.mxu1 %v8547_v26  ;;  %v3367_v9 = vunpack.c.l.bf16 %v3352_v36  ;;  %v3368_v47 = vunpack.c.h.bf16 %v3352_v36  ;;  %v8355_v59 = vor.u32 %v9675_v49, %v8354_v17  ;;  %v8796_v26 = vld [vmem:[#allocation8 + $0x7d0] sm:$0xf0]  ;;  %v9744_v36 = vld [vmem:[#allocation8 + $0x684] sm:$0xf]  ;;  %v8130_v2 = vld [vmem:[#allocation8 + $0x288] sm:$0xf] }
 0x2c3   :  { %v8799_v40 = vor.u32 %v9784_v58, %v8796_v26  ;;  %v8639_v25 = vor.u32 %v9744_v36, %v8636_v35  ;;  %v9553_v58 = vld [vmem:[#allocation8 + $0x8c] sm:$0xf]  ;;  %v7876_v26 = vld [vmem:[#allocation8 + $0x98] sm:$0xf0]  ;;  %v9663_v35 = vld [vmem:[#allocation8 + $0x3f4] sm:$0xf0] }
 0x2c4   :  { %v3383_v8 = vmul.f32 0.20019531, %v3367_v9  ;;  %v3384_v4 = vmul.f32 0.20019531, %v3368_v47 }
 0x2c5   :  { %5260 = vmatpush.bf16.msra.mxu3 %v8419_v27 }
 0x2c6   :  { %5275 = vmatpush.bf16.msra.mxu1 %v8531_v41  ;;  %v3423_v13 = vmax.f32 %v3367_v9, %v3383_v8  ;;  %v3424_v43 = vmax.f32 %v3368_v47, %v3384_v4  ;;  %v8780_v41 = vld [vmem:[#allocation8 + $0x7b0] sm:$0xf0]  ;;  %v9561_v9 = vld [vmem:[#allocation8 + $0xcc] sm:$0xf]  ;;  %v7908_v47 = vld [vmem:[#allocation8 + $0xd8] sm:$0xf0] }
 0x2c7   :  { %v9740_v8 = vld [vmem:[#allocation8 + $0x664] sm:$0xf]  ;;  %v8620_v4 = vld [vmem:[#allocation8 + $0x670] sm:$0xf0]  ;;  %v7911_v17 = vor.u32 %v9561_v9, %v7908_v47  ;;  %v8575_v9 = vor.u32 %v9728_v0, %v8572_v12  ;;  %v8703_v47 = vor.u32 %v9760_v57, %v8700_v52  ;;  %v9721_v0 = vld [vmem:[#allocation8 + $0x5cc] sm:$0xf] }
 0x2c8   :  { %v10628_v1 = vpack.c.bf16 %v3423_v13, %v3415_v11  ;;  %v10630_v27 = vpack.c.bf16 %v3424_v43, %v3416_v29  ;;  %v9589_v11 = vld [vmem:[#allocation8 + $0x1ac] sm:$0xf]  ;;  %v8020_v29 = vld [vmem:[#allocation8 + $0x1b8] sm:$0xf0]  ;;  %v8623_v13 = vor.u32 %v9740_v8, %v8620_v4  ;;  %v7847_v8 = vor.u32 %v9545_v22, %v7844_v31 }
 0x2c9   :  { %5261 = vmatpush.bf16.msra.mxu3 %v8403_v45  ;;  %v8339_v45 = vor.u32 %v9671_v39, %v8338_v34  ;;  %v9585_v34 = vld [vmem:[#allocation8 + $0x18c] sm:$0xf]  ;;  %v8004_v39 = vld [vmem:[#allocation8 + $0x198] sm:$0xf0] }
 0x2ca   :  { %5276 = vmatpush.bf16.msra.mxu1 %v8515_v18  ;;  %5071 = vmatmul.bf16.vlgmr.msra.gmra.mxu2 %v10628_v1  ;;  %v8323_v18 = vor.u32 %v9667_v55, %v8322_v48  ;;  %v9581_v48 = vld [vmem:[#allocation8 + $0x16c] sm:$0xf]  ;;  %v7988_v55 = vld [vmem:[#allocation8 + $0x178] sm:$0xf0] }
 0x2cb   :  { %5085 = vmatmul.bf16.vlgmr.msra.gmra.mxu0 %v10630_v27  ;;  %5175 = vmatpush.bf16.msra.mxu2 %v8687_v54  ;;  %v9736_v54 = vld [vmem:[#allocation8 + $0x644] sm:$0xf]  ;;  %v8548_v12 = vld [vmem:[#allocation8 + $0x5d8] sm:$0xf0]  ;;  %v9685_v22 = vld [vmem:[#allocation8 + $0x4ac] sm:$0xf] }
 0x2cc   :  { %5189 = vmatpush.bf16.msra.mxu0 %v8815_v28  ;;  %v8604_v28 = vld [vmem:[#allocation8 + $0x650] sm:$0xf0]  ;;  %v8404_v31 = vld [vmem:[#allocation8 + $0x4b8] sm:$0xf0] }
 0x2cd   :  { %5262 = vmatpush.bf16.msra.mxu3 %v8387_v46  ;;  %v8783_v46 = vor.u32 %v9780_v19, %v8780_v41  ;;  %v8607_v7 = vor.u32 %v9736_v54, %v8604_v28  ;;  %v7879_v19 = vor.u32 %v9553_v58, %v7876_v26  ;;  %v7860_v41 = vld [vmem:[#allocation8 + $0x78] sm:$0xf0]  ;;  %v8274_v54 = vld [vmem:[#allocation8 + $0x3a8] sm:$0xf]  ;;  %v9569_v58 = vld [vmem:[#allocation8 + $0x10c] sm:$0xf] }
 0x2ce   :  { %5277 = vmatpush.bf16.msra.mxu1 %v8499_v50  ;;  %v9772_v50 = vld [vmem:[#allocation8 + $0x764] sm:$0xf]  ;;  %v7940_v26 = vld [vmem:[#allocation8 + $0x118] sm:$0xf0] }
 0x2cf   :  { %5176 = vmatpush.bf16.msra.mxu2 %v8671_v53  ;;  %v8751_v43 = vor.u32 %v9772_v50, %v8748_v21  ;;  %v9732_v53 = vld [vmem:[#allocation8 + $0x624] sm:$0xf]  ;;  %v8290_v50 = vld [vmem:[#allocation8 + $0x3c8] sm:$0xf]  ;;  %v9659_v21 = vld [vmem:[#allocation8 + $0x3d4] sm:$0xf0] }
 0x2d0   :  { %5190 = vmatpush.bf16.msra.mxu0 %v8799_v40  ;;  %v8588_v40 = vld [vmem:[#allocation8 + $0x630] sm:$0xf0] }
 0x2d1   :  { %5263 = vmatpush.bf16.msra.mxu3 %v8371_v63  ;;  %v9593_v63 = vld [vmem:[#allocation8 + $0x1cc] sm:$0xf]  ;;  %v8591_v5 = vor.u32 %v9732_v53, %v8588_v40  ;;  %v8275_v40 = vor.u32 %v9655_v62, %v8274_v54  ;;  %v8500_v62 = vld [vmem:[#allocation8 + $0x578] sm:$0xf0] }
 0x2d2   :  { %5278 = vmatpush.bf16.msra.mxu1 %v8483_v51  ;;  %v8039_v49 = vor.u32 %v9593_v63, %v8036_v23  ;;  %v8023_v51 = vor.u32 %v9589_v11, %v8020_v29  ;;  %v8291_v29 = vor.u32 %v9659_v21, %v8290_v50  ;;  %v9681_v50 = vld [vmem:[#allocation8 + $0x48c] sm:$0xf]  ;;  %v8388_v21 = vld [vmem:[#allocation8 + $0x498] sm:$0xf0] }
 0x2d3   :  { %5177 = vmatpush.bf16.msra.mxu2 %v8655_v37  ;;  %v8178_v37 = vld [vmem:[#allocation8 + $0x2e8] sm:$0xf]  ;;  %v9677_v54 = vld [vmem:[#allocation8 + $0x46c] sm:$0xf] }
 0x2d4   :  { %5191 = vmatpush.bf16.msra.mxu0 %v8783_v46  ;;  %v9631_v46 = vld [vmem:[#allocation8 + $0x2f4] sm:$0xf0] }
 0x2d5   :  { %5264 = vmatpush.bf16.msra.mxu3 %v8355_v59  ;;  %v7895_v59 = vor.u32 %v9557_v3, %v7892_v15  ;;  %v8179_v63 = vor.u32 %v9631_v46, %v8178_v37  ;;  %v9573_v3 = vld [vmem:[#allocation8 + $0x12c] sm:$0xf]  ;;  %v7956_v15 = vld [vmem:[#allocation8 + $0x138] sm:$0xf0]  ;;  %v8114_v37 = vld [vmem:[#allocation8 + $0x268] sm:$0xf] }
 0x2d6   :  { %5279 = vmatpush.bf16.msra.mxu1 %v8467_v60  ;;  %v9549_v60 = vld [vmem:[#allocation8 + $0x6c] sm:$0xf]  ;;  %v7959_v32 = vor.u32 %v9573_v3, %v7956_v15  ;;  %v9615_v46 = vld [vmem:[#allocation8 + $0x274] sm:$0xf0] }
 0x2d7   :  { %5178 = vmatpush.bf16.msra.mxu2 %v8639_v25  ;;  %v7863_v36 = vor.u32 %v9549_v60, %v7860_v41  ;;  %v8162_v25 = vld [vmem:[#allocation8 + $0x2c8] sm:$0xf]  ;;  %v9651_v41 = vld [vmem:[#allocation8 + $0x394] sm:$0xf0] }
 0x2d8   :  { %5192 = vmatpush.bf16.msra.mxu0 %v8767_v14  ;;  %v9627_v14 = vld [vmem:[#allocation8 + $0x2d4] sm:$0xf0]  ;;  %v8258_v60 = vld [vmem:[#allocation8 + $0x388] sm:$0xf] }
 0x2d9   :  { %5265 = vmatpush.bf16.msra.mxu3 %v8339_v45  ;;  %v8007_v45 = vor.u32 %v9585_v34, %v8004_v39  ;;  %v8163_v11 = vor.u32 %v9627_v14, %v8162_v25  ;;  %v9693_v34 = vld [vmem:[#allocation8 + $0x4ec] sm:$0xf]  ;;  %v8436_v39 = vld [vmem:[#allocation8 + $0x4f8] sm:$0xf0]  ;;  %v8259_v52 = vor.u32 %v9651_v41, %v8258_v60  ;;  %v8226_v25 = vld [vmem:[#allocation8 + $0x348] sm:$0xf] }
 0x2da   :  { %5280 = vmatpush.bf16.msra.mxu1 %v8451_v42  ;;  %5127 = vmatmul.bf16.vlgmr.msrb.gmra.mxu2 %v10538_v6  ;;  %v8306_v42 = vld [vmem:[#allocation8 + $0x3e8] sm:$0xf]  ;;  %v9643_v14 = vld [vmem:[#allocation8 + $0x354] sm:$0xf0]  ;;  %v9705_v60 = vld [vmem:[#allocation8 + $0x54c] sm:$0xf] }
 0x2db   :  { %5141 = vmatmul.bf16.vlgmr.msrb.gmra.mxu0 %v10543_v10  ;;  %5179 = vmatpush.bf16.msra.mxu2 %v8623_v13  ;;  %v8307_v23 = vor.u32 %v9663_v35, %v8306_v42  ;;  %v8146_v13 = vld [vmem:[#allocation8 + $0x2a8] sm:$0xf]  ;;  %v8551_v35 = vor.u32 %v9721_v0, %v8548_v12  ;;  %v8227_v15 = vor.u32 %v9643_v14, %v8226_v25  ;;  %v8484_v41 = vld [vmem:[#allocation8 + $0x558] sm:$0xf0]  ;;  %v9755_v12 = vld [vmem:[#allocation8 + $0x6d4] sm:$0xf0] }
 0x2dc   :  { %5193 = vmatpush.bf16.msra.mxu0 %v8751_v43  ;;  %v9623_v43 = vld [vmem:[#allocation8 + $0x2b4] sm:$0xf0]  ;;  %v8674_v0 = vld [vmem:[#allocation8 + $0x6c8] sm:$0xf]  ;;  %v9665_v25 = vld [vmem:[#allocation8 + $0x40c] sm:$0xf] }
 0x2dd   :  { %5266 = vmatpush.bf16.msra.mxu3 %v8323_v18  ;;  %5281 = vmatmul.bf16.vlgmr.msra.gmra.mxu1 %v10565_v30  ;;  %v7991_v18 = vor.u32 %v9581_v48, %v7988_v55  ;;  %v8147_v53 = vor.u32 %v9623_v43, %v8146_v13  ;;  %v8439_v48 = vor.u32 %v9693_v34, %v8436_v39  ;;  %v9639_v13 = vld [vmem:[#allocation8 + $0x334] sm:$0xf0]  ;;  %v8194_v34 = vld [vmem:[#allocation8 + $0x308] sm:$0xf]  ;;  %v8324_v14 = vld [vmem:[#allocation8 + $0x418] sm:$0xf0] }
 0x2de   :  { %5329 = vmatpush.bf16.msrb.mxu1 %v8055_v16  ;;  %v7972_v16 = vld [vmem:[#allocation8 + $0x158] sm:$0xf0]  ;;  %v9635_v39 = vld [vmem:[#allocation8 + $0x314] sm:$0xf0] }
 0x2df   :  { %5180 = vmatpush.bf16.msra.mxu2 %v8607_v7  ;;  %v9725_v7 = vld [vmem:[#allocation8 + $0x5ec] sm:$0xf] }
 0x2e0   :  { %5267 = vmatmul.bf16.vlgmr.msra.gmra.mxu3 %v10563_v56  ;;  %5194 = vmatpush.bf16.msra.mxu0 %v8735_v44  ;;  %v8564_v44 = vld [vmem:[#allocation8 + $0x5f8] sm:$0xf0] }
 0x2e1   :  { %5315 = vmatpush.bf16.msrb.mxu3 %v7927_v38  ;;  %v9577_v38 = vld [vmem:[#allocation8 + $0x14c] sm:$0xf]  ;;  %v8567_v55 = vor.u32 %v9725_v7, %v8564_v44  ;;  %v8690_v7 = vld [vmem:[#allocation8 + $0x6e8] sm:$0xf]  ;;  %v9759_v44 = vld [vmem:[#allocation8 + $0x6f4] sm:$0xf0] }
 0x2e2   :  { %5330 = vmatpush.bf16.msrb.mxu1 %v8039_v49  ;;  %v7975_v4 = vor.u32 %v9577_v38, %v7972_v16  ;;  %v7828_v49 = vld [vmem:[#allocation8 + $0x38] sm:$0xf0]  ;;  %v9717_v38 = vld [vmem:[#allocation8 + $0x5ac] sm:$0xf] }
 0x2e3   :  { %5181 = vmatpush.bf16.msra.mxu2 %v8591_v5  ;;  %v9689_v5 = vld [vmem:[#allocation8 + $0x4cc] sm:$0xf]  ;;  %v8532_v16 = vld [vmem:[#allocation8 + $0x5b8] sm:$0xf0] }
 0x2e4   :  { %5195 = vmatpush.bf16.msra.mxu0 %v8719_v33  ;;  %v8420_v33 = vld [vmem:[#allocation8 + $0x4d8] sm:$0xf0] }
 0x2e5   :  { %5316 = vmatpush.bf16.msrb.mxu3 %v7911_v17  ;;  %v9541_v17 = vld [vmem:[#allocation8 + $0x2c] sm:$0xf]  ;;  %v8423_v42 = vor.u32 %v9689_v5, %v8420_v33  ;;  %v8691_v5 = vor.u32 %v9759_v44, %v8690_v7  ;;  %v8594_v7 = vld [vmem:[#allocation8 + $0x628] sm:$0xf]  ;;  %v9735_v44 = vld [vmem:[#allocation8 + $0x634] sm:$0xf0] }
 0x2e6   :  { %5331 = vmatpush.bf16.msrb.mxu1 %v8023_v51  ;;  %v7831_v28 = vor.u32 %v9541_v17, %v7828_v49  ;;  %v7812_v51 = vld [vmem:[#allocation8 + $0x18] sm:$0xf0]  ;;  %v9713_v17 = vld [vmem:[#allocation8 + $0x58c] sm:$0xf] }
 0x2e7   :  { %5182 = vmatpush.bf16.msra.mxu2 %v8575_v9  ;;  %v8115_v9 = vor.u32 %v9615_v46, %v8114_v37  ;;  %v8516_v49 = vld [vmem:[#allocation8 + $0x598] sm:$0xf0]  ;;  %v8802_v37 = vld [vmem:[#allocation8 + $0x7c8] sm:$0xf]  ;;  %v9787_v46 = vld [vmem:[#allocation8 + $0x7d4] sm:$0xf0] }
 0x2e8   :  { %5196 = vmatpush.bf16.msra.mxu0 %v8703_v47  ;;  %v8519_v43 = vor.u32 %v9713_v17, %v8516_v49  ;;  %v8642_v17 = vld [vmem:[#allocation8 + $0x688] sm:$0xf]  ;;  %v8327_v49 = vor.u32 %v9665_v25, %v8324_v14 }
 0x2e9   :  { %5317 = vmatpush.bf16.msrb.mxu3 %v7895_v59  ;;  %v9537_v59 = vld [vmem:[#allocation8 + $0xc] sm:$0xf] }
 0x2ea   :  { %5332 = vmatpush.bf16.msrb.mxu1 %v8007_v45  ;;  %5183 = vmatmul.bf16.vlgmr.msra.gmra.mxu2 %v10628_v1  ;;  %v7815_v20 = vor.u32 %v9537_v59, %v7812_v51  ;;  %v9619_v45 = vld [vmem:[#allocation8 + $0x294] sm:$0xf0] }
 0x2eb   :  { %5231 = vmatpush.bf16.msrb.mxu2 %v8179_v63  ;;  %5197 = vmatmul.bf16.vlgmr.msra.gmra.mxu0 %v10630_v27  ;;  %v8131_v57 = vor.u32 %v9619_v45, %v8130_v2  ;;  %v8098_v63 = vld [vmem:[#allocation8 + $0x248] sm:$0xf]  ;;  %v8356_v45 = vld [vmem:[#allocation8 + $0x458] sm:$0xf0] }
 0x2ec   :  { %5245 = vmatpush.bf16.msrb.mxu0 %v8307_v23  ;;  %v9611_v23 = vld [vmem:[#allocation8 + $0x254] sm:$0xf0]  ;;  %v8818_v2 = vld [vmem:[#allocation8 + $0x7e8] sm:$0xf] }
 0x2ed   :  { %5318 = vmatpush.bf16.msrb.mxu3 %v7879_v19  ;;  %v7943_v19 = vor.u32 %v9569_v58, %v7940_v26  ;;  %v8099_v3 = vor.u32 %v9611_v23, %v8098_v63  ;;  %v8066_v58 = vld [vmem:[#allocation8 + $0x208] sm:$0xf]  ;;  %v9603_v26 = vld [vmem:[#allocation8 + $0x214] sm:$0xf0] }
 0x2ee   :  { %5333 = vmatpush.bf16.msrb.mxu1 %v7991_v18  ;;  %v9647_v18 = vld [vmem:[#allocation8 + $0x374] sm:$0xf0]  ;;  %v8786_v63 = vld [vmem:[#allocation8 + $0x7a8] sm:$0xf] }
 0x2ef   :  { %5232 = vmatpush.bf16.msrb.mxu2 %v8163_v11  ;;  %v8082_v11 = vld [vmem:[#allocation8 + $0x228] sm:$0xf]  ;;  %v9783_v23 = vld [vmem:[#allocation8 + $0x7b4] sm:$0xf0] }
 0x2f0   :  { %5246 = vmatpush.bf16.msrb.mxu0 %v8291_v29  ;;  %v9607_v29 = vld [vmem:[#allocation8 + $0x234] sm:$0xf0] }
 0x2f1   :  { %5319 = vmatpush.bf16.msrb.mxu3 %v7863_v36  ;;  %v8242_v36 = vld [vmem:[#allocation8 + $0x368] sm:$0xf]  ;;  %v8083_v59 = vor.u32 %v9607_v29, %v8082_v11  ;;  %v9779_v29 = vld [vmem:[#allocation8 + $0x794] sm:$0xf0] }
 0x2f2   :  { %5334 = vmatpush.bf16.msrb.mxu1 %v7975_v4  ;;  %v8243_v47 = vor.u32 %v9647_v18, %v8242_v36  ;;  %v8535_v4 = vor.u32 %v9717_v38, %v8532_v16  ;;  %v9669_v36 = vld [vmem:[#allocation8 + $0x42c] sm:$0xf]  ;;  %v8340_v18 = vld [vmem:[#allocation8 + $0x438] sm:$0xf0]  ;;  %v8658_v38 = vld [vmem:[#allocation8 + $0x6a8] sm:$0xf] }
 0x2f3   :  { %5233 = vmatpush.bf16.msrb.mxu2 %v8147_v53  ;;  %v9751_v16 = vld [vmem:[#allocation8 + $0x6b4] sm:$0xf0]  ;;  %v8770_v11 = vld [vmem:[#allocation8 + $0x788] sm:$0xf] }
 0x2f4   :  { %5247 = vmatpush.bf16.msrb.mxu0 %v8275_v40 }
 0x2f5   :  { %5320 = vmatpush.bf16.msrb.mxu3 %v7847_v8  ;;  %v8407_v8 = vor.u32 %v9685_v22, %v8404_v31  ;;  %v8675_v22 = vor.u32 %v9755_v12, %v8674_v0  ;;  %v8803_v31 = vor.u32 %v9787_v46, %v8802_v37  ;;  %v9657_v37 = vld [vmem:[#allocation8 + $0x3cc] sm:$0xf]  ;;  %v8292_v46 = vld [vmem:[#allocation8 + $0x3d8] sm:$0xf0] }
 0x2f6   :  { %5335 = vmatpush.bf16.msrb.mxu1 %v7959_v32  ;;  %v9709_v32 = vld [vmem:[#allocation8 + $0x56c] sm:$0xf] }
 0x2f7   :  { %5234 = vmatpush.bf16.msrb.mxu2 %v8131_v57  ;;  %v8503_v40 = vor.u32 %v9709_v32, %v8500_v62 }
 0x2f8   :  { %5248 = vmatpush.bf16.msrb.mxu0 %v8259_v52  ;;  %v8487_v52 = vor.u32 %v9705_v60, %v8484_v41  ;;  %v9763_v60 = vld [vmem:[#allocation8 + $0x714] sm:$0xf0]  ;;  %v8180_v41 = vld [vmem:[#allocation8 + $0x2f8] sm:$0xf0] }
 0x2f9   :  { %5321 = vmatpush.bf16.msrb.mxu3 %v7831_v28  ;;  %v8372_v28 = vld [vmem:[#allocation8 + $0x478] sm:$0xf0] }
 0x2fa   :  { %5336 = vmatpush.bf16.msrb.mxu1 %v7943_v19  ;;  %v8375_v53 = vor.u32 %v9677_v54, %v8372_v28  ;;  %v9673_v19 = vld [vmem:[#allocation8 + $0x44c] sm:$0xf]  ;;  %v8754_v54 = vld [vmem:[#allocation8 + $0x768] sm:$0xf]  ;;  %v9775_v28 = vld [vmem:[#allocation8 + $0x774] sm:$0xf0] }
 0x2fb   :  { %5235 = vmatpush.bf16.msrb.mxu2 %v8115_v9  ;;  %v8359_v57 = vor.u32 %v9673_v19, %v8356_v45  ;;  %v8343_v9 = vor.u32 %v9669_v36, %v8340_v18  ;;  %v8755_v62 = vor.u32 %v9775_v28, %v8754_v54  ;;  %v8578_v19 = vld [vmem:[#allocation8 + $0x608] sm:$0xf]  ;;  %v9731_v45 = vld [vmem:[#allocation8 + $0x614] sm:$0xf0]  ;;  %v8295_v18 = vor.u32 %v9657_v37, %v8292_v46  ;;  %v9605_v54 = vld [vmem:[#allocation8 + $0x22c] sm:$0xf] }
 0x2fc   :  { %5249 = vmatpush.bf16.msrb.mxu0 %v8243_v47  ;;  %v8084_v28 = vld [vmem:[#allocation8 + $0x238] sm:$0xf0]  ;;  %v8874_v37 = vld [vmem:[#allocation11 + $0x60] sm:$0xf]  ;;  %v9805_v46 = vld [vmem:[#allocation11 + $0x64] sm:$0xf0] }
 0x2fd   :  { %5322 = vmatpush.bf16.msrb.mxu3 %v7815_v20  ;;  %5337 = vmatmul.bf16.vlgmr.msrb.gmra.mxu1 %v10531_v61  ;;  %v8391_v61 = vor.u32 %v9681_v50, %v8388_v21  ;;  %v9791_v20 = vld [vmem:[#allocation8 + $0x7f4] sm:$0xf0]  ;;  %v8659_v50 = vor.u32 %v9751_v16, %v8658_v38  ;;  %v8787_v21 = vor.u32 %v9783_v23, %v8786_v63  ;;  %v9649_v63 = vld [vmem:[#allocation8 + $0x38c] sm:$0xf]  ;;  %v8260_v23 = vld [vmem:[#allocation8 + $0x398] sm:$0xf0] }
 0x2fe   :  { %5385 = vmatpush.bf16.msra.mxu1 %v8567_v55  ;;  %v8195_v55 = vor.u32 %v9635_v39, %v8194_v34  ;;  %v8819_v33 = vor.u32 %v9791_v20, %v8818_v2  ;;  %v8595_v2 = vor.u32 %v9735_v44, %v8594_v7  ;;  %v8263_v14 = vor.u32 %v9649_v63, %v8260_v23  ;;  %v8196_v7 = vld [vmem:[#allocation8 + $0x318] sm:$0xf0]  ;;  %v9757_v44 = vld [vmem:[#allocation8 + $0x6ec] sm:$0xf] }
 0x2ff   :  { %5236 = vmatpush.bf16.msrb.mxu2 %v8099_v3 }
 0x300   :  { %5323 = vmatmul.bf16.vlgmr.msrb.gmra.mxu3 %v10527_v24  ;;  %v8210_v24 = vld [vmem:[#allocation8 + $0x328] sm:$0xf]  ;;  %5250 = vmatpush.bf16.msrb.mxu0 %v8227_v15  ;;  %v9747_v15 = vld [vmem:[#allocation8 + $0x694] sm:$0xf0] }
 0x301   :  { %5371 = vmatpush.bf16.msra.mxu3 %v8439_v48  ;;  %v8211_v51 = vor.u32 %v9639_v13, %v8210_v24  ;;  %v8067_v48 = vor.u32 %v9603_v26, %v8066_v58  ;;  %v8643_v24 = vor.u32 %v9747_v15, %v8642_v17  ;;  %v8771_v13 = vor.u32 %v9779_v29, %v8770_v11  ;;  %v8738_v58 = vld [vmem:[#allocation8 + $0x748] sm:$0xf]  ;;  %v9771_v26 = vld [vmem:[#allocation8 + $0x754] sm:$0xf0]  ;;  %v10648_v17 = vpop.f32.mrf.mxu3  ;;  %v9609_v15 = vld [vmem:[#allocation8 + $0x24c] sm:$0xf] }
 0x302   :  { %5386 = vmatpush.bf16.msra.mxu1 %v8551_v35  ;;  %v8468_v35 = vld [vmem:[#allocation8 + $0x538] sm:$0xf0]  ;;  %v8739_v39 = vor.u32 %v9771_v26, %v8738_v58  ;;  %v9641_v29 = vld [vmem:[#allocation8 + $0x34c] sm:$0xf] }
 0x303   :  { %5237 = vmatpush.bf16.msrb.mxu2 %v8083_v59  ;;  %v8610_v59 = vld [vmem:[#allocation8 + $0x648] sm:$0xf]  ;;  %v8100_v11 = vld [vmem:[#allocation8 + $0x258] sm:$0xf0]  ;;  %v9633_v26 = vld [vmem:[#allocation8 + $0x30c] sm:$0xf] }
 0x304   :  { %5251 = vmatpush.bf16.msrb.mxu0 %v8211_v51  ;;  %v9739_v51 = vld [vmem:[#allocation8 + $0x654] sm:$0xf0]  ;;  %v8068_v58 = vld [vmem:[#allocation8 + $0x218] sm:$0xf0] }
 0x305   :  { %5372 = vmatpush.bf16.msra.mxu3 %v8423_v42  ;;  %v9701_v42 = vld [vmem:[#allocation8 + $0x52c] sm:$0xf]  ;;  %v8611_v34 = vor.u32 %v9739_v51, %v8610_v59  ;;  %v10652_v59 = vpop.f32.mrf.mxu0 }
 0x306   :  { %5387 = vmatpush.bf16.msra.mxu1 %v8535_v4  ;;  %v8471_v47 = vor.u32 %v9701_v42, %v8468_v35  ;;  %v8452_v4 = vld [vmem:[#allocation8 + $0x518] sm:$0xf0]  ;;  %v9621_v42 = vld [vmem:[#allocation8 + $0x2ac] sm:$0xf] }
 0x307   :  { %5238 = vmatpush.bf16.msrb.mxu2 %v8067_v48  ;;  %v9661_v48 = vld [vmem:[#allocation8 + $0x3ec] sm:$0xf]  ;;  %v8148_v35 = vld [vmem:[#allocation8 + $0x2b8] sm:$0xf0] }
 0x308   :  { %5252 = vmatpush.bf16.msrb.mxu0 %v8195_v55  ;;  %v8308_v55 = vld [vmem:[#allocation8 + $0x3f8] sm:$0xf0]  ;;  %v8151_v38 = vor.u32 %v9621_v42, %v8148_v35  ;;  %v9601_v51 = vld [vmem:[#allocation8 + $0x20c] sm:$0xf]  ;;  %v8875_v35 = vor.u32 %v9805_v46, %v8874_v37 }
 0x309   :  { %5373 = vmatpush.bf16.msra.mxu3 %v8407_v8  ;;  %v9697_v8 = vld [vmem:[#allocation8 + $0x50c] sm:$0xf]  ;;  %v8311_v12 = vor.u32 %v9661_v48, %v8308_v55  ;;  %v8071_v48 = vor.u32 %v9601_v51, %v8068_v58  ;;  %v8199_v55 = vor.u32 %v9633_v26, %v8196_v7  ;;  %v8804_v42 = vld [vmem:[#allocation8 + $0x7d8] sm:$0xf0] }
 0x30a   :  { %5388 = vmatpush.bf16.msra.mxu1 %v8519_v43  ;;  %5239 = vmatmul.bf16.vlgmr.msrb.gmra.mxu2 %v10538_v6  ;;  %v8455_v3 = vor.u32 %v9697_v8, %v8452_v4  ;;  %v9743_v43 = vld [vmem:[#allocation8 + $0x674] sm:$0xf0]  ;;  %v9613_v8 = vld [vmem:[#allocation8 + $0x26c] sm:$0xf]  ;;  %v8116_v4 = vld [vmem:[#allocation8 + $0x278] sm:$0xf0] }
 0x30b   :  { %5287 = vmatpush.bf16.msra.mxu2 %v8691_v5  ;;  %5253 = vmatmul.bf16.vlgmr.msrb.gmra.mxu0 %v10543_v10  ;;  %v8579_v5 = vor.u32 %v9731_v45, %v8578_v19  ;;  %v8946_v19 = vld [vmem:[#allocation11 + $0xf0] sm:$0xf]  ;;  %v9789_v45 = vld [vmem:[#allocation8 + $0x7ec] sm:$0xf]  ;;  %v8612_v46 = vld [vmem:[#allocation8 + $0x658] sm:$0xf0] }
 0x30c   :  { %5301 = vmatpush.bf16.msra.mxu0 %v8819_v33  ;;  %v9741_v26 = vld [vmem:[#allocation8 + $0x66c] sm:$0xf] }
 0x30d   :  { %5374 = vmatpush.bf16.msra.mxu3 %v8391_v61  ;;  %v8626_v61 = vld [vmem:[#allocation8 + $0x668] sm:$0xf]  ;;  %v9737_v37 = vld [vmem:[#allocation8 + $0x64c] sm:$0xf] }
 0x30e   :  { %5389 = vmatpush.bf16.msra.mxu1 %v8503_v40  ;;  %v8627_v32 = vor.u32 %v9743_v43, %v8626_v61  ;;  %v9767_v40 = vld [vmem:[#allocation8 + $0x734] sm:$0xf0]  ;;  %v8103_v61 = vor.u32 %v9609_v15, %v8100_v11  ;;  %v9745_v15 = vld [vmem:[#allocation8 + $0x68c] sm:$0xf]  ;;  %v8644_v11 = vld [vmem:[#allocation8 + $0x698] sm:$0xf0] }
 0x30f   :  { %5288 = vmatpush.bf16.msra.mxu2 %v8675_v22  ;;  %v9653_v22 = vld [vmem:[#allocation8 + $0x3ac] sm:$0xf] }
 0x310   :  { %5302 = vmatpush.bf16.msra.mxu0 %v8803_v31  ;;  %v8276_v31 = vld [vmem:[#allocation8 + $0x3b8] sm:$0xf0] }
 0x311   :  { %5375 = vmatpush.bf16.msra.mxu3 %v8375_v53  ;;  %v8722_v53 = vld [vmem:[#allocation8 + $0x728] sm:$0xf]  ;;  %v8279_v16 = vor.u32 %v9653_v22, %v8276_v31  ;;  %v9821_v22 = vld [vmem:[#allocation11 + $0xe4] sm:$0xf0] }
 0x312   :  { %5390 = vmatpush.bf16.msra.mxu1 %v8487_v52  ;;  %v8723_v20 = vor.u32 %v9767_v40, %v8722_v53  ;;  %v8164_v52 = vld [vmem:[#allocation8 + $0x2d8] sm:$0xf0]  ;;  %v10654_v40 = vpop.f32.mrf.mxu3 }
 0x313   :  { %5289 = vmatpush.bf16.msra.mxu2 %v8659_v50  ;;  %v9645_v50 = vld [vmem:[#allocation8 + $0x36c] sm:$0xf]  ;;  %v8692_v53 = vld [vmem:[#allocation8 + $0x6f8] sm:$0xf0] }
 0x314   :  { %5303 = vmatpush.bf16.msra.mxu0 %v8787_v21  ;;  %v8244_v21 = vld [vmem:[#allocation8 + $0x378] sm:$0xf0] }
 0x315   :  { %5376 = vmatpush.bf16.msra.mxu3 %v8359_v57  ;;  %v9625_v57 = vld [vmem:[#allocation8 + $0x2cc] sm:$0xf] }
 0x316   :  { %5391 = vmatpush.bf16.msra.mxu1 %v8471_v47  ;;  %v8167_v36 = vor.u32 %v9625_v57, %v8164_v52  ;;  %v8132_v47 = vld [vmem:[#allocation8 + $0x298] sm:$0xf0]  ;;  %v8695_v57 = vor.u32 %v9757_v44, %v8692_v53  ;;  %v8647_v44 = vor.u32 %v9745_v15, %v8644_v11  ;;  %v10680_v11 = vld [vmem:[#allocation10] sm:$0xf] }
 0x317   :  { %5290 = vmatpush.bf16.msra.mxu2 %v8643_v24  ;;  %v8228_v24 = vld [vmem:[#allocation8 + $0x358] sm:$0xf0] }
 0x318   :  { %5304 = vmatpush.bf16.msra.mxu0 %v8771_v13  ;;  %v10650_v13 = vpop.f32.mrf.mxu1  ;;  %v8231_v43 = vor.u32 %v9641_v29, %v8228_v24 }
 0x319   :  { %5377 = vmatpush.bf16.msra.mxu3 %v8343_v9  ;;  %v9617_v9 = vld [vmem:[#allocation8 + $0x28c] sm:$0xf] }
 0x31a   :  { %5392 = vmatpush.bf16.msra.mxu1 %v8455_v3  ;;  %v8135_v25 = vor.u32 %v9617_v9, %v8132_v47  ;;  %v8247_v3 = vor.u32 %v9645_v50, %v8244_v21  ;;  %v10660_v9 = vpop.f32.mrf.mxu0  ;;  %v10662_v47 = vpop.f32.mrf.mxu3  ;;  %v8788_v50 = vld [vmem:[#allocation8 + $0x7b8] sm:$0xf0] }
 0x31b   :  { %5291 = vmatpush.bf16.msra.mxu2 %v8627_v32  ;;  %v9637_v32 = vld [vmem:[#allocation8 + $0x32c] sm:$0xf] }
 0x31c   :  { %5305 = vmatpush.bf16.msra.mxu0 %v8755_v62  ;;  %v8212_v62 = vld [vmem:[#allocation8 + $0x338] sm:$0xf0] }
 0x31d   :  { %5378 = vmatpush.bf16.msra.mxu3 %v8327_v49  ;;  %5393 = vmatmul.bf16.vlgmr.msra.gmra.mxu1 %v10565_v30  ;;  %v9629_v30 = vld [vmem:[#allocation8 + $0x2ec] sm:$0xf]  ;;  %v8119_v49 = vor.u32 %v9613_v8, %v8116_v4  ;;  %v8930_v8 = vld [vmem:[#allocation11 + $0xd0] sm:$0xf] }
 0x31e   :  { %v8183_v0 = vor.u32 %v9629_v30, %v8180_v41  ;;  %v9823_v30 = vld [vmem:[#allocation11 + $0xf4] sm:$0xf0]  ;;  %v9781_v4 = vld [vmem:[#allocation8 + $0x7ac] sm:$0xf] }
 0x31f   :  { %5292 = vmatpush.bf16.msra.mxu2 %v8611_v34  ;;  %v8087_v34 = vor.u32 %v9605_v54, %v8084_v28  ;;  %v8947_v41 = vor.u32 %v9823_v30, %v8946_v19  ;;  %v9801_v54 = vld [vmem:[#allocation11 + $0x44] sm:$0xf0]  ;;  %v8922_v28 = vld [vmem:[#allocation11 + $0xc0] sm:$0xf]  ;;  %v8914_v19 = vld [vmem:[#allocation11 + $0xb0] sm:$0xf] }
 0x320   :  { %5379 = vmatmul.bf16.vlgmr.msra.gmra.mxu3 %v10563_v56  ;;  %5306 = vmatpush.bf16.msra.mxu0 %v8739_v39  ;;  %v8706_v56 = vld [vmem:[#allocation8 + $0x708] sm:$0xf]  ;;  %v8215_v39 = vor.u32 %v9637_v32, %v8212_v62  ;;  %v9777_v32 = vld [vmem:[#allocation8 + $0x78c] sm:$0xf]  ;;  %v8772_v62 = vld [vmem:[#allocation8 + $0x798] sm:$0xf0] }
 0x321   :  { %v8707_v33 = vor.u32 %v9763_v60, %v8706_v56  ;;  %v8820_v56 = vld [vmem:[#allocation8 + $0x7f8] sm:$0xf0]  ;;  %5875 = vmatpush.bf16.msrb.mxu1 %v8947_v41  ;;  %v8775_v53 = vor.u32 %v9777_v32, %v8772_v62  ;;  %v8842_v30 = vld [vmem:[#allocation11 + $0x20] sm:$0xf] }
 0x322   :  { %v8823_v52 = vor.u32 %v9789_v45, %v8820_v56  ;;  %v8756_v45 = vld [vmem:[#allocation8 + $0x778] sm:$0xf0]  ;;  %v10672_v41 = vpop.f32.mrf.mxu3 }
 0x323   :  { %5293 = vmatpush.bf16.msra.mxu2 %v8595_v2  ;;  %v8882_v2 = vld [vmem:[#allocation11 + $0x70] sm:$0xf] }
 0x324   :  { %5307 = vmatpush.bf16.msra.mxu0 %v8723_v20  ;;  %v9807_v20 = vld [vmem:[#allocation11 + $0x74] sm:$0xf0] }
 0x325   :  { %v8883_v60 = vor.u32 %v9807_v20, %v8882_v2  ;;  %v8850_v2 = vld [vmem:[#allocation11 + $0x30] sm:$0xf]  ;;  %v9799_v20 = vld [vmem:[#allocation11 + $0x34] sm:$0xf0] }
 0x326   :  { %v8851_v56 = vor.u32 %v9799_v20, %v8850_v2 }
 0x327   :  { %5294 = vmatpush.bf16.msra.mxu2 %v8579_v5  ;;  %v9753_v5 = vld [vmem:[#allocation8 + $0x6cc] sm:$0xf]  ;;  %5861 = vmatpush.bf16.msrb.mxu3 %v8883_v60  ;;  %v9815_v60 = vld [vmem:[#allocation11 + $0xb4] sm:$0xf0] }
 0x328   :  { %5308 = vmatpush.bf16.msra.mxu0 %v8707_v33  ;;  %v8676_v33 = vld [vmem:[#allocation8 + $0x6d8] sm:$0xf0] }
 0x329   :  { %v8679_v63 = vor.u32 %v9753_v5, %v8676_v33  ;;  %v8906_v5 = vld [vmem:[#allocation11 + $0xa0] sm:$0xf]  ;;  %v9813_v33 = vld [vmem:[#allocation11 + $0xa4] sm:$0xf0] }
 0x32a   :  { %5295 = vmatmul.bf16.vlgmr.msra.gmra.mxu2 %v10628_v1 }
 0x32b   :  { %5343 = vmatpush.bf16.msrb.mxu2 %v8183_v0  ;;  %5309 = vmatmul.bf16.vlgmr.msra.gmra.mxu0 %v10630_v27  ;;  %v10656_v0 = vpop.f32.mrf.mxu1 }
 0x32c   :  { %5357 = vmatpush.bf16.msrb.mxu0 %v8311_v12  ;;  %v10658_v12 = vpop.f32.mrf.mxu2  ;;  %5862 = vmatpush.bf16.msrb.mxu3 %v8875_v35  ;;  %v8907_v35 = vor.u32 %v9813_v33, %v8906_v5  ;;  %v9804_v33 = vld [vmem:[#allocation11 + $0x64] sm:$0xf] }
 0x32f   :  { %5344 = vmatpush.bf16.msrb.mxu2 %v8167_v36  ;;  %v8938_v36 = vld [vmem:[#allocation11 + $0xe0] sm:$0xf] }
 0x330   :  { %5358 = vmatpush.bf16.msrb.mxu0 %v8295_v18  ;;  %v9785_v18 = vld [vmem:[#allocation8 + $0x7cc] sm:$0xf]  ;;  %v8939_v31 = vor.u32 %v9821_v22, %v8938_v36 }
 0x331   :  { %v8807_v23 = vor.u32 %v9785_v18, %v8804_v42  ;;  %v9769_v36 = vld [vmem:[#allocation8 + $0x74c] sm:$0xf]  ;;  %v8740_v18 = vld [vmem:[#allocation8 + $0x758] sm:$0xf0] }
 0x332   :  { %5876 = vmatpush.bf16.msrb.mxu1 %v8939_v31 }
 0x333   :  { %5345 = vmatpush.bf16.msrb.mxu2 %v8151_v38  ;;  %v9749_v38 = vld [vmem:[#allocation8 + $0x6ac] sm:$0xf]  ;;  %v10666_v29 = vpop.f32.mrf.mxu1 }
 0x334   :  { %5359 = vmatpush.bf16.msrb.mxu0 %v8279_v16  ;;  %v8660_v16 = vld [vmem:[#allocation8 + $0x6b8] sm:$0xf0]  ;;  %v10668_v58 = vpop.f32.mrf.mxu2 }
 0x335   :  { %v8663_v24 = vor.u32 %v9749_v38, %v8660_v16  ;;  %v9733_v38 = vld [vmem:[#allocation8 + $0x62c] sm:$0xf]  ;;  %v8596_v16 = vld [vmem:[#allocation8 + $0x638] sm:$0xf0] }
 0x336   :  { %v8599_v32 = vor.u32 %v9733_v38, %v8596_v16  ;;  %v9802_v38 = vld [vmem:[#allocation11 + $0x54] sm:$0xf]  ;;  %v8868_v16 = vld [vmem:[#allocation11 + $0x58] sm:$0xf0] }
 0x337   :  { %5346 = vmatpush.bf16.msrb.mxu2 %v8135_v25  ;;  %v8866_v25 = vld [vmem:[#allocation11 + $0x50] sm:$0xf] }
 0x338   :  { %5360 = vmatpush.bf16.msrb.mxu0 %v8263_v14  ;;  %v9803_v14 = vld [vmem:[#allocation11 + $0x54] sm:$0xf0] }
 0x339   :  { %v8867_v21 = vor.u32 %v9803_v14, %v8866_v25  ;;  %v8743_v25 = vor.u32 %v9769_v36, %v8740_v18  ;;  %v8834_v14 = vld [vmem:[#allocation11 + $0x10] sm:$0xf]  ;;  %v8940_v36 = vld [vmem:[#allocation11 + $0xe8] sm:$0xf0] }
 0x33b   :  { %5347 = vmatpush.bf16.msrb.mxu2 %v8119_v49  ;;  %v9819_v49 = vld [vmem:[#allocation11 + $0xd4] sm:$0xf0]  ;;  %5863 = vmatpush.bf16.msrb.mxu3 %v8867_v21  ;;  %v10674_v22 = vpop.f32.mrf.mxu1 }
 0x33c   :  { %5361 = vmatpush.bf16.msrb.mxu0 %v8247_v3  ;;  %v8931_v3 = vor.u32 %v9819_v49, %v8930_v8  ;;  %v9795_v8 = vld [vmem:[#allocation11 + $0x14] sm:$0xf0] }
 0x33d   :  { %v8724_v21 = vld [vmem:[#allocation8 + $0x738] sm:$0xf0]  ;;  %v8835_v49 = vor.u32 %v9795_v8, %v8834_v14  ;;  %v8871_v8 = vor.u32 %v9802_v38, %v8868_v16  ;;  %v8900_v38 = vld [vmem:[#allocation11 + $0x98] sm:$0xf0] }
 0x33e   :  { %5877 = vmatpush.bf16.msrb.mxu1 %v8931_v3  ;;  %v9811_v3 = vld [vmem:[#allocation11 + $0x94] sm:$0xf0] }
 0x33f   :  { %5348 = vmatpush.bf16.msrb.mxu2 %v8103_v61  ;;  %v8791_v61 = vor.u32 %v9781_v4, %v8788_v50  ;;  %v8898_v4 = vld [vmem:[#allocation11 + $0x90] sm:$0xf]  ;;  %v9765_v50 = vld [vmem:[#allocation8 + $0x72c] sm:$0xf] }
 0x340   :  { %5362 = vmatpush.bf16.msrb.mxu0 %v8231_v43  ;;  %v8858_v43 = vld [vmem:[#allocation11 + $0x40] sm:$0xf]  ;;  %v8899_v15 = vor.u32 %v9811_v3, %v8898_v4  ;;  %v8727_v62 = vor.u32 %v9765_v50, %v8724_v21  ;;  %v8932_v4 = vld [vmem:[#allocation11 + $0xd8] sm:$0xf0] }
 0x341   :  { %v8859_v51 = vor.u32 %v9801_v54, %v8858_v43  ;;  %v9761_v43 = vld [vmem:[#allocation8 + $0x70c] sm:$0xf]  ;;  %v8708_v54 = vld [vmem:[#allocation8 + $0x718] sm:$0xf0] }
 0x342   :  { %v8711_v5 = vor.u32 %v9761_v43, %v8708_v54  ;;  %v8924_v54 = vld [vmem:[#allocation11 + $0xc8] sm:$0xf0] }
 0x343   :  { %5349 = vmatpush.bf16.msrb.mxu2 %v8087_v34  ;;  %v8628_v34 = vld [vmem:[#allocation8 + $0x678] sm:$0xf0]  ;;  %5864 = vmatpush.bf16.msrb.mxu3 %v8859_v51  ;;  %v8826_v51 = vld [vmem:[#allocation11] sm:$0xf] }
 0x344   :  { %5363 = vmatpush.bf16.msrb.mxu0 %v8215_v39  ;;  %v9773_v39 = vld [vmem:[#allocation8 + $0x76c] sm:$0xf] }
 0x347   :  { %5350 = vmatpush.bf16.msrb.mxu2 %v8071_v48  ;;  %v8915_v48 = vor.u32 %v9815_v60, %v8914_v19  ;;  %5865 = vmatpush.bf16.msrb.mxu3 %v8851_v56  ;;  %v9822_v19 = vld [vmem:[#allocation11 + $0xf4] sm:$0xf]  ;;  %v3692_v56 = vperm.slane %v10680_v11, 1 }
 0x348   :  { %5364 = vmatpush.bf16.msrb.mxu0 %v8199_v55  ;;  %v10670_v7 = vpop.f32.mrf.mxu0  ;;  %v9797_v55 = vld [vmem:[#allocation11 + $0x24] sm:$0xf0] }
 0x349   :  { %v8843_v42 = vor.u32 %v9797_v55, %v8842_v30  ;;  %v3691_v30 = vperm.slane %v10680_v11, 0 }
 0x34a   :  { %5351 = vmatmul.bf16.vlgmr.msrb.gmra.mxu2 %v10538_v6  ;;  %v9817_v6 = vld [vmem:[#allocation11 + $0xc4] sm:$0xf0] }
 0x34b   :  { %5399 = vmatpush.bf16.msra.mxu2 %v8695_v57  ;;  %5365 = vmatmul.bf16.vlgmr.msrb.gmra.mxu0 %v10543_v10  ;;  %v8923_v10 = vor.u32 %v9817_v6, %v8922_v28  ;;  %v8631_v57 = vor.u32 %v9741_v26, %v8628_v34  ;;  %v5100_v28 = vpop.f32.mrf.mxu3  ;;  %v9793_v6 = vld [vmem:[#allocation11 + $0x4] sm:$0xf0] }
 0x34c   :  { %5413 = vmatpush.bf16.msra.mxu0 %v8823_v52  ;;  %v8759_v52 = vor.u32 %v9773_v39, %v8756_v45  ;;  %5866 = vmatpush.bf16.msrb.mxu3 %v8843_v42  ;;  %v8827_v26 = vor.u32 %v9793_v6, %v8826_v51  ;;  %v9809_v34 = vld [vmem:[#allocation11 + $0x84] sm:$0xf0]  ;;  %v9806_v39 = vld [vmem:[#allocation11 + $0x74] sm:$0xf]  ;;  %v8948_v45 = vld [vmem:[#allocation11 + $0xf8] sm:$0xf0]  ;;  %v5101_v18 = vadd.f32 %v5100_v28, %v3692_v56 }
 0x34d   :  { %5878 = vmatpush.bf16.msrb.mxu1 %v8923_v10  ;;  %v10676_v31 = vpop.f32.mrf.mxu2  ;;  %v8890_v10 = vld [vmem:[#allocation11 + $0x80] sm:$0xf]  ;;  %v8951_v60 = vor.u32 %v9822_v19, %v8948_v45  ;;  %v9798_v6 = vld [vmem:[#allocation11 + $0x34] sm:$0xf] }
 0x34e   :  { %v8891_v2 = vor.u32 %v9809_v34, %v8890_v10  ;;  %v8852_v10 = vld [vmem:[#allocation11 + $0x38] sm:$0xf0] }
 0x34f   :  { %5400 = vmatpush.bf16.msra.mxu2 %v8679_v63 }
 0x350   :  { %5414 = vmatpush.bf16.msra.mxu0 %v8807_v23  ;;  %v10678_v63 = vpop.f32.mrf.mxu0  ;;  %v8615_v23 = vor.u32 %v9737_v37, %v8612_v46  ;;  %5867 = vmatpush.bf16.msrb.mxu3 %v8835_v49 }
 0x351   :  { %5879 = vmatpush.bf16.msrb.mxu1 %v8915_v48  ;;  %v5114_v48 = vpop.f32.mrf.mxu1 }
 0x352   :  { %v5115_v50 = vadd.f32 %v5114_v48, %v5101_v18  ;;  %v8844_v48 = vld [vmem:[#allocation11 + $0x28] sm:$0xf0] }
 0x353   :  { %5401 = vmatpush.bf16.msra.mxu2 %v8663_v24  ;;  %v9729_v24 = vld [vmem:[#allocation8 + $0x60c] sm:$0xf] }
 0x354   :  { %5415 = vmatpush.bf16.msra.mxu0 %v8791_v61  ;;  %v8580_v61 = vld [vmem:[#allocation8 + $0x618] sm:$0xf0]  ;;  %5868 = vmatpush.bf16.msrb.mxu3 %v8827_v26 }
 0x355   :  { %5880 = vmatpush.bf16.msrb.mxu1 %v8907_v35  ;;  %v8583_v55 = vor.u32 %v9729_v24, %v8580_v61  ;;  %v4989_v35 = vadd.f32 %v10648_v17, %v3691_v30  ;;  %v8860_v17 = vld [vmem:[#allocation11 + $0x48] sm:$0xf0]  ;;  %v9816_v24 = vld [vmem:[#allocation11 + $0xc4] sm:$0xf] }
 0x357   :  { %5402 = vmatpush.bf16.msra.mxu2 %v8647_v44  ;;  %v8884_v44 = vld [vmem:[#allocation11 + $0x78] sm:$0xf0]  ;;  %v5003_v49 = vadd.f32 %v10650_v13, %v4989_v35  ;;  %v9814_v13 = vld [vmem:[#allocation11 + $0xb4] sm:$0xf] }
 0x358   :  { %5416 = vmatpush.bf16.msra.mxu0 %v8775_v53  ;;  %v10682_v53 = vpop.f32.mrf.mxu2  ;;  %v8887_v20 = vor.u32 %v9806_v39, %v8884_v44  ;;  %v5142_v37 = vpop.f32.mrf.mxu0  ;;  %v8855_v39 = vor.u32 %v9798_v6, %v8852_v10  ;;  %v8916_v44 = vld [vmem:[#allocation11 + $0xb8] sm:$0xf0] }
 0x359   :  { %5881 = vmatpush.bf16.msrb.mxu1 %v8899_v15  ;;  %v9800_v15 = vld [vmem:[#allocation11 + $0x44] sm:$0xf]  ;;  %v5116_v61 = vpop.f32.mrf.mxu1  ;;  %v5017_v28 = vadd.f32 %v10658_v12, %v5003_v49  ;;  %v8919_v19 = vor.u32 %v9814_v13, %v8916_v44 }
 0x35a   :  { %5917 = vmatpush.bf16.msra.mxu3 %v8887_v20  ;;  %v8863_v43 = vor.u32 %v9800_v15, %v8860_v17 }
 0x35b   :  { %5403 = vmatpush.bf16.msra.mxu2 %v8631_v57  ;;  %v8876_v57 = vld [vmem:[#allocation11 + $0x68] sm:$0xf0]  ;;  %v5031_v20 = vadd.f32 %v10652_v59, %v5017_v28 }
 0x35c   :  { %5417 = vmatpush.bf16.msra.mxu0 %v8759_v52  ;;  %v9820_v52 = vld [vmem:[#allocation11 + $0xe4] sm:$0xf]  ;;  %v8879_v46 = vor.u32 %v9804_v33, %v8876_v57  ;;  %v8908_v57 = vld [vmem:[#allocation11 + $0xa8] sm:$0xf0] }
 0x35d   :  { %5882 = vmatpush.bf16.msrb.mxu1 %v8891_v2  ;;  %v8943_v42 = vor.u32 %v9820_v52, %v8940_v36  ;;  %v5045_v45 = vadd.f32 %v10662_v47, %v5031_v20  ;;  %v8836_v36 = vld [vmem:[#allocation11 + $0x18] sm:$0xf0]  ;;  %v9810_v47 = vld [vmem:[#allocation11 + $0x94] sm:$0xf] }
 0x35e   :  { %5918 = vmatpush.bf16.msra.mxu3 %v8879_v46 }
 0x35f   :  { %5404 = vmatpush.bf16.msra.mxu2 %v8615_v23  ;;  %v9818_v23 = vld [vmem:[#allocation11 + $0xd4] sm:$0xf]  ;;  %v5059_v59 = vadd.f32 %v10666_v29, %v5045_v45  ;;  %v9839_v45 = vld [vmem:[#allocation11 + $0x174] sm:$0xf0] }
 0x360   :  { %5418 = vmatpush.bf16.msra.mxu0 %v8743_v25  ;;  %v5102_v25 = vpop.f32.mrf.mxu3  ;;  %v5128_v14 = vpop.f32.mrf.mxu2  ;;  %v8935_v21 = vor.u32 %v9818_v23, %v8932_v4  ;;  %v9792_v4 = vld [vmem:[#allocation11 + $0x4] sm:$0xf] }
 0x361   :  { %5931 = vmatpush.bf16.msra.mxu1 %v8951_v60  ;;  %v5129_v3 = vadd.f32 %v5128_v14, %v5115_v50  ;;  %v5144_v51 = vpop.f32.mrf.mxu0  ;;  %v5073_v23 = vadd.f32 %v10676_v31, %v5059_v59  ;;  %v8903_v14 = vor.u32 %v9810_v47, %v8900_v38  ;;  %v8828_v50 = vld [vmem:[#allocation11 + $0x8] sm:$0xf0]  ;;  %v9058_v47 = vld [vmem:[#allocation11 + $0x1d0] sm:$0xf] }
 0x362   :  { %5919 = vmatpush.bf16.msra.mxu3 %v8871_v8  ;;  %v8831_v49 = vor.u32 %v9792_v4, %v8828_v50 }
 0x363   :  { %5405 = vmatpush.bf16.msra.mxu2 %v8599_v32  ;;  %v4991_v32 = vadd.f32 %v10654_v40, %v3691_v30  ;;  %v9796_v30 = vld [vmem:[#allocation11 + $0x24] sm:$0xf]  ;;  %v5087_v15 = vadd.f32 %v10670_v7, %v5073_v23  ;;  %v9833_v23 = vld [vmem:[#allocation11 + $0x144] sm:$0xf0] }
 0x364   :  { %5419 = vmatpush.bf16.msra.mxu0 %v8727_v62  ;;  %v5103_v62 = vadd.f32 %v5102_v25, %v3692_v56  ;;  %v8847_v33 = vor.u32 %v9796_v30, %v8844_v48 }
 0x365   :  { %5932 = vmatpush.bf16.msra.mxu1 %v8943_v42  ;;  %v5005_v2 = vadd.f32 %v10656_v0, %v4991_v32 }
 0x366   :  { %5920 = vmatpush.bf16.msra.mxu3 %v8863_v43  ;;  %v5117_v12 = vadd.f32 %v5116_v61, %v5103_v62 }
 0x367   :  { %5406 = vmatpush.bf16.msra.mxu2 %v8583_v55  ;;  %v5019_v40 = vadd.f32 %v10668_v58, %v5005_v2  ;;  %v9812_v55 = vld [vmem:[#allocation11 + $0xa4] sm:$0xf]  ;;  %v9794_v58 = vld [vmem:[#allocation11 + $0x14] sm:$0xf] }
 0x368   :  { %5420 = vmatpush.bf16.msra.mxu0 %v8711_v5  ;;  %v5156_v26 = vpop.f32.mrf.mxu3  ;;  %v5130_v34 = vpop.f32.mrf.mxu2  ;;  %v8911_v52 = vor.u32 %v9812_v55, %v8908_v57  ;;  %v8839_v35 = vor.u32 %v9794_v58, %v8836_v36  ;;  %v9855_v55 = vld [vmem:[#allocation11 + $0x1f4] sm:$0xf0]  ;;  %v9002_v57 = vld [vmem:[#allocation11 + $0x160] sm:$0xf] }
 0x369   :  { %5933 = vmatpush.bf16.msra.mxu1 %v8935_v21  ;;  %v5131_v56 = vadd.f32 %v5130_v34, %v5117_v12  ;;  %v5170_v5 = vpop.f32.mrf.mxu1  ;;  %v5033_v0 = vadd.f32 %v10660_v9, %v5019_v40  ;;  %v5198_v18 = vpop.f32.mrf.mxu0  ;;  %v9808_v21 = vld [vmem:[#allocation11 + $0x84] sm:$0xf]  ;;  %v9010_v40 = vld [vmem:[#allocation11 + $0x170] sm:$0xf]  ;;  %v9835_v58 = vld [vmem:[#allocation11 + $0x154] sm:$0xf0] }
 0x36a   :  { %5407 = vmatmul.bf16.vlgmr.msra.gmra.mxu2 %v10628_v1  ;;  %v8927_v1 = vor.u32 %v9816_v24, %v8924_v54  ;;  %5921 = vmatpush.bf16.msra.mxu3 %v8855_v39  ;;  %v9011_v48 = vor.u32 %v9839_v45, %v9010_v40  ;;  %v9841_v40 = vld [vmem:[#allocation11 + $0x184] sm:$0xf0]  ;;  %v9838_v45 = vld [vmem:[#allocation11 + $0x174] sm:$0xf] }
 0x36b   :  { %5421 = vmatmul.bf16.vlgmr.msra.gmra.mxu0 %v10630_v27  ;;  %v5143_v27 = vadd.f32 %v5142_v37, %v5129_v3  ;;  %v5145_v37 = vadd.f32 %v5144_v51, %v5131_v56  ;;  %v5047_v16 = vadd.f32 %v10672_v41, %v5033_v0  ;;  %v8892_v3 = vld [vmem:[#allocation11 + $0x88] sm:$0xf0]  ;;  %v9074_v56 = vld [vmem:[#allocation11 + $0x1f0] sm:$0xf]  ;;  %v9066_v0 = vld [vmem:[#allocation11 + $0x1e0] sm:$0xf] }
 0x36c   :  { %v8895_v24 = vor.u32 %v9808_v21, %v8892_v3  ;;  %5889 = vmatpush.bf16.msrb.mxu2 %v9011_v48  ;;  %v9831_v3 = vld [vmem:[#allocation11 + $0x134] sm:$0xf0] }
 0x36d   :  { %5934 = vmatpush.bf16.msra.mxu1 %v8927_v1  ;;  %v5157_v60 = vadd.f32 %v5156_v26, %v5143_v27  ;;  %v5061_v17 = vadd.f32 %v10674_v22, %v5047_v16  ;;  %v8986_v16 = vld [vmem:[#allocation11 + $0x140] sm:$0xf] }
 0x36e   :  { %5922 = vmatpush.bf16.msra.mxu3 %v8847_v33  ;;  %v9075_v33 = vor.u32 %v9855_v55, %v9074_v56  ;;  %v8987_v4 = vor.u32 %v9833_v23, %v8986_v16  ;;  %v9012_v56 = vld [vmem:[#allocation11 + $0x178] sm:$0xf0] }
 0x36f   :  { %v5171_v46 = vadd.f32 %v5170_v5, %v5157_v60  ;;  %v5075_v31 = vadd.f32 %v10682_v53, %v5061_v17  ;;  %v9015_v55 = vor.u32 %v9838_v45, %v9012_v56 }
 0x370   :  { %v5184_v42 = vpop.f32.mrf.mxu2  ;;  %v5158_v9 = vpop.f32.mrf.mxu3  ;;  %5903 = vmatpush.bf16.msrb.mxu0 %v9075_v33  ;;  %v9854_v33 = vld [vmem:[#allocation11 + $0x1f4] sm:$0xf] }
 0x371   :  { %5935 = vmatpush.bf16.msra.mxu1 %v8919_v19  ;;  %v5185_v25 = vadd.f32 %v5184_v42, %v5171_v46  ;;  %v5159_v29 = vadd.f32 %v5158_v9, %v5145_v37  ;;  %v5172_v41 = vpop.f32.mrf.mxu1  ;;  %v5200_v32 = vpop.f32.mrf.mxu0  ;;  %v5089_v62 = vadd.f32 %v10678_v63, %v5075_v31  ;;  %v9853_v37 = vld [vmem:[#allocation11 + $0x1e4] sm:$0xf0]  ;;  %v8994_v46 = vld [vmem:[#allocation11 + $0x150] sm:$0xf] }
 0x372   :  { %5923 = vmatpush.bf16.msra.mxu3 %v8839_v35  ;;  %v9067_v36 = vor.u32 %v9853_v37, %v9066_v0  ;;  %v8995_v35 = vor.u32 %v9835_v58, %v8994_v46  ;;  %v9829_v31 = vld [vmem:[#allocation11 + $0x124] sm:$0xf0]  ;;  %v3693_v0 = vperm.slane %v10680_v11, 2  ;;  %v9836_v46 = vld [vmem:[#allocation11 + $0x164] sm:$0xf] }
 0x373   :  { %v5199_v8 = vadd.f32 %v5198_v18, %v5185_v25  ;;  %v5173_v43 = vadd.f32 %v5172_v41, %v5159_v29  ;;  %v9851_v18 = vld [vmem:[#allocation11 + $0x1d4] sm:$0xf0]  ;;  %v9050_v25 = vld [vmem:[#allocation11 + $0x1c0] sm:$0xf]  ;;  %v9004_v58 = vld [vmem:[#allocation11 + $0x168] sm:$0xf0] }
 0x374   :  { %5904 = vmatpush.bf16.msrb.mxu0 %v9067_v36  ;;  %v9059_v38 = vor.u32 %v9851_v18, %v9058_v47  ;;  %v8970_v41 = vld [vmem:[#allocation11 + $0x120] sm:$0xf]  ;;  %v9852_v36 = vld [vmem:[#allocation11 + $0x1e4] sm:$0xf]  ;;  %v9007_v47 = vor.u32 %v9836_v46, %v9004_v58  ;;  %v9068_v18 = vld [vmem:[#allocation11 + $0x1e8] sm:$0xf0] }
 0x375   :  { %5936 = vmatpush.bf16.msra.mxu1 %v8911_v52  ;;  %v5427_v61 = vpack.c.bf16 %v5199_v8, %v5087_v15  ;;  %v9837_v52 = vld [vmem:[#allocation11 + $0x164] sm:$0xf0]  ;;  %v9042_v15 = vld [vmem:[#allocation11 + $0x1b0] sm:$0xf]  ;;  %v9842_v58 = vld [vmem:[#allocation11 + $0x194] sm:$0xf] }
 0x376   :  { %5924 = vmatpush.bf16.msra.mxu3 %v8831_v49  ;;  %v9003_v59 = vor.u32 %v9837_v52, %v9002_v57  ;;  %v8978_v49 = vld [vmem:[#allocation11 + $0x130] sm:$0xf]  ;;  %v9076_v57 = vld [vmem:[#allocation11 + $0x1f8] sm:$0xf0] }
 0x377   :  { %v5431_v1 = vunpack.c.l.bf16 %v5427_v61  ;;  %v5432_v51 = vunpack.c.h.bf16 %v5427_v61  ;;  %v8979_v17 = vor.u32 %v9831_v3, %v8978_v49  ;;  %v9079_v52 = vor.u32 %v9854_v33, %v9076_v57  ;;  %v9060_v3 = vld [vmem:[#allocation11 + $0x1d8] sm:$0xf0] }
 0x378   :  { %v5186_v54 = vpop.f32.mrf.mxu2  ;;  %v10704_v63 = vpop.f32.mrf.mxu3  ;;  %5890 = vmatpush.bf16.msrb.mxu2 %v9003_v59  ;;  %5905 = vmatpush.bf16.msrb.mxu0 %v9059_v38  ;;  %v3694_v59 = vperm.slane %v10680_v11, 3  ;;  %v9850_v11 = vld [vmem:[#allocation11 + $0x1d4] sm:$0xf] }
 0x379   :  { %5937 = vmatpush.bf16.msra.mxu1 %v8903_v14  ;;  %v5187_v28 = vadd.f32 %v5186_v54, %v5173_v43  ;;  %v5439_v7 = vmul.f32 0.20019531, %v5431_v1  ;;  %v5440_v10 = vmul.f32 0.20019531, %v5432_v51  ;;  %v10706_v19 = vpop.f32.mrf.mxu1  ;;  %v9849_v14 = vld [vmem:[#allocation11 + $0x1c4] sm:$0xf0]  ;;  %v9034_v43 = vld [vmem:[#allocation11 + $0x1a0] sm:$0xf]  ;;  %v5213_v38 = vadd.f32 %v10704_v63, %v3693_v0 }
 0x37a   :  { %v9051_v50 = vor.u32 %v9849_v14, %v9050_v25  ;;  %v9845_v54 = vld [vmem:[#allocation11 + $0x1a4] sm:$0xf0]  ;;  %v9834_v14 = vld [vmem:[#allocation11 + $0x154] sm:$0xf]  ;;  %v9848_v63 = vld [vmem:[#allocation11 + $0x1c4] sm:$0xf] }
 0x37b   :  { %v5201_v27 = vadd.f32 %v5200_v32, %v5187_v28  ;;  %v5459_v53 = vmax.f32 %v5431_v1, %v5439_v7  ;;  %v5460_v39 = vmax.f32 %v5432_v51, %v5440_v10  ;;  %v9035_v51 = vor.u32 %v9845_v54, %v9034_v43  ;;  %v9026_v7 = vld [vmem:[#allocation11 + $0x190] sm:$0xf] }
 0x37c   :  { %5891 = vmatpush.bf16.msrb.mxu2 %v8995_v35  ;;  %5906 = vmatpush.bf16.msrb.mxu0 %v9051_v50  ;;  %v9071_v35 = vor.u32 %v9852_v36, %v9068_v18  ;;  %v9028_v36 = vld [vmem:[#allocation11 + $0x198] sm:$0xf0] }
 0x37d   :  { %5938 = vmatpush.bf16.msra.mxu1 %v8895_v24  ;;  %v5429_v6 = vpack.c.bf16 %v5201_v27, %v5089_v62  ;;  %v9847_v24 = vld [vmem:[#allocation11 + $0x1b4] sm:$0xf0]  ;;  %v8971_v62 = vor.u32 %v9829_v31, %v8970_v41  ;;  %v8962_v27 = vld [vmem:[#allocation11 + $0x110] sm:$0xf]  ;;  %v9832_v41 = vld [vmem:[#allocation11 + $0x144] sm:$0xf] }
 0x37e   :  { %v9043_v61 = vor.u32 %v9847_v24, %v9042_v15  ;;  %v9063_v15 = vor.u32 %v9850_v11, %v9060_v3  ;;  %v8988_v31 = vld [vmem:[#allocation11 + $0x148] sm:$0xf0] }
 0x37f   :  { %v5435_v22 = vunpack.c.l.bf16 %v5429_v6  ;;  %v5436_v13 = vunpack.c.h.bf16 %v5429_v6  ;;  %v9827_v6 = vld [vmem:[#allocation11 + $0x114] sm:$0xf0]  ;;  %v8956_v11 = vld [vmem:[#allocation11 + $0x108] sm:$0xf0] }
 0x380   :  { %v10712_v5 = vpop.f32.mrf.mxu3  ;;  %5892 = vmatpush.bf16.msrb.mxu2 %v8987_v4  ;;  %5907 = vmatpush.bf16.msrb.mxu0 %v9043_v61  ;;  %v8996_v4 = vld [vmem:[#allocation11 + $0x158] sm:$0xf0] }
 0x381   :  { %v5443_v26 = vmul.f32 0.20019531, %v5435_v22  ;;  %v5444_v34 = vmul.f32 0.20019531, %v5436_v13  ;;  %v10714_v42 = vpop.f32.mrf.mxu1  ;;  %v8999_v49 = vor.u32 %v9834_v14, %v8996_v4  ;;  %v5215_v61 = vadd.f32 %v10712_v5, %v3693_v0  ;;  %v9826_v0 = vld [vmem:[#allocation11 + $0x114] sm:$0xf]  ;;  %v9824_v4 = vld [vmem:[#allocation11 + $0x104] sm:$0xf] }
 0x383   :  { %v5463_v44 = vmax.f32 %v5435_v22, %v5443_v26  ;;  %v5464_v2 = vmax.f32 %v5436_v13, %v5444_v34  ;;  %v8963_v22 = vor.u32 %v9827_v6, %v8962_v27  ;;  %v9843_v13 = vld [vmem:[#allocation11 + $0x194] sm:$0xf0] }
 0x384   :  { %5893 = vmatpush.bf16.msrb.mxu2 %v8979_v17  ;;  %5908 = vmatpush.bf16.msrb.mxu0 %v9035_v51  ;;  %v9027_v26 = vor.u32 %v9843_v13, %v9026_v7  ;;  %v5227_v17 = vadd.f32 %v10706_v19, %v5213_v38  ;;  %v9052_v51 = vld [vmem:[#allocation11 + $0x1c8] sm:$0xf0]  ;;  %v8980_v19 = vld [vmem:[#allocation11 + $0x138] sm:$0xf0]  ;;  %v9846_v13 = vld [vmem:[#allocation11 + $0x1b4] sm:$0xf] }
 0x385   :  { %v5467_v20 = vpack.c.bf16 %v5463_v44, %v5459_v53  ;;  %v5468_v12 = vpack.c.bf16 %v5464_v2, %v5460_v39  ;;  %v8954_v53 = vld [vmem:[#allocation11 + $0x100] sm:$0xf]  ;;  %v9825_v39 = vld [vmem:[#allocation11 + $0x104] sm:$0xf0]  ;;  %v9055_v6 = vor.u32 %v9848_v63, %v9052_v51 }
 0x386   :  { %v9018_v44 = vld [vmem:[#allocation11 + $0x180] sm:$0xf] }
 0x387   :  { %5869 = vmatmul.bf16.vlgmr.msrb.gmra.mxu3 %v5467_v20  ;;  %5883 = vmatmul.bf16.vlgmr.msrb.gmra.mxu1 %v5468_v12  ;;  %v9019_v48 = vor.u32 %v9841_v40, %v9018_v44  ;;  %v9044_v44 = vld [vmem:[#allocation11 + $0x1b8] sm:$0xf0] }
 0x388   :  { %v10708_v60 = vpop.f32.mrf.mxu0  ;;  %v10716_v9 = vpop.f32.mrf.mxu3  ;;  %5894 = vmatpush.bf16.msrb.mxu2 %v8971_v62  ;;  %5909 = vmatpush.bf16.msrb.mxu0 %v9027_v26  ;;  %v8991_v62 = vor.u32 %v9832_v41, %v8988_v31  ;;  %v9047_v56 = vor.u32 %v9846_v13, %v9044_v44 }
 0x389   :  { %v10722_v21 = vpop.f32.mrf.mxu1 }
 0x38c   :  { %5895 = vmatpush.bf16.msrb.mxu2 %v8963_v22  ;;  %5910 = vmatpush.bf16.msrb.mxu0 %v9019_v48  ;;  %v9830_v22 = vld [vmem:[#allocation11 + $0x134] sm:$0xf]  ;;  %v9844_v48 = vld [vmem:[#allocation11 + $0x1a4] sm:$0xf] }
 0x38d   :  { %v10710_v30 = vpop.f32.mrf.mxu2  ;;  %v8983_v5 = vor.u32 %v9830_v22, %v8980_v19 }
 0x38e   :  { %v5241_v43 = vadd.f32 %v10710_v30, %v5227_v17  ;;  %v9828_v30 = vld [vmem:[#allocation11 + $0x124] sm:$0xf] }
 0x390   :  { %v10718_v8 = vpop.f32.mrf.mxu0  ;;  %v10728_v1 = vpop.f32.mrf.mxu3  ;;  %5959 = vmatpush.bf16.msra.mxu0 %v9079_v52  ;;  %v5255_v26 = vadd.f32 %v10708_v60, %v5241_v43 }
 0x391   :  { %v10730_v10 = vpop.f32.mrf.mxu1 }
 0x394   :  { %5960 = vmatpush.bf16.msra.mxu0 %v9071_v35 }
 0x395   :  { %v10720_v29 = vpop.f32.mrf.mxu2 }
 0x397   :  { %5925 = vmatmul.bf16.vlgmr.msra.gmra.mxu3 %v5467_v20  ;;  %5939 = vmatmul.bf16.vlgmr.msra.gmra.mxu1 %v5468_v12  ;;  %v8955_v12 = vor.u32 %v9825_v39, %v8954_v53 }
 0x398   :  { %v5324_v34 = vpop.f32.mrf.mxu3  ;;  %5961 = vmatpush.bf16.msra.mxu0 %v9063_v15  ;;  %v9020_v15 = vld [vmem:[#allocation11 + $0x188] sm:$0xf0] }
 0x399   :  { %5896 = vmatpush.bf16.msrb.mxu2 %v8955_v12  ;;  %v5338_v37 = vpop.f32.mrf.mxu1  ;;  %v5325_v16 = vadd.f32 %v5324_v34, %v3694_v59  ;;  %v5229_v34 = vadd.f32 %v10714_v42, %v5215_v61  ;;  %v8972_v12 = vld [vmem:[#allocation11 + $0x128] sm:$0xf0]  ;;  %v8964_v42 = vld [vmem:[#allocation11 + $0x118] sm:$0xf0] }
 0x39a   :  { %v8975_v52 = vor.u32 %v9828_v30, %v8972_v12  ;;  %v8967_v35 = vor.u32 %v9826_v0, %v8964_v42  ;;  %v9867_v0 = vld [vmem:[#allocation14 + $0x58] sm:$0xff] }
 0x39b   :  { %v5339_v24 = vadd.f32 %v5338_v37, %v5325_v16  ;;  %v5243_v33 = vadd.f32 %v10720_v29, %v5229_v34  ;;  %v9031_v29 = vor.u32 %v9842_v58, %v9028_v36  ;;  %v9857_v36 = vld [vmem:[#allocation14 + $0x8] sm:$0xff] }
 0x39c   :  { %5962 = vmatpush.bf16.msra.mxu0 %v9055_v6 }
 0x39d   :  { %5945 = vmatpush.bf16.msra.mxu2 %v9015_v55  ;;  %v9036_v55 = vld [vmem:[#allocation11 + $0x1a8] sm:$0xf0]  ;;  %v5257_v18 = vadd.f32 %v10718_v8, %v5243_v33  ;;  %v8959_v8 = vor.u32 %v9824_v4, %v8956_v11 }
 0x39e   :  { %v9039_v60 = vor.u32 %v9844_v48, %v9036_v55  ;;  %v9861_v48 = vld [vmem:[#allocation14 + $0x28] sm:$0xff] }
 0x39f   :  { %v9869_v55 = vld [vmem:[#allocation14 + $0x68] sm:$0xff] }
 0x3a0   :  { %v5326_v50 = vpop.f32.mrf.mxu3  ;;  %5963 = vmatpush.bf16.msra.mxu0 %v9047_v56  ;;  %v9870_v56 = vld [vmem:[#allocation14 + $0x70] sm:$0xff] }
 0x3a1   :  { %5946 = vmatpush.bf16.msra.mxu2 %v9007_v47  ;;  %v5340_v27 = vpop.f32.mrf.mxu1  ;;  %v5327_v7 = vadd.f32 %v5326_v50, %v3694_v59  ;;  %v5269_v59 = vadd.f32 %v10716_v9, %v5255_v26  ;;  %v9840_v9 = vld [vmem:[#allocation11 + $0x184] sm:$0xf] }
 0x3a3   :  { %v5341_v57 = vadd.f32 %v5340_v27, %v5327_v7  ;;  %v5283_v38 = vadd.f32 %v10722_v21, %v5269_v59 }
 0x3a4   :  { %5964 = vmatpush.bf16.msra.mxu0 %v9039_v60  ;;  %v9859_v60 = vld [vmem:[#allocation14 + $0x18] sm:$0xff] }
 0x3a5   :  { %5947 = vmatpush.bf16.msra.mxu2 %v8999_v49  ;;  %v5271_v49 = vadd.f32 %v10728_v1, %v5257_v18 }
 0x3a7   :  { %v5285_v63 = vadd.f32 %v10730_v10, %v5271_v49 }
 0x3a8   :  { %v10724_v28 = vpop.f32.mrf.mxu0  ;;  %v5380_v53 = vpop.f32.mrf.mxu3  ;;  %5965 = vmatpush.bf16.msra.mxu0 %v9031_v29  ;;  %v9856_v29 = vld [vmem:[#allocation14] sm:$0xff] }
 0x3a9   :  { %5948 = vmatpush.bf16.msra.mxu2 %v8991_v62  ;;  %v5394_v47 = vpop.f32.mrf.mxu1 }
 0x3ad   :  { %v10726_v32 = vpop.f32.mrf.mxu2  ;;  %5949 = vmatpush.bf16.msra.mxu2 %v8983_v5 }
 0x3ae   :  { %v5297_v50 = vadd.f32 %v10726_v32, %v5283_v38  ;;  %v9864_v38 = vld [vmem:[#allocation14 + $0x40] sm:$0xff] }
 0x3b0   :  { %v10732_v2 = vpop.f32.mrf.mxu0  ;;  %v5382_v17 = vpop.f32.mrf.mxu3  ;;  %v5311_v31 = vadd.f32 %v10724_v28, %v5297_v50 }
 0x3b1   :  { %5950 = vmatpush.bf16.msra.mxu2 %v8975_v52  ;;  %v5396_v61 = vpop.f32.mrf.mxu1  ;;  %v9868_v52 = vld [vmem:[#allocation14 + $0x60] sm:$0xff] }
 0x3b5   :  { %v10734_v20 = vpop.f32.mrf.mxu2  ;;  %5951 = vmatpush.bf16.msra.mxu2 %v8967_v35 }
 0x3b6   :  { %v5299_v32 = vadd.f32 %v10734_v20, %v5285_v63 }
 0x3b8   :  { %v5313_v27 = vadd.f32 %v10732_v2, %v5299_v32  ;;  %v9863_v2 = vld [vmem:[#allocation14 + $0x38] sm:$0xff] }
 0x3b9   :  { %5952 = vmatpush.bf16.msra.mxu2 %v8959_v8  ;;  %6127 = vmatpush.bf16.msrb.mxu3 %v9863_v2 }
 0x3c8   :  { %v5366_v23 = vpop.f32.mrf.mxu0 }
 0x3cd   :  { %v5352_v25 = vpop.f32.mrf.mxu2 }
 0x3ce   :  { %v5353_v54 = vadd.f32 %v5352_v25, %v5339_v24  ;;  %v9023_v24 = vor.u32 %v9840_v9, %v9020_v15 }
 0x3d0   :  { %v5367_v39 = vadd.f32 %v5366_v23, %v5353_v54  ;;  %v5368_v40 = vpop.f32.mrf.mxu0  ;;  %5966 = vmatpush.bf16.msra.mxu0 %v9023_v24 }
 0x3d2   :  { %v5381_v46 = vadd.f32 %v5380_v53, %v5367_v39 }
 0x3d4   :  { %v5395_v23 = vadd.f32 %v5394_v47, %v5381_v46  ;;  %v9866_v46 = vld [vmem:[#allocation14 + $0x50] sm:$0xff]  ;;  %v9865_v47 = vld [vmem:[#allocation14 + $0x48] sm:$0xff] }
 0x3d5   :  { %v5354_v45 = vpop.f32.mrf.mxu2 }
 0x3d6   :  { %v5355_v37 = vadd.f32 %v5354_v45, %v5341_v57  ;;  %v9862_v45 = vld [vmem:[#allocation14 + $0x30] sm:$0xff]  ;;  %v9860_v57 = vld [vmem:[#allocation14 + $0x20] sm:$0xff] }
 0x3d7   :  { %6128 = vmatpush.bf16.msrb.mxu3 %v9862_v45 }
 0x3d8   :  { %v5369_v16 = vadd.f32 %v5368_v40, %v5355_v37  ;;  %v9871_v40 = vld [vmem:[#allocation14 + $0x78] sm:$0xff]  ;;  %v9858_v37 = vld [vmem:[#allocation14 + $0x10] sm:$0xff] }
 0x3d9   :  { %6141 = vmatpush.bf16.msrb.mxu1 %v9871_v40 }
 0x3da   :  { %v5383_v21 = vadd.f32 %v5382_v17, %v5369_v16  ;;  %v5535_v16 = vld [vmem:[#allocation13] sm:$0x3] }
 0x3db   :  { %6129 = vmatpush.bf16.msrb.mxu3 %v9861_v48  ;;  %v5538_v4 = vperm.slane %v5535_v16, 1 }
 0x3dc   :  { %v5397_v1 = vadd.f32 %v5396_v61, %v5383_v21 }
 0x3dd   :  { %6142 = vmatpush.bf16.msrb.mxu1 %v9870_v56  ;;  %v9892_v56 = vld [vmem:[#allocation16] ss:$0 sm:$0xff] }
 0x3df   :  { %6130 = vmatpush.bf16.msrb.mxu3 %v9860_v57 }
 0x3e1   :  { %6143 = vmatpush.bf16.msrb.mxu1 %v9869_v55 }
 0x3e3   :  { %6131 = vmatpush.bf16.msrb.mxu3 %v9859_v60 }
 0x3e5   :  { %6144 = vmatpush.bf16.msrb.mxu1 %v9868_v52 }
 0x3e7   :  { %6132 = vmatpush.bf16.msrb.mxu3 %v9858_v37 }
 0x3e8   :  { %v5422_v25 = vpop.f32.mrf.mxu0 }
 0x3e9   :  { %6145 = vmatpush.bf16.msrb.mxu1 %v9867_v0 }
 0x3eb   :  { %6133 = vmatpush.bf16.msrb.mxu3 %v9857_v36 }
 0x3ed   :  { %v5408_v14 = vpop.f32.mrf.mxu2  ;;  %6146 = vmatpush.bf16.msrb.mxu1 %v9866_v46 }
 0x3ee   :  { %v5409_v3 = vadd.f32 %v5408_v14, %v5395_v23  ;;  %v5537_v14 = vperm.slane %v5535_v16, 0 }
 0x3ef   :  { %6134 = vmatpush.bf16.msrb.mxu3 %v9856_v29 }
 0x3f0   :  { %v5423_v41 = vadd.f32 %v5422_v25, %v5409_v3  ;;  %v5424_v51 = vpop.f32.mrf.mxu0 }
 0x3f1   :  { %6147 = vmatpush.bf16.msrb.mxu1 %v9865_v47 }
 0x3f2   :  { %v5428_v43 = vpack.c.bf16 %v5423_v41, %v5311_v31 }
 0x3f4   :  { %v5433_v6 = vunpack.c.l.bf16 %v5428_v43  ;;  %v5434_v7 = vunpack.c.h.bf16 %v5428_v43 }
 0x3f5   :  { %v5410_v54 = vpop.f32.mrf.mxu2  ;;  %6148 = vmatpush.bf16.msrb.mxu1 %v9864_v38 }
 0x3f6   :  { %v5411_v62 = vadd.f32 %v5410_v54, %v5397_v1  ;;  %v5441_v13 = vmul.f32 0.20019531, %v5433_v6  ;;  %v5442_v28 = vmul.f32 0.20019531, %v5434_v7 }
 0x3f8   :  { %v5425_v22 = vadd.f32 %v5424_v51, %v5411_v62  ;;  %v5461_v39 = vmax.f32 %v5433_v6, %v5441_v13  ;;  %v5462_v5 = vmax.f32 %v5434_v7, %v5442_v28 }
 0x3fa   :  { %v5430_v19 = vpack.c.bf16 %v5425_v22, %v5313_v27 }
 0x3fc   :  { %v5437_v26 = vunpack.c.l.bf16 %v5430_v19  ;;  %v5438_v10 = vunpack.c.h.bf16 %v5430_v19 }
 0x3fe   :  { %v5445_v34 = vmul.f32 0.20019531, %v5437_v26  ;;  %v5446_v53 = vmul.f32 0.20019531, %v5438_v10 }
 0x400   :  { %v5465_v20 = vmax.f32 %v5437_v26, %v5445_v34  ;;  %v5466_v44 = vmax.f32 %v5438_v10, %v5446_v53 }
 0x402   :  { %v5469_v30 = vpack.c.bf16 %v5465_v20, %v5461_v39  ;;  %v5470_v12 = vpack.c.bf16 %v5466_v44, %v5462_v5 }
 0x404   :  { %5897 = vmatmul.bf16.vlgmr.msrb.gmra.mxu2 %v5469_v30  ;;  %5911 = vmatmul.bf16.vlgmr.msrb.gmra.mxu0 %v5470_v12  ;;  %v5884_v42 = vpop.f32.mrf.mxu1 }
 0x40a   :  { %v5870_v33 = vpop.f32.mrf.mxu3 }
 0x40b   :  { %v5871_v9 = vadd.f32 %v5870_v33, %v5537_v14 }
 0x40c   :  { %v5886_v35 = vpop.f32.mrf.mxu1 }
 0x40d   :  { %v5885_v8 = vadd.f32 %v5884_v42, %v5871_v9 }
 0x412   :  { %v5872_v59 = vpop.f32.mrf.mxu3 }
 0x413   :  { %v5873_v41 = vadd.f32 %v5872_v59, %v5537_v14 }
 0x414   :  { %5953 = vmatmul.bf16.vlgmr.msra.gmra.mxu2 %v5469_v30  ;;  %5967 = vmatmul.bf16.vlgmr.msra.gmra.mxu0 %v5470_v12  ;;  %v5940_v49 = vpop.f32.mrf.mxu1 }
 0x415   :  { %v5887_v43 = vadd.f32 %v5886_v35, %v5873_v41 }
 0x41a   :  { %v5926_v23 = vpop.f32.mrf.mxu3 }
 0x41b   :  { %v5927_v50 = vadd.f32 %v5926_v23, %v5538_v4 }
 0x41c   :  { %v5942_v1 = vpop.f32.mrf.mxu1 }
 0x41d   :  { %v5941_v15 = vadd.f32 %v5940_v49, %v5927_v50 }
 0x422   :  { %v5928_v3 = vpop.f32.mrf.mxu3 }
 0x423   :  { %v5929_v63 = vadd.f32 %v5928_v3, %v5538_v4 }
 0x425   :  { %v5943_v51 = vadd.f32 %v5942_v1, %v5929_v63 }
 0x481   :  { %v5912_v58 = vpop.f32.mrf.mxu0 }
 0x487   :  { %v5898_v18 = vpop.f32.mrf.mxu2 }
 0x488   :  { %v5899_v21 = vadd.f32 %v5898_v18, %v5885_v8 }
 0x489   :  { %v5914_v25 = vpop.f32.mrf.mxu0 }
 0x48a   :  { %v5913_v32 = vadd.f32 %v5912_v58, %v5899_v21 }
 0x48f   :  { %v5900_v11 = vpop.f32.mrf.mxu2 }
 0x490   :  { %v5901_v54 = vadd.f32 %v5900_v11, %v5887_v43 }
 0x491   :  { %v5968_v17 = vpop.f32.mrf.mxu0 }
 0x492   :  { %v5915_v22 = vadd.f32 %v5914_v25, %v5901_v54 }
 0x497   :  { %v5954_v24 = vpop.f32.mrf.mxu2 }
 0x498   :  { %v5955_v31 = vadd.f32 %v5954_v24, %v5941_v15 }
 0x499   :  { %v5970_v7 = vpop.f32.mrf.mxu0 }
 0x49a   :  { %v5969_v61 = vadd.f32 %v5968_v17, %v5955_v31 }
 0x49c   :  { %v5973_v62 = vpack.c.bf16 %v5969_v61, %v5913_v32 }
 0x49e   :  { %v5975_v19 = vunpack.c.l.bf16 %v5973_v62  ;;  %v5976_v13 = vunpack.c.h.bf16 %v5973_v62 }
 0x49f   :  { %v5956_v27 = vpop.f32.mrf.mxu2 }
 0x4a0   :  { %v5957_v6 = vadd.f32 %v5956_v27, %v5943_v51  ;;  %v5979_v10 = vmul.f32 0.20019531, %v5975_v19  ;;  %v5980_v34 = vmul.f32 0.20019531, %v5976_v13 }
 0x4a2   :  { %v5971_v28 = vadd.f32 %v5970_v7, %v5957_v6  ;;  %v5989_v44 = vmax.f32 %v5975_v19, %v5979_v10  ;;  %v5990_v30 = vmax.f32 %v5976_v13, %v5980_v34 }
 0x4a4   :  { %v5974_v26 = vpack.c.bf16 %v5971_v28, %v5915_v22 }
 0x4a6   :  { %v5977_v53 = vunpack.c.l.bf16 %v5974_v26  ;;  %v5978_v39 = vunpack.c.h.bf16 %v5974_v26 }
 0x4a8   :  { %v5981_v5 = vmul.f32 0.20019531, %v5977_v53  ;;  %v5982_v20 = vmul.f32 0.20019531, %v5978_v39 }
 0x4aa   :  { %v5991_v12 = vmax.f32 %v5977_v53, %v5981_v5  ;;  %v5992_v2 = vmax.f32 %v5978_v39, %v5982_v20 }
 0x4ac   :  { %v5993_v40 = vpack.c.bf16 %v5991_v12, %v5989_v44  ;;  %v5994_v45 = vpack.c.bf16 %v5992_v2, %v5990_v30 }
 0x4ae   :  { %6135 = vmatmul.bf16.vlgmr.msrb.gmra.mxu3 %v5993_v40  ;;  %6149 = vmatmul.bf16.vlgmr.msrb.gmra.mxu1 %v5994_v45 }
 0x52b   :  { %v6150_v48 = vpop.f32.mrf.mxu1 }
 0x531   :  { %v6136_v55 = vpop.f32.mrf.mxu3 }
 0x532   :  { %v6137_v33 = vadd.f32 %v9892_v56, %v6136_v55 }
 0x533   :  { %v6152_v37 = vpop.f32.mrf.mxu1 }
 0x534   :  { %v6151_v57 = vadd.f32 %v6150_v48, %v6137_v33 }
 0x536   :  { %v6155_v52 = vand.u32 2147483647, %v6151_v57  ;;  %vm6193_vm5 = vcmp.ge.f32.partialorder %v6151_v57, 0.0 }
 0x538   :  { %v6157_v60 = vsub.f32 0.0, %v6155_v52 }
 0x539   :  { %v6138_v0 = vpop.f32.mrf.mxu3 }
 0x53a   :  { %v6159_v42 = vmul.f32 1.442695, %v6157_v60  ;;  %v6139_v59 = vadd.f32 %v9892_v56, %v6138_v0 }
 0x53c   :  { %9893 = vpow2.f32 %v6159_v42  ;;  %v6153_v46 = vadd.f32 %v6152_v37, %v6139_v59 }
 0x53e   :  { %v6156_v58 = vand.u32 2147483647, %v6153_v46  ;;  %vm6194_vm10 = vcmp.ge.f32.partialorder %v6153_v46, 0.0 }
 0x540   :  { %v6158_v36 = vsub.f32 0.0, %v6156_v58 }
 0x542   :  { %v9894_v47 = vpop.eup %9893  ;;  %v6161_v18 = vmul.f32 1.442695, %v6158_v36 }
 0x543   :  { %v6163_v35 = vadd.f32 1.0, %v9894_v47 }
 0x544   :  { %9895 = vpow2.f32 %v6161_v18 }
 0x545   :  { %9897 = vrcp.f32 %v6163_v35  ;;  %v6176_v14 = vand.u32 2147483648, %v6163_v35  ;;  %v6174_v11 = vand.u32 2147483647, %v6163_v35  ;;  %vm6170_vm2 = vweird.f32 %v6163_v35 }
 0x547   :  { %v6177_v49 = vor.u32 1.1754944e-38, %v6176_v14  ;;  %vm6175_vm4 = vcmp.eq.f32.partialorder %v6174_v11, 8.507059e+37 }
 0x54a   :  { %v9896_v29 = vpop.eup %9895 }
 0x54b   :  { %v9898_v38 = vpop.eup %9897  ;;  %v6164_v16 = vadd.f32 1.0, %v9896_v29 }
 0x54c   :  { %v6166_v23 = vmul.f32 %v9898_v38, %v6163_v35  ;;  %vm6171_vm1 = vweird.f32 %v9898_v38 }
 0x54d   :  { %9899 = vrcp.f32 %v6164_v16  ;;  %vm6172_vm3 = vmor %vm6170_vm2, %vm6171_vm1  ;;  %v6190_v41 = vand.u32 2147483648, %v6164_v16  ;;  %v6188_v31 = vand.u32 2147483647, %v6164_v16  ;;  %vm6184_vm7 = vweird.f32 %v6164_v16 }
 0x54e   :  { %v6167_v25 = vsub.f32 1.0, %v6166_v23 }
 0x54f   :  { %v6191_v32 = vor.u32 1.1754944e-38, %v6190_v41  ;;  %vm6189_vm9 = vcmp.eq.f32.partialorder %v6188_v31, 8.507059e+37 }
 0x550   :  { %v6168_v4 = vmul.f32 %v9898_v38, %v6167_v25 }
 0x552   :  { %v6169_v9 = vadd.f32 %v9898_v38, %v6168_v4 }
 0x553   :  { %v9900_v50 = vpop.eup %9899 }
 0x554   :  { %v6173_v3 = vsel %vm6172_vm3, %v9898_v38, %v6169_v9  ;;  %v6180_v8 = vmul.f32 %v9900_v50, %v6164_v16  ;;  %vm6185_vm6 = vweird.f32 %v9900_v50 }
 0x555   :  { %v6178_v15 = vsel %vm6175_vm4, %v6177_v49, %v6173_v3  ;;  %vm6186_vm8 = vmor %vm6184_vm7, %vm6185_vm6 }
 0x556   :  { %v6181_v17 = vsub.f32 1.0, %v6180_v8  ;;  %v6195_v24 = vmul.f32 %v9894_v47, %v6178_v15 }
 0x558   :  { %v6182_v21 = vmul.f32 %v9900_v50, %v6181_v17  ;;  %v6197_v63 = vsel %vm6193_vm5, %v6178_v15, %v6195_v24 }
 0x559   :  { %6199 = vst [vmem:[#allocation17] sm:$0xff] %v6197_v63 }
 0x55a   :  { %v6183_v61 = vadd.f32 %v9900_v50, %v6182_v21 }
 0x55c   :  { %v6187_v43 = vsel %vm6186_vm8, %v9900_v50, %v6183_v61 }
 0x55d   :  { %v6192_v1 = vsel %vm6189_vm9, %v6191_v32, %v6187_v43 }
 0x55e   :  { %v6196_v54 = vmul.f32 %v9896_v29, %v6192_v1 }
 0x560   :  { %v6198_v62 = vsel %vm6194_vm10, %v6192_v1, %v6196_v54 }
 0x561   :  { %6200 = vst [vmem:[#allocation17 + $0x8] sm:$0xff] %v6198_v62 }
 0x562   :  { %6213 = dma.vmem_to_hbm [thread:$0]  %s6206_s8, 256, %s6208_s16, [#allocation4], %s10162_s29, %s10162_s29, %s10163_s30  }
 0x563   :  { %10153 = dma.done.wait [#allocation4], 256  }
 0x564   :  { %10154 = vsyncadd [#allocation4], 4294967040 }
 0x565   :  { %6218 = vsyncpa [#allocation3], 1 }
 0x566   :  { %6219 = vsyncpa [#allocation6], 1 }
 0x567   :  { %6220 = vsyncpa [#allocation9], 1 }
 0x568   :  { %6221 = vsyncpa [#allocation12], 1 }
 0x569   :  { %6222 = vsyncpa [#allocation15], 1 }
 0x56a   :  { %6223 = vsyncpa [#allocation4], 1 }

</bundles_post_ra>
